<compile_context>
chip_gen: v7x
topology: tpu7x:2x2x1
jax: 0.10.0
libtpu: 0.0.40
codegen_flags: <defaults>
</compile_context>

<pallas_src>
import jax
import jax.numpy as jnp
from jax import lax
from jax.experimental import pallas as pl
from jax.experimental.pallas import tpu as pltpu

# ---------------- config (mirrors cfg.MODEL.*) ----------------
EMBEDDING_DIM  = 16
LSTM_HIDDEN    = 32
LSTM_NUM_LAYER = 2
FC_HIDDEN      = 64
DROPOUT_P      = 0.1        # inactive under eval-mode semantics
VOCAB_SIZE     = 50
BN_EPS         = 1e-5
D_IN           = EMBEDDING_DIM + 2      # 18
V_PAD          = 64                     # vocab padded for the multi-hot matmul

F32  = jnp.float32
BF16 = jnp.bfloat16
_VMEM = pl.BlockSpec(memory_space=pltpu.MemorySpace.VMEM)


# ====================== fused Pallas kernel ======================
def _bidir_lstm_layer(gx_ref, whh, S, B, H, proj=None):
    """One bidirectional LSTM layer over a precomputed input projection.

    gx_ref : VMEM ref (S*B, 8H); rows t*B:(t+1)*B hold x_t @ W_ih + b for both
             directions (fwd gate pre-acts in lanes [0:4H], bwd in [4H:8H]),
             with the i/f/o columns pre-scaled by 0.5 (sigmoid-as-tanh fold).
    whh    : (H, 8H) bf16 value = [W_hh_f | W_hh_b] (same column fold applied).
    proj   : optional (w2f, w2b, gx2_ref): stream the NEXT layer's input
             projection h @ W_ih2 into gx2_ref as hidden states are produced.
    Returns (h_fwd[S-1], h_bwd[S-1]) -- the two halves of x_out[:, -1, :].
    """
    h = jnp.zeros((2 * B, H), F32)              # rows 0:B fwd, B:2B bwd
    c = jnp.zeros((2 * B, H), F32)
    h_last_f = h_last_b = None
    for t in range(S):                          # static S -> fully unrolled
        tb = S - 1 - t
        gx_f = gx_ref[t * B:(t + 1) * B, 0:4 * H]
        gx_b = gx_ref[tb * B:(tb + 1) * B, 4 * H:8 * H]
        if t == 0:                              # h == c == 0: skip the MXU push
            gates = jnp.concatenate([gx_f, gx_b], axis=0)               # (2B,4H)
        else:
            # one 256-lane MXU push covering both directions' recurrences
            gh = jnp.dot(h.astype(BF16), whh, preferred_element_type=F32)
            gates = jnp.concatenate([gx_f + gh[:B, 0:4 * H],
                                     gx_b + gh[B:, 4 * H:8 * H]], axis=0)
        # sigmoid(a) == 0.5*tanh(0.5*a) + 0.5, with the 0.5 folded into the
        # i/f/o weight columns at pack time -> one native tanh over the tile.
        th = jnp.tanh(gates)
        sg = 0.5 * th + 0.5
        i, f, o = sg[:, 0:H], sg[:, H:2 * H], sg[:, 3 * H:4 * H]
        g = th[:, 2 * H:3 * H]
        c = i * g if t == 0 else f * c + i * g
        h = o * jnp.tanh(c)
        if proj is not None:                    # stream next layer's x @ W_ih2
            w2f, w2b, gx2_ref = proj
            pf = jnp.dot(h[:B].astype(BF16), w2f, preferred_element_type=F32)
            pb = jnp.dot(h[B:].astype(BF16), w2b, preferred_element_type=F32)
            gx2_ref[t * B:(t + 1) * B, :] = gx2_ref[t * B:(t + 1) * B, :] + pf
            gx2_ref[tb * B:(tb + 1) * B, :] = gx2_ref[tb * B:(tb + 1) * B, :] + pb
        if t == S - 1:
            h_last_f = h[:B]
        if t == 0:
            h_last_b = h[B:]
    return h_last_f, h_last_b


def _fused_forward_kernel(codes_ref, scal_ref, wrec_ref, whead_ref, misc_ref,
                          out_ref, gx1_ref, gx2_ref):
    H = LSTM_HIDDEN
    F = FC_HIDDEN
    B = scal_ref.shape[0]
    SB, C = codes_ref.shape
    S = SB // B
    G = 8 * H                                        # stacked fwd|bwd gate width

    scal = scal_ref[...]                             # (B, 4): t | yf | gender | age
    t_col, yf_col = scal[:, 0:1], scal[:, 1:2]
    g_col, a_col = scal[:, 2:3], scal[:, 3:4]

    misc = misc_ref[...]                             # (8, 8H) f32
    b1, b2 = misc[0:1, :], misc[1:2, :]
    w_g, w_a = misc[2:3, :], misc[3:4, :]
    bA, bB = misc[4:5, 0:2 * F], misc[5:6, 0:2 * F]

    # ---- in-kernel embedding sum: multi-hot codes @ (embed_table @ W_ih1) ----
    codes = codes_ref[...]                                            # (SB, C) int32
    vocab = lax.broadcasted_iota(jnp.int32, (SB, V_PAD), 1)
    mh = (codes[:, 0:1] == vocab).astype(F32)
    for c in range(1, C):
        mh = mh + (codes[:, c:c + 1] == vocab).astype(F32)            # exact counts
    w_emb = wrec_ref[0:V_PAD, :]                                      # (64, 8H) bf16
    ga = g_col * w_g + a_col * w_a                                    # (B, 8H) rank-1 updates
    gx1_ref[...] = (jnp.dot(mh.astype(BF16), w_emb, preferred_element_type=F32)
                    + b1 + jnp.concatenate([ga] * S, axis=0))

    # layer-2 gx starts at its bias; layer-1 loop accumulates h @ W_ih2 into it
    gx2_ref[...] = jnp.broadcast_to(b2, (SB, G))

    whh1 = wrec_ref[V_PAD:V_PAD + H, :]                               # (H, 8H) bf16
    w2f  = wrec_ref[V_PAD + H:V_PAD + 2 * H, :]                       # W_ih2 rows hit by fwd h
    w2b  = wrec_ref[V_PAD + 2 * H:V_PAD + 3 * H, :]                   # W_ih2 rows hit by bwd h
    whh2 = wrec_ref[V_PAD + 3 * H:V_PAD + 4 * H, :]

    _bidir_lstm_layer(gx1_ref, whh1, S, B, H, proj=(w2f, w2b, gx2_ref))
    hf, hb = _bidir_lstm_layer(gx2_ref, whh2, S, B, H)
    x_seq = jnp.concatenate([hf, hb], axis=1)                         # (B, 2H)

    # ---- heads: BN folded into wA; y0|y1|t second stage packed into wB ----
    wA = whead_ref[0:2 * H, :]                                        # (2H, 2F) bf16
    wB = whead_ref[2 * H:2 * H + 2 * F + 2 * H, :]                    # (2F+2H, 128) bf16
    hA = jnp.dot(x_seq.astype(BF16), wA, preferred_element_type=F32) + bA
    hA = jnp.maximum(hA, 0.0)                                         # ReLU
    z = jnp.concatenate([hA, x_seq], axis=1)                          # (B, 2F+2H)
    outB = jnp.dot(z.astype(BF16), wB, preferred_element_type=F32) + bB   # (B, 128)
    y0, y1, tl = outB[:, 0:1], outB[:, 1:2], outB[:, 2:3]
    yfp = jnp.where(t_col < 0.5, y0, y1)                              # robust 0/1 compare

    def bce_mean(logits, target):      # BCEWithLogitsLoss (mean), stable form
        return jnp.mean(jnp.maximum(logits, 0.0) - logits * target
                        + jnp.log1p(jnp.exp(-jnp.abs(logits))))

    loss = bce_mean(tl, t_col) + bce_mean(yfp, yf_col)

    # single lane-dense store: lanes 0..4 = y0 | y1 | t_logits | yf_pred | loss
    lane = lax.broadcasted_iota(jnp.int32, (B, 128), 1)
    packed = jnp.where(lane == 3, yfp, outB)       # outB lanes >= 3 are exactly 0
    packed = jnp.where(lane == 4, loss, packed)
    out_ref[...] = packed


def fused_forward(codes, scal, pk):
    """codes: (S*B, C) int32 time-major code ids; scal: (B, 4) [t|yf|gender|age]."""
    SB = codes.shape[0]
    B = scal.shape[0]
    return pl.pallas_call(
        _fused_forward_kernel,
        out_shape=jax.ShapeDtypeStruct((B, 128), F32),
        in_specs=[_VMEM] * 5,
        out_specs=_VMEM,
        scratch_shapes=[pltpu.VMEM((SB, 8 * LSTM_HIDDEN), F32),   # layer-1 gx
                        pltpu.VMEM((SB, 8 * LSTM_HIDDEN), F32)],  # layer-2 gx (accumulated)
    )(codes, scal, pk['wrec'], pk['whead'], pk['misc'])


# ====================== parameters (deterministic, synthetic) ======================
def init_params(key):
    ks = list(jax.random.split(key, 48))
    kidx = [0]

    def rnd(shape, scale=0.1):
        k = ks[kidx[0]]
        kidx[0] += 1
        return jax.random.normal(k, shape, F32) * scale

    p = {}
    emb = rnd((VOCAB_SIZE, EMBEDDING_DIM))
    p['diag_embed'] = emb.at[0].set(0.0)          # padding_idx = 0
    p['gender_embed'] = rnd((2, 1))

    H = LSTM_HIDDEN
    d_in = D_IN
    p['lstm'] = []
    for _ in range(LSTM_NUM_LAYER):
        lp = {}
        for tag in ('f', 'b'):
            lp[f'wih_{tag}'] = rnd((d_in, 4 * H))      # weight_ih^T
            lp[f'whh_{tag}'] = rnd((H, 4 * H))         # weight_hh^T
            lp[f'b_{tag}'] = rnd((1, 4 * H))           # b_ih + b_hh folded
        p['lstm'].append(lp)
        d_in = 2 * H

    for name in ('y0', 'y1'):
        p[f'{name}_w1'] = rnd((2 * H, FC_HIDDEN))
        p[f'{name}_b1'] = rnd((1, FC_HIDDEN))
        # BatchNorm1d eval: gamma=1, beta=0, running_mean=0, running_var=1
        p[f'{name}_bn_scale'] = jnp.full((1, FC_HIDDEN), 1.0 / jnp.sqrt(1.0 + BN_EPS), F32)
        p[f'{name}_bn_shift'] = jnp.zeros((1, FC_HIDDEN), F32)
        p[f'{name}_w2'] = rnd((FC_HIDDEN, 1))
        p[f'{name}_b2'] = rnd((1, 1))
    p['tr_w'] = rnd((2 * H, 1))
    p['tr_b'] = rnd((1, 1))
    return p


def _fold_sigmoid(w):
    """Pre-scale the i/f/o gate columns by 0.5 (per 4H group) so that
    sigmoid(a) == 0.5*tanh(a_scaled) + 0.5 needs only a native tanh.
    The g-gate columns are left unscaled (they need tanh directly)."""
    H = LSTM_HIDDEN
    return jnp.concatenate([0.5 * w[..., 0:2 * H],
                            w[..., 2 * H:3 * H],
                            0.5 * w[..., 3 * H:4 * H]], axis=-1)


def pack_params(p):
    """Pack/fold PyTorch-layout params into the kernel's fused layout (done once)."""
    assert LSTM_NUM_LAYER == 2
    H, F, E = LSTM_HIDDEN, FC_HIDDEN, EMBEDDING_DIM
    l1, l2 = p['lstm']

    def both(name, lp):   # sigmoid-fold + concat fwd|bwd along gate lanes
        return jnp.concatenate([_fold_sigmoid(lp[f'{name}_f']),
                                _fold_sigmoid(lp[f'{name}_b'])], axis=1)

    wih1, whh1, b1 = both('wih', l1), both('whh', l1), both('b', l1)   # (18,8H),(H,8H),(1,8H)
    wih2, whh2, b2 = both('wih', l2), both('whh', l2), both('b', l2)   # (2H,8H),(H,8H),(1,8H)

    # fold embedding table, gender embedding and age column into the layer-1 projection
    table = jnp.zeros((V_PAD, E), F32).at[:VOCAB_SIZE].set(p['diag_embed'])
    table_wih1 = jnp.dot(table, wih1[0:E, :], precision=lax.Precision.HIGHEST)   # (V_PAD, 8H)
    e0, e1 = p['gender_embed'][0, 0], p['gender_embed'][1, 0]
    w_gender = wih1[E:E + 1, :]
    w_age = wih1[E + 1:E + 2, :]
    b1_eff = b1 + e0 * w_gender          # gender==0 baseline folded into the bias
    w_g = (e1 - e0) * w_gender           # scaled by gender in {0,1}
    w_a = w_age                          # scaled by age

    pk = {}
    pk['wrec'] = jnp.concatenate(
        [table_wih1,                      # rows   0: 64
         whh1,                            # rows  64: 96
         wih2[0:H, :],                    # rows  96:128  (W_ih2 rows hit by fwd h)
         wih2[H:2 * H, :],                # rows 128:160  (W_ih2 rows hit by bwd h)
         whh2],                           # rows 160:192
        axis=0).astype(BF16)

    # heads: BatchNorm1d (eval affine) folded into the first Linear of each head
    wA = jnp.concatenate([p['y0_w1'] * p['y0_bn_scale'],
                          p['y1_w1'] * p['y1_bn_scale']], axis=1)                 # (2H, 2F)
    bA = jnp.concatenate([p['y0_b1'] * p['y0_bn_scale'] + p['y0_bn_shift'],
                          p['y1_b1'] * p['y1_bn_scale'] + p['y1_bn_shift']],
                         axis=1)                                                   # (1, 2F)
    KB = 2 * F + 2 * H
    wB = jnp.zeros((KB, 128), F32)
    wB = wB.at[0:F, 0].set(p['y0_w2'][:, 0])
    wB = wB.at[F:2 * F, 1].set(p['y1_w2'][:, 0])
    wB = wB.at[2 * F:, 2].set(p['tr_w'][:, 0])
    bB = jnp.zeros((1, 128), F32)
    bB = (bB.at[0, 0].set(p['y0_b2'][0, 0])
             .at[0, 1].set(p['y1_b2'][0, 0])
             .at[0, 2].set(p['tr_b'][0, 0]))
    pk['whead'] = jnp.concatenate([wA, wB], axis=0).astype(BF16)                  # (2H+KB, 128)

    misc = jnp.zeros((8, 8 * H), F32)
    misc = misc.at[0, :].set(b1_eff[0])
    misc = misc.at[1, :].set(b2[0])
    misc = misc.at[2, :].set(w_g[0])
    misc = misc.at[3, :].set(w_a[0])
    misc = misc.at[4, 0:2 * F].set(bA[0])
    misc = misc.at[5, 0:2 * F].set(bB[0])
    pk['misc'] = misc
    return pk


# ====================== full forward (tiny int/scalar glue in JAX, hot path fused) ======================
@jax.jit
def mimic_lstm_forward(pk, x_diag, x_age, x_gender, t, yf, y0, y1):
    # y0 / y1 are accepted (as in the PyTorch forward) but unused.
    B, S, C = x_diag.shape
    assert B % 8 == 0, "batch must be sublane-aligned (multiple of 8)"
    # NOTE(v6e/v7x): larger B (up to ~128-256 rows) rides along essentially for free.
    codes = jnp.transpose(x_diag.astype(jnp.int32), (1, 0, 2)).reshape(S * B, C)  # time-major
    scal = jnp.concatenate([t.reshape(B, 1).astype(F32),
                            yf.reshape(B, 1).astype(F32),
                            x_gender.reshape(B, 1).astype(F32),
                            x_age.reshape(B, 1).astype(F32)], axis=1)             # (B, 4)
    out = fused_forward(codes, scal, pk)           # (B, 128) lane-dense
    return (out[0, 4],        # loss
            out[:, 3],        # yf_pred
            out[:, 0],        # y0_pred
            out[:, 1],        # y1_pred
            out[:, 2])        # t_logits


# ====================== pure-JAX reference (for validation) ======================
def _ref_lstm_dir(x_sbd, wih, whh, b, reverse):
    S, B, _ = x_sbd.shape
    H = whh.shape[0]
    xs = x_sbd[::-1] if reverse else x_sbd

    def step(carry, x_t):
        h, c = carry
        gates = x_t @ wih + h @ whh + b
        i = jax.nn.sigmoid(gates[:, :H])
        f = jax.nn.sigmoid(gates[:, H:2 * H])
        g = jnp.tanh(gates[:, 2 * H:3 * H])
        o = jax.nn.sigmoid(gates[:, 3 * H:])
        c = f * c + i * g
        h = o * jnp.tanh(c)
        return (h, c), h

    (_, _), hs = lax.scan(step, (jnp.zeros((B, H), F32),
                                 jnp.zeros((B, H), F32)), xs)
    return hs[::-1] if reverse else hs


def reference_forward(params, x_diag, x_age, x_gender, t, yf):
    B, S, _ = x_diag.shape
    x_embed_sum = jnp.sum(jnp.take(params['diag_embed'], x_diag, axis=0), axis=2)
    g = jnp.broadcast_to(jnp.take(params['gender_embed'], x_gender, axis=0)[:, None, :],
                         (B, S, 1))
    a = jnp.broadcast_to(x_age[:, None, :], (B, S, 1))
    x_cur = jnp.transpose(jnp.concatenate([x_embed_sum, g, a], axis=2), (1, 0, 2))
    x_cur = x_cur.astype(F32)
    for lp in params['lstm']:
        of = _ref_lstm_dir(x_cur, lp['wih_f'], lp['whh_f'], lp['b_f'], False)
        ob = _ref_lstm_dir(x_cur, lp['wih_b'], lp['whh_b'], lp['b_b'], True)
        x_cur = jnp.concatenate([of, ob], axis=-1)
    x_seq = x_cur[-1]

    def head(name):
        h = x_seq @ params[f'{name}_w1'] + params[f'{name}_b1']
        h = h * params[f'{name}_bn_scale'] + params[f'{name}_bn_shift']
        h = jnp.maximum(h, 0.0)
        return (h @ params[f'{name}_w2'] + params[f'{name}_b2']).reshape(-1)

    y0p, y1p = head('y0'), head('y1')
    tl = (x_seq @ params['tr_w'] + params['tr_b']).reshape(-1)
    yfp = jnp.where(t < 0.5, y0p, y1p)

    def bce(x, y):
        return jnp.mean(jnp.maximum(x, 0.0) - x * y + jnp.log1p(jnp.exp(-jnp.abs(x))))

    loss = bce(tl, t) + bce(yfp, yf)
    return loss, yfp, y0p, y1p, tl


# ====================== main ======================
if __name__ == "__main__":
    key = jax.random.PRNGKey(0)
    pkey, dkey = jax.random.split(key)
    params = init_params(pkey)
    packed = pack_params(params)          # one-time packing / folding

    B, S, C = 8, 8, 4
    k1, k2, k3, k4, k5 = jax.random.split(dkey, 5)
    x_diag = jax.random.randint(k1, (B, S, C), 0, VOCAB_SIZE)          # diagnosis code ids
    x_age = jax.random.uniform(k2, (B, 1), F32)                        # normalized age
    x_gender = jax.random.randint(k3, (B,), 0, 2)                      # gender id {0,1}
    t = jax.random.bernoulli(k4, 0.5, (B,)).astype(F32)                # treatment
    yf = jax.random.bernoulli(k5, 0.5, (B,)).astype(F32)               # factual outcome
    y0 = jnp.zeros((B,), F32)
    y1 = jnp.ones((B,), F32)

    out = mimic_lstm_forward(packed, x_diag, x_age, x_gender, t, yf, y0, y1)
    out = jax.block_until_ready(out)

    ref = reference_forward(params, x_diag, x_age, x_gender, t, yf)
    for got, want in zip(out, ref):
        assert jnp.allclose(got, want, rtol=2e-2, atol=5e-3), (got, want)

    print("KERNEL_OK")
</pallas_src>

<mosaic_0001>
module attributes {stable_mosaic.version = 11 : i64} {
  func.func @_fused_forward_kernel(%arg0: memref<64x4xi32, #tpu.memory_space<vmem>>, %arg1: memref<8x4xf32, #tpu.memory_space<vmem>>, %arg2: memref<192x256xbf16, #tpu.memory_space<vmem>>, %arg3: memref<256x128xbf16, #tpu.memory_space<vmem>>, %arg4: memref<8x256xf32, #tpu.memory_space<vmem>>, %arg5: memref<8x128xf32, #tpu.memory_space<vmem>>, %arg6: memref<64x256xf32, #tpu.memory_space<vmem>>, %arg7: memref<64x256xf32, #tpu.memory_space<vmem>>) attributes {dimension_semantics = [], scalar_prefetch = 0 : i64, scratch_operands = 2 : i64, tpu.core_type = #tpu.core_type<tc>} {
    %c0 = arith.constant 0 : index
    %c0_0 = arith.constant 0 : index
    %0 = vector.load %arg1[%c0, %c0_0] : memref<8x4xf32, #tpu.memory_space<vmem>>, vector<8x4xf32>
    %1 = vector.extract_strided_slice %0 {offsets = [0, 0], sizes = [8, 1], strides = [1, 1]} : vector<8x4xf32> to vector<8x1xf32>
    %2 = vector.extract_strided_slice %0 {offsets = [0, 1], sizes = [8, 1], strides = [1, 1]} : vector<8x4xf32> to vector<8x1xf32>
    %3 = vector.extract_strided_slice %0 {offsets = [0, 2], sizes = [8, 1], strides = [1, 1]} : vector<8x4xf32> to vector<8x1xf32>
    %4 = vector.extract_strided_slice %0 {offsets = [0, 3], sizes = [8, 1], strides = [1, 1]} : vector<8x4xf32> to vector<8x1xf32>
    %c0_1 = arith.constant 0 : index
    %c0_2 = arith.constant 0 : index
    %5 = vector.load %arg4[%c0_1, %c0_2] : memref<8x256xf32, #tpu.memory_space<vmem>>, vector<8x256xf32>
    %6 = vector.extract_strided_slice %5 {offsets = [0, 0], sizes = [1, 256], strides = [1, 1]} : vector<8x256xf32> to vector<1x256xf32>
    %7 = vector.extract_strided_slice %5 {offsets = [1, 0], sizes = [1, 256], strides = [1, 1]} : vector<8x256xf32> to vector<1x256xf32>
    %8 = vector.extract_strided_slice %5 {offsets = [2, 0], sizes = [1, 256], strides = [1, 1]} : vector<8x256xf32> to vector<1x256xf32>
    %9 = vector.extract_strided_slice %5 {offsets = [3, 0], sizes = [1, 256], strides = [1, 1]} : vector<8x256xf32> to vector<1x256xf32>
    %10 = vector.extract_strided_slice %5 {offsets = [4, 0], sizes = [1, 128], strides = [1, 1]} : vector<8x256xf32> to vector<1x128xf32>
    %11 = vector.extract_strided_slice %5 {offsets = [5, 0], sizes = [1, 128], strides = [1, 1]} : vector<8x256xf32> to vector<1x128xf32>
    %c0_3 = arith.constant 0 : index
    %c0_4 = arith.constant 0 : index
    %12 = vector.load %arg0[%c0_3, %c0_4] : memref<64x4xi32, #tpu.memory_space<vmem>>, vector<64x4xi32>
    %13 = tpu.iota {dimensions = array<i32: 1>} : vector<64x64xi32>
    %14 = vector.extract_strided_slice %12 {offsets = [0, 0], sizes = [64, 1], strides = [1, 1]} : vector<64x4xi32> to vector<64x1xi32>
    %15 = vector.broadcast %14 : vector<64x1xi32> to vector<64x64xi32>
    %16 = arith.cmpi eq, %15, %13 : vector<64x64xi32>
    %17 = arith.extui %16 : vector<64x64xi1> to vector<64x64xi32>
    %18 = arith.sitofp %17 : vector<64x64xi32> to vector<64x64xf32>
    %19 = vector.extract_strided_slice %12 {offsets = [0, 1], sizes = [64, 1], strides = [1, 1]} : vector<64x4xi32> to vector<64x1xi32>
    %20 = vector.broadcast %19 : vector<64x1xi32> to vector<64x64xi32>
    %21 = arith.cmpi eq, %20, %13 : vector<64x64xi32>
    %22 = arith.extui %21 : vector<64x64xi1> to vector<64x64xi32>
    %23 = arith.sitofp %22 : vector<64x64xi32> to vector<64x64xf32>
    %24 = arith.addf %18, %23 : vector<64x64xf32>
    %25 = vector.extract_strided_slice %12 {offsets = [0, 2], sizes = [64, 1], strides = [1, 1]} : vector<64x4xi32> to vector<64x1xi32>
    %26 = vector.broadcast %25 : vector<64x1xi32> to vector<64x64xi32>
    %27 = arith.cmpi eq, %26, %13 : vector<64x64xi32>
    %28 = arith.extui %27 : vector<64x64xi1> to vector<64x64xi32>
    %29 = arith.sitofp %28 : vector<64x64xi32> to vector<64x64xf32>
    %30 = arith.addf %24, %29 : vector<64x64xf32>
    %31 = vector.extract_strided_slice %12 {offsets = [0, 3], sizes = [64, 1], strides = [1, 1]} : vector<64x4xi32> to vector<64x1xi32>
    %32 = vector.broadcast %31 : vector<64x1xi32> to vector<64x64xi32>
    %33 = arith.cmpi eq, %32, %13 : vector<64x64xi32>
    %34 = arith.extui %33 : vector<64x64xi1> to vector<64x64xi32>
    %35 = arith.sitofp %34 : vector<64x64xi32> to vector<64x64xf32>
    %36 = arith.addf %30, %35 : vector<64x64xf32>
    %c0_5 = arith.constant 0 : index
    %c0_6 = arith.constant 0 : index
    %37 = vector.load %arg2[%c0_5, %c0_6] : memref<192x256xbf16, #tpu.memory_space<vmem>>, vector<64x256xbf16>
    %38 = vector.broadcast %3 : vector<8x1xf32> to vector<8x256xf32>
    %39 = vector.broadcast %8 : vector<1x256xf32> to vector<8x256xf32>
    %40 = arith.mulf %38, %39 : vector<8x256xf32>
    %41 = vector.broadcast %4 : vector<8x1xf32> to vector<8x256xf32>
    %42 = vector.broadcast %9 : vector<1x256xf32> to vector<8x256xf32>
    %43 = arith.mulf %41, %42 : vector<8x256xf32>
    %44 = arith.addf %40, %43 : vector<8x256xf32>
    %45 = arith.truncf %36 : vector<64x64xf32> to vector<64x64xbf16>
    %cst = arith.constant dense<0.000000e+00> : vector<64x256xf32>
    %46 = tpu.matmul %45, %37, %cst {dimension_numbers = #tpu.dot_dimension_numbers<[1], [0], [0], [1], [0, 0, 1, 1], [], []>} : vector<64x64xbf16>, vector<64x256xbf16>, vector<64x256xf32> -> vector<64x256xf32>
    %47 = vector.broadcast %6 : vector<1x256xf32> to vector<64x256xf32>
    %48 = arith.addf %46, %47 : vector<64x256xf32>
    %49 = tpu.concatenate %44, %44, %44, %44, %44, %44, %44, %44 in 0 : vector<8x256xf32>, vector<8x256xf32>, vector<8x256xf32>, vector<8x256xf32>, vector<8x256xf32>, vector<8x256xf32>, vector<8x256xf32>, vector<8x256xf32> -> vector<64x256xf32>
    %50 = arith.addf %48, %49 : vector<64x256xf32>
    %c0_7 = arith.constant 0 : index
    %c0_8 = arith.constant 0 : index
    %51 = vector.load %arg6[%c0_7, %c0_8] : memref<64x256xf32, #tpu.memory_space<vmem>>, vector<64x256xf32>
    tpu.vector_store %arg6[%c0_7, %c0_8], %50 {strides = array<i32>} : memref<64x256xf32, #tpu.memory_space<vmem>>, vector<64x256xf32>,
    %52 = vector.shape_cast %7 : vector<1x256xf32> to vector<1x256xf32>
    %53 = vector.broadcast %52 : vector<1x256xf32> to vector<64x256xf32>
    %c0_9 = arith.constant 0 : index
    %c0_10 = arith.constant 0 : index
    %54 = vector.load %arg7[%c0_9, %c0_10] : memref<64x256xf32, #tpu.memory_space<vmem>>, vector<64x256xf32>
    tpu.vector_store %arg7[%c0_9, %c0_10], %53 {strides = array<i32>} : memref<64x256xf32, #tpu.memory_space<vmem>>, vector<64x256xf32>,
    %c64 = arith.constant 64 : index
    %c0_11 = arith.constant 0 : index
    %55 = vector.load %arg2[%c64, %c0_11] : memref<192x256xbf16, #tpu.memory_space<vmem>>, vector<32x256xbf16>
    %c96 = arith.constant 96 : index
    %c0_12 = arith.constant 0 : index
    %56 = vector.load %arg2[%c96, %c0_12] : memref<192x256xbf16, #tpu.memory_space<vmem>>, vector<32x256xbf16>
    %c128 = arith.constant 128 : index
    %c0_13 = arith.constant 0 : index
    %57 = vector.load %arg2[%c128, %c0_13] : memref<192x256xbf16, #tpu.memory_space<vmem>>, vector<32x256xbf16>
    %c160 = arith.constant 160 : index
    %c0_14 = arith.constant 0 : index
    %58 = vector.load %arg2[%c160, %c0_14] : memref<192x256xbf16, #tpu.memory_space<vmem>>, vector<32x256xbf16>
    %c0_15 = arith.constant 0 : index
    %c0_16 = arith.constant 0 : index
    %59 = vector.load %arg6[%c0_15, %c0_16] : memref<64x256xf32, #tpu.memory_space<vmem>>, vector<8x128xf32>
    %c56 = arith.constant 56 : index
    %c128_17 = arith.constant 128 : index
    %60 = vector.load %arg6[%c56, %c128_17] : memref<64x256xf32, #tpu.memory_space<vmem>>, vector<8x128xf32>
    %61 = tpu.concatenate %59, %60 in 0 : vector<8x128xf32>, vector<8x128xf32> -> vector<16x128xf32>
    %62 = math.tanh %61 : vector<16x128xf32>
    %cst_18 = arith.constant 5.000000e-01 : f32
    %63 = vector.broadcast %cst_18 : f32 to vector<16x128xf32>
    %64 = arith.mulf %63, %62 : vector<16x128xf32>
    %cst_19 = arith.constant 5.000000e-01 : f32
    %65 = vector.broadcast %cst_19 : f32 to vector<16x128xf32>
    %66 = arith.addf %64, %65 : vector<16x128xf32>
    %67 = vector.extract_strided_slice %66 {offsets = [0, 0], sizes = [16, 32], strides = [1, 1]} : vector<16x128xf32> to vector<16x32xf32>
    %68 = vector.extract_strided_slice %66 {offsets = [0, 96], sizes = [16, 32], strides = [1, 1]} : vector<16x128xf32> to vector<16x32xf32>
    %69 = vector.extract_strided_slice %62 {offsets = [0, 64], sizes = [16, 32], strides = [1, 1]} : vector<16x128xf32> to vector<16x32xf32>
    %70 = arith.mulf %67, %69 : vector<16x32xf32>
    %71 = math.tanh %70 : vector<16x32xf32>
    %72 = arith.mulf %68, %71 : vector<16x32xf32>
    %73 = vector.extract_strided_slice %72 {offsets = [0, 0], sizes = [8, 32], strides = [1, 1]} : vector<16x32xf32> to vector<8x32xf32>
    %74 = arith.truncf %73 : vector<8x32xf32> to vector<8x32xbf16>
    %cst_20 = arith.constant dense<0.000000e+00> : vector<8x256xf32>
    %75 = tpu.matmul %74, %56, %cst_20 {dimension_numbers = #tpu.dot_dimension_numbers<[1], [0], [0], [1], [0, 0, 1, 1], [], []>} : vector<8x32xbf16>, vector<32x256xbf16>, vector<8x256xf32> -> vector<8x256xf32>
    %76 = vector.extract_strided_slice %72 {offsets = [8, 0], sizes = [8, 32], strides = [1, 1]} : vector<16x32xf32> to vector<8x32xf32>
    %77 = arith.truncf %76 : vector<8x32xf32> to vector<8x32xbf16>
    %cst_21 = arith.constant dense<0.000000e+00> : vector<8x256xf32>
    %78 = tpu.matmul %77, %57, %cst_21 {dimension_numbers = #tpu.dot_dimension_numbers<[1], [0], [0], [1], [0, 0, 1, 1], [], []>} : vector<8x32xbf16>, vector<32x256xbf16>, vector<8x256xf32> -> vector<8x256xf32>
    %c0_22 = arith.constant 0 : index
    %c0_23 = arith.constant 0 : index
    %79 = vector.load %arg7[%c0_22, %c0_23] : memref<64x256xf32, #tpu.memory_space<vmem>>, vector<8x256xf32>
    %80 = arith.addf %79, %75 : vector<8x256xf32>
    %c0_24 = arith.constant 0 : index
    %c0_25 = arith.constant 0 : index
    %81 = vector.load %arg7[%c0_24, %c0_25] : memref<64x256xf32, #tpu.memory_space<vmem>>, vector<8x256xf32>
    tpu.vector_store %arg7[%c0_24, %c0_25], %80 {strides = array<i32>} : memref<64x256xf32, #tpu.memory_space<vmem>>, vector<8x256xf32>,
    %c56_26 = arith.constant 56 : index
    %c0_27 = arith.constant 0 : index
    %82 = vector.load %arg7[%c56_26, %c0_27] : memref<64x256xf32, #tpu.memory_space<vmem>>, vector<8x256xf32>
    %83 = arith.addf %82, %78 : vector<8x256xf32>
    %c56_28 = arith.constant 56 : index
    %c0_29 = arith.constant 0 : index
    %84 = vector.load %arg7[%c56_28, %c0_29] : memref<64x256xf32, #tpu.memory_space<vmem>>, vector<8x256xf32>
    tpu.vector_store %arg7[%c56_28, %c0_29], %83 {strides = array<i32>} : memref<64x256xf32, #tpu.memory_space<vmem>>, vector<8x256xf32>,
    %c8 = arith.constant 8 : index
    %c0_30 = arith.constant 0 : index
    %85 = vector.load %arg6[%c8, %c0_30] : memref<64x256xf32, #tpu.memory_space<vmem>>, vector<8x128xf32>
    %c48 = arith.constant 48 : index
    %c128_31 = arith.constant 128 : index
    %86 = vector.load %arg6[%c48, %c128_31] : memref<64x256xf32, #tpu.memory_space<vmem>>, vector<8x128xf32>
    %87 = arith.truncf %72 : vector<16x32xf32> to vector<16x32xbf16>
    %cst_32 = arith.constant dense<0.000000e+00> : vector<16x256xf32>
    %88 = tpu.matmul %87, %55, %cst_32 {dimension_numbers = #tpu.dot_dimension_numbers<[1], [0], [0], [1], [0, 0, 1, 1], [], []>} : vector<16x32xbf16>, vector<32x256xbf16>, vector<16x256xf32> -> vector<16x256xf32>
    %89 = vector.extract_strided_slice %88 {offsets = [0, 0], sizes = [8, 128], strides = [1, 1]} : vector<16x256xf32> to vector<8x128xf32>
    %90 = arith.addf %85, %89 : vector<8x128xf32>
    %91 = vector.extract_strided_slice %88 {offsets = [8, 128], sizes = [8, 128], strides = [1, 1]} : vector<16x256xf32> to vector<8x128xf32>
    %92 = arith.addf %86, %91 : vector<8x128xf32>
    %93 = tpu.concatenate %90, %92 in 0 : vector<8x128xf32>, vector<8x128xf32> -> vector<16x128xf32>
    %94 = math.tanh %93 : vector<16x128xf32>
    %cst_33 = arith.constant 5.000000e-01 : f32
    %95 = vector.broadcast %cst_33 : f32 to vector<16x128xf32>
    %96 = arith.mulf %95, %94 : vector<16x128xf32>
    %cst_34 = arith.constant 5.000000e-01 : f32
    %97 = vector.broadcast %cst_34 : f32 to vector<16x128xf32>
    %98 = arith.addf %96, %97 : vector<16x128xf32>
    %99 = vector.extract_strided_slice %98 {offsets = [0, 0], sizes = [16, 32], strides = [1, 1]} : vector<16x128xf32> to vector<16x32xf32>
    %100 = vector.extract_strided_slice %98 {offsets = [0, 32], sizes = [16, 32], strides = [1, 1]} : vector<16x128xf32> to vector<16x32xf32>
    %101 = vector.extract_strided_slice %98 {offsets = [0, 96], sizes = [16, 32], strides = [1, 1]} : vector<16x128xf32> to vector<16x32xf32>
    %102 = vector.extract_strided_slice %94 {offsets = [0, 64], sizes = [16, 32], strides = [1, 1]} : vector<16x128xf32> to vector<16x32xf32>
    %103 = arith.mulf %100, %70 : vector<16x32xf32>
    %104 = arith.mulf %99, %102 : vector<16x32xf32>
    %105 = arith.addf %103, %104 : vector<16x32xf32>
    %106 = math.tanh %105 : vector<16x32xf32>
    %107 = arith.mulf %101, %106 : vector<16x32xf32>
    %108 = vector.extract_strided_slice %107 {offsets = [0, 0], sizes = [8, 32], strides = [1, 1]} : vector<16x32xf32> to vector<8x32xf32>
    %109 = arith.truncf %108 : vector<8x32xf32> to vector<8x32xbf16>
    %cst_35 = arith.constant dense<0.000000e+00> : vector<8x256xf32>
    %110 = tpu.matmul %109, %56, %cst_35 {dimension_numbers = #tpu.dot_dimension_numbers<[1], [0], [0], [1], [0, 0, 1, 1], [], []>} : vector<8x32xbf16>, vector<32x256xbf16>, vector<8x256xf32> -> vector<8x256xf32>
    %111 = vector.extract_strided_slice %107 {offsets = [8, 0], sizes = [8, 32], strides = [1, 1]} : vector<16x32xf32> to vector<8x32xf32>
    %112 = arith.truncf %111 : vector<8x32xf32> to vector<8x32xbf16>
    %cst_36 = arith.constant dense<0.000000e+00> : vector<8x256xf32>
    %113 = tpu.matmul %112, %57, %cst_36 {dimension_numbers = #tpu.dot_dimension_numbers<[1], [0], [0], [1], [0, 0, 1, 1], [], []>} : vector<8x32xbf16>, vector<32x256xbf16>, vector<8x256xf32> -> vector<8x256xf32>
    %c8_37 = arith.constant 8 : index
    %c0_38 = arith.constant 0 : index
    %114 = vector.load %arg7[%c8_37, %c0_38] : memref<64x256xf32, #tpu.memory_space<vmem>>, vector<8x256xf32>
    %115 = arith.addf %114, %110 : vector<8x256xf32>
    %c8_39 = arith.constant 8 : index
    %c0_40 = arith.constant 0 : index
    %116 = vector.load %arg7[%c8_39, %c0_40] : memref<64x256xf32, #tpu.memory_space<vmem>>, vector<8x256xf32>
    tpu.vector_store %arg7[%c8_39, %c0_40], %115 {strides = array<i32>} : memref<64x256xf32, #tpu.memory_space<vmem>>, vector<8x256xf32>,
    %c48_41 = arith.constant 48 : index
    %c0_42 = arith.constant 0 : index
    %117 = vector.load %arg7[%c48_41, %c0_42] : memref<64x256xf32, #tpu.memory_space<vmem>>, vector<8x256xf32>
    %118 = arith.addf %117, %113 : vector<8x256xf32>
    %c48_43 = arith.constant 48 : index
    %c0_44 = arith.constant 0 : index
    %119 = vector.load %arg7[%c48_43, %c0_44] : memref<64x256xf32, #tpu.memory_space<vmem>>, vector<8x256xf32>
    tpu.vector_store %arg7[%c48_43, %c0_44], %118 {strides = array<i32>} : memref<64x256xf32, #tpu.memory_space<vmem>>, vector<8x256xf32>,
    %c16 = arith.constant 16 : index
    %c0_45 = arith.constant 0 : index
    %120 = vector.load %arg6[%c16, %c0_45] : memref<64x256xf32, #tpu.memory_space<vmem>>, vector<8x128xf32>
    %c40 = arith.constant 40 : index
    %c128_46 = arith.constant 128 : index
    %121 = vector.load %arg6[%c40, %c128_46] : memref<64x256xf32, #tpu.memory_space<vmem>>, vector<8x128xf32>
    %122 = arith.truncf %107 : vector<16x32xf32> to vector<16x32xbf16>
    %cst_47 = arith.constant dense<0.000000e+00> : vector<16x256xf32>
    %123 = tpu.matmul %122, %55, %cst_47 {dimension_numbers = #tpu.dot_dimension_numbers<[1], [0], [0], [1], [0, 0, 1, 1], [], []>} : vector<16x32xbf16>, vector<32x256xbf16>, vector<16x256xf32> -> vector<16x256xf32>
    %124 = vector.extract_strided_slice %123 {offsets = [0, 0], sizes = [8, 128], strides = [1, 1]} : vector<16x256xf32> to vector<8x128xf32>
    %125 = arith.addf %120, %124 : vector<8x128xf32>
    %126 = vector.extract_strided_slice %123 {offsets = [8, 128], sizes = [8, 128], strides = [1, 1]} : vector<16x256xf32> to vector<8x128xf32>
    %127 = arith.addf %121, %126 : vector<8x128xf32>
    %128 = tpu.concatenate %125, %127 in 0 : vector<8x128xf32>, vector<8x128xf32> -> vector<16x128xf32>
    %129 = math.tanh %128 : vector<16x128xf32>
    %cst_48 = arith.constant 5.000000e-01 : f32
    %130 = vector.broadcast %cst_48 : f32 to vector<16x128xf32>
    %131 = arith.mulf %130, %129 : vector<16x128xf32>
    %cst_49 = arith.constant 5.000000e-01 : f32
    %132 = vector.broadcast %cst_49 : f32 to vector<16x128xf32>
    %133 = arith.addf %131, %132 : vector<16x128xf32>
    %134 = vector.extract_strided_slice %133 {offsets = [0, 0], sizes = [16, 32], strides = [1, 1]} : vector<16x128xf32> to vector<16x32xf32>
    %135 = vector.extract_strided_slice %133 {offsets = [0, 32], sizes = [16, 32], strides = [1, 1]} : vector<16x128xf32> to vector<16x32xf32>
    %136 = vector.extract_strided_slice %133 {offsets = [0, 96], sizes = [16, 32], strides = [1, 1]} : vector<16x128xf32> to vector<16x32xf32>
    %137 = vector.extract_strided_slice %129 {offsets = [0, 64], sizes = [16, 32], strides = [1, 1]} : vector<16x128xf32> to vector<16x32xf32>
    %138 = arith.mulf %135, %105 : vector<16x32xf32>
    %139 = arith.mulf %134, %137 : vector<16x32xf32>
    %140 = arith.addf %138, %139 : vector<16x32xf32>
    %141 = math.tanh %140 : vector<16x32xf32>
    %142 = arith.mulf %136, %141 : vector<16x32xf32>
    %143 = vector.extract_strided_slice %142 {offsets = [0, 0], sizes = [8, 32], strides = [1, 1]} : vector<16x32xf32> to vector<8x32xf32>
    %144 = arith.truncf %143 : vector<8x32xf32> to vector<8x32xbf16>
    %cst_50 = arith.constant dense<0.000000e+00> : vector<8x256xf32>
    %145 = tpu.matmul %144, %56, %cst_50 {dimension_numbers = #tpu.dot_dimension_numbers<[1], [0], [0], [1], [0, 0, 1, 1], [], []>} : vector<8x32xbf16>, vector<32x256xbf16>, vector<8x256xf32> -> vector<8x256xf32>
    %146 = vector.extract_strided_slice %142 {offsets = [8, 0], sizes = [8, 32], strides = [1, 1]} : vector<16x32xf32> to vector<8x32xf32>
    %147 = arith.truncf %146 : vector<8x32xf32> to vector<8x32xbf16>
    %cst_51 = arith.constant dense<0.000000e+00> : vector<8x256xf32>
    %148 = tpu.matmul %147, %57, %cst_51 {dimension_numbers = #tpu.dot_dimension_numbers<[1], [0], [0], [1], [0, 0, 1, 1], [], []>} : vector<8x32xbf16>, vector<32x256xbf16>, vector<8x256xf32> -> vector<8x256xf32>
    %c16_52 = arith.constant 16 : index
    %c0_53 = arith.constant 0 : index
    %149 = vector.load %arg7[%c16_52, %c0_53] : memref<64x256xf32, #tpu.memory_space<vmem>>, vector<8x256xf32>
    %150 = arith.addf %149, %145 : vector<8x256xf32>
    %c16_54 = arith.constant 16 : index
    %c0_55 = arith.constant 0 : index
    %151 = vector.load %arg7[%c16_54, %c0_55] : memref<64x256xf32, #tpu.memory_space<vmem>>, vector<8x256xf32>
    tpu.vector_store %arg7[%c16_54, %c0_55], %150 {strides = array<i32>} : memref<64x256xf32, #tpu.memory_space<vmem>>, vector<8x256xf32>,
    %c40_56 = arith.constant 40 : index
    %c0_57 = arith.constant 0 : index
    %152 = vector.load %arg7[%c40_56, %c0_57] : memref<64x256xf32, #tpu.memory_space<vmem>>, vector<8x256xf32>
    %153 = arith.addf %152, %148 : vector<8x256xf32>
    %c40_58 = arith.constant 40 : index
    %c0_59 = arith.constant 0 : index
    %154 = vector.load %arg7[%c40_58, %c0_59] : memref<64x256xf32, #tpu.memory_space<vmem>>, vector<8x256xf32>
    tpu.vector_store %arg7[%c40_58, %c0_59], %153 {strides = array<i32>} : memref<64x256xf32, #tpu.memory_space<vmem>>, vector<8x256xf32>,
    %c24 = arith.constant 24 : index
    %c0_60 = arith.constant 0 : index
    %155 = vector.load %arg6[%c24, %c0_60] : memref<64x256xf32, #tpu.memory_space<vmem>>, vector<8x128xf32>
    %c32 = arith.constant 32 : index
    %c128_61 = arith.constant 128 : index
    %156 = vector.load %arg6[%c32, %c128_61] : memref<64x256xf32, #tpu.memory_space<vmem>>, vector<8x128xf32>
    %157 = arith.truncf %142 : vector<16x32xf32> to vector<16x32xbf16>
    %cst_62 = arith.constant dense<0.000000e+00> : vector<16x256xf32>
    %158 = tpu.matmul %157, %55, %cst_62 {dimension_numbers = #tpu.dot_dimension_numbers<[1], [0], [0], [1], [0, 0, 1, 1], [], []>} : vector<16x32xbf16>, vector<32x256xbf16>, vector<16x256xf32> -> vector<16x256xf32>
    %159 = vector.extract_strided_slice %158 {offsets = [0, 0], sizes = [8, 128], strides = [1, 1]} : vector<16x256xf32> to vector<8x128xf32>
    %160 = arith.addf %155, %159 : vector<8x128xf32>
    %161 = vector.extract_strided_slice %158 {offsets = [8, 128], sizes = [8, 128], strides = [1, 1]} : vector<16x256xf32> to vector<8x128xf32>
    %162 = arith.addf %156, %161 : vector<8x128xf32>
    %163 = tpu.concatenate %160, %162 in 0 : vector<8x128xf32>, vector<8x128xf32> -> vector<16x128xf32>
    %164 = math.tanh %163 : vector<16x128xf32>
    %cst_63 = arith.constant 5.000000e-01 : f32
    %165 = vector.broadcast %cst_63 : f32 to vector<16x128xf32>
    %166 = arith.mulf %165, %164 : vector<16x128xf32>
    %cst_64 = arith.constant 5.000000e-01 : f32
    %167 = vector.broadcast %cst_64 : f32 to vector<16x128xf32>
    %168 = arith.addf %166, %167 : vector<16x128xf32>
    %169 = vector.extract_strided_slice %168 {offsets = [0, 0], sizes = [16, 32], strides = [1, 1]} : vector<16x128xf32> to vector<16x32xf32>
    %170 = vector.extract_strided_slice %168 {offsets = [0, 32], sizes = [16, 32], strides = [1, 1]} : vector<16x128xf32> to vector<16x32xf32>
    %171 = vector.extract_strided_slice %168 {offsets = [0, 96], sizes = [16, 32], strides = [1, 1]} : vector<16x128xf32> to vector<16x32xf32>
    %172 = vector.extract_strided_slice %164 {offsets = [0, 64], sizes = [16, 32], strides = [1, 1]} : vector<16x128xf32> to vector<16x32xf32>
    %173 = arith.mulf %170, %140 : vector<16x32xf32>
    %174 = arith.mulf %169, %172 : vector<16x32xf32>
    %175 = arith.addf %173, %174 : vector<16x32xf32>
    %176 = math.tanh %175 : vector<16x32xf32>
    %177 = arith.mulf %171, %176 : vector<16x32xf32>
    %178 = vector.extract_strided_slice %177 {offsets = [0, 0], sizes = [8, 32], strides = [1, 1]} : vector<16x32xf32> to vector<8x32xf32>
    %179 = arith.truncf %178 : vector<8x32xf32> to vector<8x32xbf16>
    %cst_65 = arith.constant dense<0.000000e+00> : vector<8x256xf32>
    %180 = tpu.matmul %179, %56, %cst_65 {dimension_numbers = #tpu.dot_dimension_numbers<[1], [0], [0], [1], [0, 0, 1, 1], [], []>} : vector<8x32xbf16>, vector<32x256xbf16>, vector<8x256xf32> -> vector<8x256xf32>
    %181 = vector.extract_strided_slice %177 {offsets = [8, 0], sizes = [8, 32], strides = [1, 1]} : vector<16x32xf32> to vector<8x32xf32>
    %182 = arith.truncf %181 : vector<8x32xf32> to vector<8x32xbf16>
    %cst_66 = arith.constant dense<0.000000e+00> : vector<8x256xf32>
    %183 = tpu.matmul %182, %57, %cst_66 {dimension_numbers = #tpu.dot_dimension_numbers<[1], [0], [0], [1], [0, 0, 1, 1], [], []>} : vector<8x32xbf16>, vector<32x256xbf16>, vector<8x256xf32> -> vector<8x256xf32>
    %c24_67 = arith.constant 24 : index
    %c0_68 = arith.constant 0 : index
    %184 = vector.load %arg7[%c24_67, %c0_68] : memref<64x256xf32, #tpu.memory_space<vmem>>, vector<8x256xf32>
    %185 = arith.addf %184, %180 : vector<8x256xf32>
    %c24_69 = arith.constant 24 : index
    %c0_70 = arith.constant 0 : index
    %186 = vector.load %arg7[%c24_69, %c0_70] : memref<64x256xf32, #tpu.memory_space<vmem>>, vector<8x256xf32>
    tpu.vector_store %arg7[%c24_69, %c0_70], %185 {strides = array<i32>} : memref<64x256xf32, #tpu.memory_space<vmem>>, vector<8x256xf32>,
    %c32_71 = arith.constant 32 : index
    %c0_72 = arith.constant 0 : index
    %187 = vector.load %arg7[%c32_71, %c0_72] : memref<64x256xf32, #tpu.memory_space<vmem>>, vector<8x256xf32>
    %188 = arith.addf %187, %183 : vector<8x256xf32>
    %c32_73 = arith.constant 32 : index
    %c0_74 = arith.constant 0 : index
    %189 = vector.load %arg7[%c32_73, %c0_74] : memref<64x256xf32, #tpu.memory_space<vmem>>, vector<8x256xf32>
    tpu.vector_store %arg7[%c32_73, %c0_74], %188 {strides = array<i32>} : memref<64x256xf32, #tpu.memory_space<vmem>>, vector<8x256xf32>,
    %c32_75 = arith.constant 32 : index
    %c0_76 = arith.constant 0 : index
    %190 = vector.load %arg6[%c32_75, %c0_76] : memref<64x256xf32, #tpu.memory_space<vmem>>, vector<8x128xf32>
    %c24_77 = arith.constant 24 : index
    %c128_78 = arith.constant 128 : index
    %191 = vector.load %arg6[%c24_77, %c128_78] : memref<64x256xf32, #tpu.memory_space<vmem>>, vector<8x128xf32>
    %192 = arith.truncf %177 : vector<16x32xf32> to vector<16x32xbf16>
    %cst_79 = arith.constant dense<0.000000e+00> : vector<16x256xf32>
    %193 = tpu.matmul %192, %55, %cst_79 {dimension_numbers = #tpu.dot_dimension_numbers<[1], [0], [0], [1], [0, 0, 1, 1], [], []>} : vector<16x32xbf16>, vector<32x256xbf16>, vector<16x256xf32> -> vector<16x256xf32>
    %194 = vector.extract_strided_slice %193 {offsets = [0, 0], sizes = [8, 128], strides = [1, 1]} : vector<16x256xf32> to vector<8x128xf32>
    %195 = arith.addf %190, %194 : vector<8x128xf32>
    %196 = vector.extract_strided_slice %193 {offsets = [8, 128], sizes = [8, 128], strides = [1, 1]} : vector<16x256xf32> to vector<8x128xf32>
    %197 = arith.addf %191, %196 : vector<8x128xf32>
    %198 = tpu.concatenate %195, %197 in 0 : vector<8x128xf32>, vector<8x128xf32> -> vector<16x128xf32>
    %199 = math.tanh %198 : vector<16x128xf32>
    %cst_80 = arith.constant 5.000000e-01 : f32
    %200 = vector.broadcast %cst_80 : f32 to vector<16x128xf32>
    %201 = arith.mulf %200, %199 : vector<16x128xf32>
    %cst_81 = arith.constant 5.000000e-01 : f32
    %202 = vector.broadcast %cst_81 : f32 to vector<16x128xf32>
    %203 = arith.addf %201, %202 : vector<16x128xf32>
    %204 = vector.extract_strided_slice %203 {offsets = [0, 0], sizes = [16, 32], strides = [1, 1]} : vector<16x128xf32> to vector<16x32xf32>
    %205 = vector.extract_strided_slice %203 {offsets = [0, 32], sizes = [16, 32], strides = [1, 1]} : vector<16x128xf32> to vector<16x32xf32>
    %206 = vector.extract_strided_slice %203 {offsets = [0, 96], sizes = [16, 32], strides = [1, 1]} : vector<16x128xf32> to vector<16x32xf32>
    %207 = vector.extract_strided_slice %199 {offsets = [0, 64], sizes = [16, 32], strides = [1, 1]} : vector<16x128xf32> to vector<16x32xf32>
    %208 = arith.mulf %205, %175 : vector<16x32xf32>
    %209 = arith.mulf %204, %207 : vector<16x32xf32>
    %210 = arith.addf %208, %209 : vector<16x32xf32>
    %211 = math.tanh %210 : vector<16x32xf32>
    %212 = arith.mulf %206, %211 : vector<16x32xf32>
    %213 = vector.extract_strided_slice %212 {offsets = [0, 0], sizes = [8, 32], strides = [1, 1]} : vector<16x32xf32> to vector<8x32xf32>
    %214 = arith.truncf %213 : vector<8x32xf32> to vector<8x32xbf16>
    %cst_82 = arith.constant dense<0.000000e+00> : vector<8x256xf32>
    %215 = tpu.matmul %214, %56, %cst_82 {dimension_numbers = #tpu.dot_dimension_numbers<[1], [0], [0], [1], [0, 0, 1, 1], [], []>} : vector<8x32xbf16>, vector<32x256xbf16>, vector<8x256xf32> -> vector<8x256xf32>
    %216 = vector.extract_strided_slice %212 {offsets = [8, 0], sizes = [8, 32], strides = [1, 1]} : vector<16x32xf32> to vector<8x32xf32>
    %217 = arith.truncf %216 : vector<8x32xf32> to vector<8x32xbf16>
    %cst_83 = arith.constant dense<0.000000e+00> : vector<8x256xf32>
    %218 = tpu.matmul %217, %57, %cst_83 {dimension_numbers = #tpu.dot_dimension_numbers<[1], [0], [0], [1], [0, 0, 1, 1], [], []>} : vector<8x32xbf16>, vector<32x256xbf16>, vector<8x256xf32> -> vector<8x256xf32>
    %c32_84 = arith.constant 32 : index
    %c0_85 = arith.constant 0 : index
    %219 = vector.load %arg7[%c32_84, %c0_85] : memref<64x256xf32, #tpu.memory_space<vmem>>, vector<8x256xf32>
    %220 = arith.addf %219, %215 : vector<8x256xf32>
    %c32_86 = arith.constant 32 : index
    %c0_87 = arith.constant 0 : index
    %221 = vector.load %arg7[%c32_86, %c0_87] : memref<64x256xf32, #tpu.memory_space<vmem>>, vector<8x256xf32>
    tpu.vector_store %arg7[%c32_86, %c0_87], %220 {strides = array<i32>} : memref<64x256xf32, #tpu.memory_space<vmem>>, vector<8x256xf32>,
    %c24_88 = arith.constant 24 : index
    %c0_89 = arith.constant 0 : index
    %222 = vector.load %arg7[%c24_88, %c0_89] : memref<64x256xf32, #tpu.memory_space<vmem>>, vector<8x256xf32>
    %223 = arith.addf %222, %218 : vector<8x256xf32>
    %c24_90 = arith.constant 24 : index
    %c0_91 = arith.constant 0 : index
    %224 = vector.load %arg7[%c24_90, %c0_91] : memref<64x256xf32, #tpu.memory_space<vmem>>, vector<8x256xf32>
    tpu.vector_store %arg7[%c24_90, %c0_91], %223 {strides = array<i32>} : memref<64x256xf32, #tpu.memory_space<vmem>>, vector<8x256xf32>,
    %c40_92 = arith.constant 40 : index
    %c0_93 = arith.constant 0 : index
    %225 = vector.load %arg6[%c40_92, %c0_93] : memref<64x256xf32, #tpu.memory_space<vmem>>, vector<8x128xf32>
    %c16_94 = arith.constant 16 : index
    %c128_95 = arith.constant 128 : index
    %226 = vector.load %arg6[%c16_94, %c128_95] : memref<64x256xf32, #tpu.memory_space<vmem>>, vector<8x128xf32>
    %227 = arith.truncf %212 : vector<16x32xf32> to vector<16x32xbf16>
    %cst_96 = arith.constant dense<0.000000e+00> : vector<16x256xf32>
    %228 = tpu.matmul %227, %55, %cst_96 {dimension_numbers = #tpu.dot_dimension_numbers<[1], [0], [0], [1], [0, 0, 1, 1], [], []>} : vector<16x32xbf16>, vector<32x256xbf16>, vector<16x256xf32> -> vector<16x256xf32>
    %229 = vector.extract_strided_slice %228 {offsets = [0, 0], sizes = [8, 128], strides = [1, 1]} : vector<16x256xf32> to vector<8x128xf32>
    %230 = arith.addf %225, %229 : vector<8x128xf32>
    %231 = vector.extract_strided_slice %228 {offsets = [8, 128], sizes = [8, 128], strides = [1, 1]} : vector<16x256xf32> to vector<8x128xf32>
    %232 = arith.addf %226, %231 : vector<8x128xf32>
    %233 = tpu.concatenate %230, %232 in 0 : vector<8x128xf32>, vector<8x128xf32> -> vector<16x128xf32>
    %234 = math.tanh %233 : vector<16x128xf32>
    %cst_97 = arith.constant 5.000000e-01 : f32
    %235 = vector.broadcast %cst_97 : f32 to vector<16x128xf32>
    %236 = arith.mulf %235, %234 : vector<16x128xf32>
    %cst_98 = arith.constant 5.000000e-01 : f32
    %237 = vector.broadcast %cst_98 : f32 to vector<16x128xf32>
    %238 = arith.addf %236, %237 : vector<16x128xf32>
    %239 = vector.extract_strided_slice %238 {offsets = [0, 0], sizes = [16, 32], strides = [1, 1]} : vector<16x128xf32> to vector<16x32xf32>
    %240 = vector.extract_strided_slice %238 {offsets = [0, 32], sizes = [16, 32], strides = [1, 1]} : vector<16x128xf32> to vector<16x32xf32>
    %241 = vector.extract_strided_slice %238 {offsets = [0, 96], sizes = [16, 32], strides = [1, 1]} : vector<16x128xf32> to vector<16x32xf32>
    %242 = vector.extract_strided_slice %234 {offsets = [0, 64], sizes = [16, 32], strides = [1, 1]} : vector<16x128xf32> to vector<16x32xf32>
    %243 = arith.mulf %240, %210 : vector<16x32xf32>
    %244 = arith.mulf %239, %242 : vector<16x32xf32>
    %245 = arith.addf %243, %244 : vector<16x32xf32>
    %246 = math.tanh %245 : vector<16x32xf32>
    %247 = arith.mulf %241, %246 : vector<16x32xf32>
    %248 = vector.extract_strided_slice %247 {offsets = [0, 0], sizes = [8, 32], strides = [1, 1]} : vector<16x32xf32> to vector<8x32xf32>
    %249 = arith.truncf %248 : vector<8x32xf32> to vector<8x32xbf16>
    %cst_99 = arith.constant dense<0.000000e+00> : vector<8x256xf32>
    %250 = tpu.matmul %249, %56, %cst_99 {dimension_numbers = #tpu.dot_dimension_numbers<[1], [0], [0], [1], [0, 0, 1, 1], [], []>} : vector<8x32xbf16>, vector<32x256xbf16>, vector<8x256xf32> -> vector<8x256xf32>
    %251 = vector.extract_strided_slice %247 {offsets = [8, 0], sizes = [8, 32], strides = [1, 1]} : vector<16x32xf32> to vector<8x32xf32>
    %252 = arith.truncf %251 : vector<8x32xf32> to vector<8x32xbf16>
    %cst_100 = arith.constant dense<0.000000e+00> : vector<8x256xf32>
    %253 = tpu.matmul %252, %57, %cst_100 {dimension_numbers = #tpu.dot_dimension_numbers<[1], [0], [0], [1], [0, 0, 1, 1], [], []>} : vector<8x32xbf16>, vector<32x256xbf16>, vector<8x256xf32> -> vector<8x256xf32>
    %c40_101 = arith.constant 40 : index
    %c0_102 = arith.constant 0 : index
    %254 = vector.load %arg7[%c40_101, %c0_102] : memref<64x256xf32, #tpu.memory_space<vmem>>, vector<8x256xf32>
    %255 = arith.addf %254, %250 : vector<8x256xf32>
    %c40_103 = arith.constant 40 : index
    %c0_104 = arith.constant 0 : index
    %256 = vector.load %arg7[%c40_103, %c0_104] : memref<64x256xf32, #tpu.memory_space<vmem>>, vector<8x256xf32>
    tpu.vector_store %arg7[%c40_103, %c0_104], %255 {strides = array<i32>} : memref<64x256xf32, #tpu.memory_space<vmem>>, vector<8x256xf32>,
    %c16_105 = arith.constant 16 : index
    %c0_106 = arith.constant 0 : index
    %257 = vector.load %arg7[%c16_105, %c0_106] : memref<64x256xf32, #tpu.memory_space<vmem>>, vector<8x256xf32>
    %258 = arith.addf %257, %253 : vector<8x256xf32>
    %c16_107 = arith.constant 16 : index
    %c0_108 = arith.constant 0 : index
    %259 = vector.load %arg7[%c16_107, %c0_108] : memref<64x256xf32, #tpu.memory_space<vmem>>, vector<8x256xf32>
    tpu.vector_store %arg7[%c16_107, %c0_108], %258 {strides = array<i32>} : memref<64x256xf32, #tpu.memory_space<vmem>>, vector<8x256xf32>,
    %c48_109 = arith.constant 48 : index
    %c0_110 = arith.constant 0 : index
    %260 = vector.load %arg6[%c48_109, %c0_110] : memref<64x256xf32, #tpu.memory_space<vmem>>, vector<8x128xf32>
    %c8_111 = arith.constant 8 : index
    %c128_112 = arith.constant 128 : index
    %261 = vector.load %arg6[%c8_111, %c128_112] : memref<64x256xf32, #tpu.memory_space<vmem>>, vector<8x128xf32>
    %262 = arith.truncf %247 : vector<16x32xf32> to vector<16x32xbf16>
    %cst_113 = arith.constant dense<0.000000e+00> : vector<16x256xf32>
    %263 = tpu.matmul %262, %55, %cst_113 {dimension_numbers = #tpu.dot_dimension_numbers<[1], [0], [0], [1], [0, 0, 1, 1], [], []>} : vector<16x32xbf16>, vector<32x256xbf16>, vector<16x256xf32> -> vector<16x256xf32>
    %264 = vector.extract_strided_slice %263 {offsets = [0, 0], sizes = [8, 128], strides = [1, 1]} : vector<16x256xf32> to vector<8x128xf32>
    %265 = arith.addf %260, %264 : vector<8x128xf32>
    %266 = vector.extract_strided_slice %263 {offsets = [8, 128], sizes = [8, 128], strides = [1, 1]} : vector<16x256xf32> to vector<8x128xf32>
    %267 = arith.addf %261, %266 : vector<8x128xf32>
    %268 = tpu.concatenate %265, %267 in 0 : vector<8x128xf32>, vector<8x128xf32> -> vector<16x128xf32>
    %269 = math.tanh %268 : vector<16x128xf32>
    %cst_114 = arith.constant 5.000000e-01 : f32
    %270 = vector.broadcast %cst_114 : f32 to vector<16x128xf32>
    %271 = arith.mulf %270, %269 : vector<16x128xf32>
    %cst_115 = arith.constant 5.000000e-01 : f32
    %272 = vector.broadcast %cst_115 : f32 to vector<16x128xf32>
    %273 = arith.addf %271, %272 : vector<16x128xf32>
    %274 = vector.extract_strided_slice %273 {offsets = [0, 0], sizes = [16, 32], strides = [1, 1]} : vector<16x128xf32> to vector<16x32xf32>
    %275 = vector.extract_strided_slice %273 {offsets = [0, 32], sizes = [16, 32], strides = [1, 1]} : vector<16x128xf32> to vector<16x32xf32>
    %276 = vector.extract_strided_slice %273 {offsets = [0, 96], sizes = [16, 32], strides = [1, 1]} : vector<16x128xf32> to vector<16x32xf32>
    %277 = vector.extract_strided_slice %269 {offsets = [0, 64], sizes = [16, 32], strides = [1, 1]} : vector<16x128xf32> to vector<16x32xf32>
    %278 = arith.mulf %275, %245 : vector<16x32xf32>
    %279 = arith.mulf %274, %277 : vector<16x32xf32>
    %280 = arith.addf %278, %279 : vector<16x32xf32>
    %281 = math.tanh %280 : vector<16x32xf32>
    %282 = arith.mulf %276, %281 : vector<16x32xf32>
    %283 = vector.extract_strided_slice %282 {offsets = [0, 0], sizes = [8, 32], strides = [1, 1]} : vector<16x32xf32> to vector<8x32xf32>
    %284 = arith.truncf %283 : vector<8x32xf32> to vector<8x32xbf16>
    %cst_116 = arith.constant dense<0.000000e+00> : vector<8x256xf32>
    %285 = tpu.matmul %284, %56, %cst_116 {dimension_numbers = #tpu.dot_dimension_numbers<[1], [0], [0], [1], [0, 0, 1, 1], [], []>} : vector<8x32xbf16>, vector<32x256xbf16>, vector<8x256xf32> -> vector<8x256xf32>
    %286 = vector.extract_strided_slice %282 {offsets = [8, 0], sizes = [8, 32], strides = [1, 1]} : vector<16x32xf32> to vector<8x32xf32>
    %287 = arith.truncf %286 : vector<8x32xf32> to vector<8x32xbf16>
    %cst_117 = arith.constant dense<0.000000e+00> : vector<8x256xf32>
    %288 = tpu.matmul %287, %57, %cst_117 {dimension_numbers = #tpu.dot_dimension_numbers<[1], [0], [0], [1], [0, 0, 1, 1], [], []>} : vector<8x32xbf16>, vector<32x256xbf16>, vector<8x256xf32> -> vector<8x256xf32>
    %c48_118 = arith.constant 48 : index
    %c0_119 = arith.constant 0 : index
    %289 = vector.load %arg7[%c48_118, %c0_119] : memref<64x256xf32, #tpu.memory_space<vmem>>, vector<8x256xf32>
    %290 = arith.addf %289, %285 : vector<8x256xf32>
    %c48_120 = arith.constant 48 : index
    %c0_121 = arith.constant 0 : index
    %291 = vector.load %arg7[%c48_120, %c0_121] : memref<64x256xf32, #tpu.memory_space<vmem>>, vector<8x256xf32>
    tpu.vector_store %arg7[%c48_120, %c0_121], %290 {strides = array<i32>} : memref<64x256xf32, #tpu.memory_space<vmem>>, vector<8x256xf32>,
    %c8_122 = arith.constant 8 : index
    %c0_123 = arith.constant 0 : index
    %292 = vector.load %arg7[%c8_122, %c0_123] : memref<64x256xf32, #tpu.memory_space<vmem>>, vector<8x256xf32>
    %293 = arith.addf %292, %288 : vector<8x256xf32>
    %c8_124 = arith.constant 8 : index
    %c0_125 = arith.constant 0 : index
    %294 = vector.load %arg7[%c8_124, %c0_125] : memref<64x256xf32, #tpu.memory_space<vmem>>, vector<8x256xf32>
    tpu.vector_store %arg7[%c8_124, %c0_125], %293 {strides = array<i32>} : memref<64x256xf32, #tpu.memory_space<vmem>>, vector<8x256xf32>,
    %c56_126 = arith.constant 56 : index
    %c0_127 = arith.constant 0 : index
    %295 = vector.load %arg6[%c56_126, %c0_127] : memref<64x256xf32, #tpu.memory_space<vmem>>, vector<8x128xf32>
    %c0_128 = arith.constant 0 : index
    %c128_129 = arith.constant 128 : index
    %296 = vector.load %arg6[%c0_128, %c128_129] : memref<64x256xf32, #tpu.memory_space<vmem>>, vector<8x128xf32>
    %297 = arith.truncf %282 : vector<16x32xf32> to vector<16x32xbf16>
    %cst_130 = arith.constant dense<0.000000e+00> : vector<16x256xf32>
    %298 = tpu.matmul %297, %55, %cst_130 {dimension_numbers = #tpu.dot_dimension_numbers<[1], [0], [0], [1], [0, 0, 1, 1], [], []>} : vector<16x32xbf16>, vector<32x256xbf16>, vector<16x256xf32> -> vector<16x256xf32>
    %299 = vector.extract_strided_slice %298 {offsets = [0, 0], sizes = [8, 128], strides = [1, 1]} : vector<16x256xf32> to vector<8x128xf32>
    %300 = arith.addf %295, %299 : vector<8x128xf32>
    %301 = vector.extract_strided_slice %298 {offsets = [8, 128], sizes = [8, 128], strides = [1, 1]} : vector<16x256xf32> to vector<8x128xf32>
    %302 = arith.addf %296, %301 : vector<8x128xf32>
    %303 = tpu.concatenate %300, %302 in 0 : vector<8x128xf32>, vector<8x128xf32> -> vector<16x128xf32>
    %304 = math.tanh %303 : vector<16x128xf32>
    %cst_131 = arith.constant 5.000000e-01 : f32
    %305 = vector.broadcast %cst_131 : f32 to vector<16x128xf32>
    %306 = arith.mulf %305, %304 : vector<16x128xf32>
    %cst_132 = arith.constant 5.000000e-01 : f32
    %307 = vector.broadcast %cst_132 : f32 to vector<16x128xf32>
    %308 = arith.addf %306, %307 : vector<16x128xf32>
    %309 = vector.extract_strided_slice %308 {offsets = [0, 0], sizes = [16, 32], strides = [1, 1]} : vector<16x128xf32> to vector<16x32xf32>
    %310 = vector.extract_strided_slice %308 {offsets = [0, 32], sizes = [16, 32], strides = [1, 1]} : vector<16x128xf32> to vector<16x32xf32>
    %311 = vector.extract_strided_slice %308 {offsets = [0, 96], sizes = [16, 32], strides = [1, 1]} : vector<16x128xf32> to vector<16x32xf32>
    %312 = vector.extract_strided_slice %304 {offsets = [0, 64], sizes = [16, 32], strides = [1, 1]} : vector<16x128xf32> to vector<16x32xf32>
    %313 = arith.mulf %310, %280 : vector<16x32xf32>
    %314 = arith.mulf %309, %312 : vector<16x32xf32>
    %315 = arith.addf %313, %314 : vector<16x32xf32>
    %316 = math.tanh %315 : vector<16x32xf32>
    %317 = arith.mulf %311, %316 : vector<16x32xf32>
    %318 = vector.extract_strided_slice %317 {offsets = [0, 0], sizes = [8, 32], strides = [1, 1]} : vector<16x32xf32> to vector<8x32xf32>
    %319 = arith.truncf %318 : vector<8x32xf32> to vector<8x32xbf16>
    %cst_133 = arith.constant dense<0.000000e+00> : vector<8x256xf32>
    %320 = tpu.matmul %319, %56, %cst_133 {dimension_numbers = #tpu.dot_dimension_numbers<[1], [0], [0], [1], [0, 0, 1, 1], [], []>} : vector<8x32xbf16>, vector<32x256xbf16>, vector<8x256xf32> -> vector<8x256xf32>
    %321 = vector.extract_strided_slice %317 {offsets = [8, 0], sizes = [8, 32], strides = [1, 1]} : vector<16x32xf32> to vector<8x32xf32>
    %322 = arith.truncf %321 : vector<8x32xf32> to vector<8x32xbf16>
    %cst_134 = arith.constant dense<0.000000e+00> : vector<8x256xf32>
    %323 = tpu.matmul %322, %57, %cst_134 {dimension_numbers = #tpu.dot_dimension_numbers<[1], [0], [0], [1], [0, 0, 1, 1], [], []>} : vector<8x32xbf16>, vector<32x256xbf16>, vector<8x256xf32> -> vector<8x256xf32>
    %c56_135 = arith.constant 56 : index
    %c0_136 = arith.constant 0 : index
    %324 = vector.load %arg7[%c56_135, %c0_136] : memref<64x256xf32, #tpu.memory_space<vmem>>, vector<8x256xf32>
    %325 = arith.addf %324, %320 : vector<8x256xf32>
    %c56_137 = arith.constant 56 : index
    %c0_138 = arith.constant 0 : index
    %326 = vector.load %arg7[%c56_137, %c0_138] : memref<64x256xf32, #tpu.memory_space<vmem>>, vector<8x256xf32>
    tpu.vector_store %arg7[%c56_137, %c0_138], %325 {strides = array<i32>} : memref<64x256xf32, #tpu.memory_space<vmem>>, vector<8x256xf32>,
    %c0_139 = arith.constant 0 : index
    %c0_140 = arith.constant 0 : index
    %327 = vector.load %arg7[%c0_139, %c0_140] : memref<64x256xf32, #tpu.memory_space<vmem>>, vector<8x256xf32>
    %328 = arith.addf %327, %323 : vector<8x256xf32>
    %c0_141 = arith.constant 0 : index
    %c0_142 = arith.constant 0 : index
    %329 = vector.load %arg7[%c0_141, %c0_142] : memref<64x256xf32, #tpu.memory_space<vmem>>, vector<8x256xf32>
    tpu.vector_store %arg7[%c0_141, %c0_142], %328 {strides = array<i32>} : memref<64x256xf32, #tpu.memory_space<vmem>>, vector<8x256xf32>,
    %c0_143 = arith.constant 0 : index
    %c0_144 = arith.constant 0 : index
    %330 = vector.load %arg7[%c0_143, %c0_144] : memref<64x256xf32, #tpu.memory_space<vmem>>, vector<8x128xf32>
    %c56_145 = arith.constant 56 : index
    %c128_146 = arith.constant 128 : index
    %331 = vector.load %arg7[%c56_145, %c128_146] : memref<64x256xf32, #tpu.memory_space<vmem>>, vector<8x128xf32>
    %332 = tpu.concatenate %330, %331 in 0 : vector<8x128xf32>, vector<8x128xf32> -> vector<16x128xf32>
    %333 = math.tanh %332 : vector<16x128xf32>
    %cst_147 = arith.constant 5.000000e-01 : f32
    %334 = vector.broadcast %cst_147 : f32 to vector<16x128xf32>
    %335 = arith.mulf %334, %333 : vector<16x128xf32>
    %cst_148 = arith.constant 5.000000e-01 : f32
    %336 = vector.broadcast %cst_148 : f32 to vector<16x128xf32>
    %337 = arith.addf %335, %336 : vector<16x128xf32>
    %338 = vector.extract_strided_slice %337 {offsets = [0, 0], sizes = [16, 32], strides = [1, 1]} : vector<16x128xf32> to vector<16x32xf32>
    %339 = vector.extract_strided_slice %337 {offsets = [0, 96], sizes = [16, 32], strides = [1, 1]} : vector<16x128xf32> to vector<16x32xf32>
    %340 = vector.extract_strided_slice %333 {offsets = [0, 64], sizes = [16, 32], strides = [1, 1]} : vector<16x128xf32> to vector<16x32xf32>
    %341 = arith.mulf %338, %340 : vector<16x32xf32>
    %342 = math.tanh %341 : vector<16x32xf32>
    %343 = arith.mulf %339, %342 : vector<16x32xf32>
    %344 = vector.extract_strided_slice %343 {offsets = [8, 0], sizes = [8, 32], strides = [1, 1]} : vector<16x32xf32> to vector<8x32xf32>
    %c8_149 = arith.constant 8 : index
    %c0_150 = arith.constant 0 : index
    %345 = vector.load %arg7[%c8_149, %c0_150] : memref<64x256xf32, #tpu.memory_space<vmem>>, vector<8x128xf32>
    %c48_151 = arith.constant 48 : index
    %c128_152 = arith.constant 128 : index
    %346 = vector.load %arg7[%c48_151, %c128_152] : memref<64x256xf32, #tpu.memory_space<vmem>>, vector<8x128xf32>
    %347 = arith.truncf %343 : vector<16x32xf32> to vector<16x32xbf16>
    %cst_153 = arith.constant dense<0.000000e+00> : vector<16x256xf32>
    %348 = tpu.matmul %347, %58, %cst_153 {dimension_numbers = #tpu.dot_dimension_numbers<[1], [0], [0], [1], [0, 0, 1, 1], [], []>} : vector<16x32xbf16>, vector<32x256xbf16>, vector<16x256xf32> -> vector<16x256xf32>
    %349 = vector.extract_strided_slice %348 {offsets = [0, 0], sizes = [8, 128], strides = [1, 1]} : vector<16x256xf32> to vector<8x128xf32>
    %350 = arith.addf %345, %349 : vector<8x128xf32>
    %351 = vector.extract_strided_slice %348 {offsets = [8, 128], sizes = [8, 128], strides = [1, 1]} : vector<16x256xf32> to vector<8x128xf32>
    %352 = arith.addf %346, %351 : vector<8x128xf32>
    %353 = tpu.concatenate %350, %352 in 0 : vector<8x128xf32>, vector<8x128xf32> -> vector<16x128xf32>
    %354 = math.tanh %353 : vector<16x128xf32>
    %cst_154 = arith.constant 5.000000e-01 : f32
    %355 = vector.broadcast %cst_154 : f32 to vector<16x128xf32>
    %356 = arith.mulf %355, %354 : vector<16x128xf32>
    %cst_155 = arith.constant 5.000000e-01 : f32
    %357 = vector.broadcast %cst_155 : f32 to vector<16x128xf32>
    %358 = arith.addf %356, %357 : vector<16x128xf32>
    %359 = vector.extract_strided_slice %358 {offsets = [0, 0], sizes = [16, 32], strides = [1, 1]} : vector<16x128xf32> to vector<16x32xf32>
    %360 = vector.extract_strided_slice %358 {offsets = [0, 32], sizes = [16, 32], strides = [1, 1]} : vector<16x128xf32> to vector<16x32xf32>
    %361 = vector.extract_strided_slice %358 {offsets = [0, 96], sizes = [16, 32], strides = [1, 1]} : vector<16x128xf32> to vector<16x32xf32>
    %362 = vector.extract_strided_slice %354 {offsets = [0, 64], sizes = [16, 32], strides = [1, 1]} : vector<16x128xf32> to vector<16x32xf32>
    %363 = arith.mulf %360, %341 : vector<16x32xf32>
    %364 = arith.mulf %359, %362 : vector<16x32xf32>
    %365 = arith.addf %363, %364 : vector<16x32xf32>
    %366 = math.tanh %365 : vector<16x32xf32>
    %367 = arith.mulf %361, %366 : vector<16x32xf32>
    %c16_156 = arith.constant 16 : index
    %c0_157 = arith.constant 0 : index
    %368 = vector.load %arg7[%c16_156, %c0_157] : memref<64x256xf32, #tpu.memory_space<vmem>>, vector<8x128xf32>
    %c40_158 = arith.constant 40 : index
    %c128_159 = arith.constant 128 : index
    %369 = vector.load %arg7[%c40_158, %c128_159] : memref<64x256xf32, #tpu.memory_space<vmem>>, vector<8x128xf32>
    %370 = arith.truncf %367 : vector<16x32xf32> to vector<16x32xbf16>
    %cst_160 = arith.constant dense<0.000000e+00> : vector<16x256xf32>
    %371 = tpu.matmul %370, %58, %cst_160 {dimension_numbers = #tpu.dot_dimension_numbers<[1], [0], [0], [1], [0, 0, 1, 1], [], []>} : vector<16x32xbf16>, vector<32x256xbf16>, vector<16x256xf32> -> vector<16x256xf32>
    %372 = vector.extract_strided_slice %371 {offsets = [0, 0], sizes = [8, 128], strides = [1, 1]} : vector<16x256xf32> to vector<8x128xf32>
    %373 = arith.addf %368, %372 : vector<8x128xf32>
    %374 = vector.extract_strided_slice %371 {offsets = [8, 128], sizes = [8, 128], strides = [1, 1]} : vector<16x256xf32> to vector<8x128xf32>
    %375 = arith.addf %369, %374 : vector<8x128xf32>
    %376 = tpu.concatenate %373, %375 in 0 : vector<8x128xf32>, vector<8x128xf32> -> vector<16x128xf32>
    %377 = math.tanh %376 : vector<16x128xf32>
    %cst_161 = arith.constant 5.000000e-01 : f32
    %378 = vector.broadcast %cst_161 : f32 to vector<16x128xf32>
    %379 = arith.mulf %378, %377 : vector<16x128xf32>
    %cst_162 = arith.constant 5.000000e-01 : f32
    %380 = vector.broadcast %cst_162 : f32 to vector<16x128xf32>
    %381 = arith.addf %379, %380 : vector<16x128xf32>
    %382 = vector.extract_strided_slice %381 {offsets = [0, 0], sizes = [16, 32], strides = [1, 1]} : vector<16x128xf32> to vector<16x32xf32>
    %383 = vector.extract_strided_slice %381 {offsets = [0, 32], sizes = [16, 32], strides = [1, 1]} : vector<16x128xf32> to vector<16x32xf32>
    %384 = vector.extract_strided_slice %381 {offsets = [0, 96], sizes = [16, 32], strides = [1, 1]} : vector<16x128xf32> to vector<16x32xf32>
    %385 = vector.extract_strided_slice %377 {offsets = [0, 64], sizes = [16, 32], strides = [1, 1]} : vector<16x128xf32> to vector<16x32xf32>
    %386 = arith.mulf %383, %365 : vector<16x32xf32>
    %387 = arith.mulf %382, %385 : vector<16x32xf32>
    %388 = arith.addf %386, %387 : vector<16x32xf32>
    %389 = math.tanh %388 : vector<16x32xf32>
    %390 = arith.mulf %384, %389 : vector<16x32xf32>
    %c24_163 = arith.constant 24 : index
    %c0_164 = arith.constant 0 : index
    %391 = vector.load %arg7[%c24_163, %c0_164] : memref<64x256xf32, #tpu.memory_space<vmem>>, vector<8x128xf32>
    %c32_165 = arith.constant 32 : index
    %c128_166 = arith.constant 128 : index
    %392 = vector.load %arg7[%c32_165, %c128_166] : memref<64x256xf32, #tpu.memory_space<vmem>>, vector<8x128xf32>
    %393 = arith.truncf %390 : vector<16x32xf32> to vector<16x32xbf16>
    %cst_167 = arith.constant dense<0.000000e+00> : vector<16x256xf32>
    %394 = tpu.matmul %393, %58, %cst_167 {dimension_numbers = #tpu.dot_dimension_numbers<[1], [0], [0], [1], [0, 0, 1, 1], [], []>} : vector<16x32xbf16>, vector<32x256xbf16>, vector<16x256xf32> -> vector<16x256xf32>
    %395 = vector.extract_strided_slice %394 {offsets = [0, 0], sizes = [8, 128], strides = [1, 1]} : vector<16x256xf32> to vector<8x128xf32>
    %396 = arith.addf %391, %395 : vector<8x128xf32>
    %397 = vector.extract_strided_slice %394 {offsets = [8, 128], sizes = [8, 128], strides = [1, 1]} : vector<16x256xf32> to vector<8x128xf32>
    %398 = arith.addf %392, %397 : vector<8x128xf32>
    %399 = tpu.concatenate %396, %398 in 0 : vector<8x128xf32>, vector<8x128xf32> -> vector<16x128xf32>
    %400 = math.tanh %399 : vector<16x128xf32>
    %cst_168 = arith.constant 5.000000e-01 : f32
    %401 = vector.broadcast %cst_168 : f32 to vector<16x128xf32>
    %402 = arith.mulf %401, %400 : vector<16x128xf32>
    %cst_169 = arith.constant 5.000000e-01 : f32
    %403 = vector.broadcast %cst_169 : f32 to vector<16x128xf32>
    %404 = arith.addf %402, %403 : vector<16x128xf32>
    %405 = vector.extract_strided_slice %404 {offsets = [0, 0], sizes = [16, 32], strides = [1, 1]} : vector<16x128xf32> to vector<16x32xf32>
    %406 = vector.extract_strided_slice %404 {offsets = [0, 32], sizes = [16, 32], strides = [1, 1]} : vector<16x128xf32> to vector<16x32xf32>
    %407 = vector.extract_strided_slice %404 {offsets = [0, 96], sizes = [16, 32], strides = [1, 1]} : vector<16x128xf32> to vector<16x32xf32>
    %408 = vector.extract_strided_slice %400 {offsets = [0, 64], sizes = [16, 32], strides = [1, 1]} : vector<16x128xf32> to vector<16x32xf32>
    %409 = arith.mulf %406, %388 : vector<16x32xf32>
    %410 = arith.mulf %405, %408 : vector<16x32xf32>
    %411 = arith.addf %409, %410 : vector<16x32xf32>
    %412 = math.tanh %411 : vector<16x32xf32>
    %413 = arith.mulf %407, %412 : vector<16x32xf32>
    %c32_170 = arith.constant 32 : index
    %c0_171 = arith.constant 0 : index
    %414 = vector.load %arg7[%c32_170, %c0_171] : memref<64x256xf32, #tpu.memory_space<vmem>>, vector<8x128xf32>
    %c24_172 = arith.constant 24 : index
    %c128_173 = arith.constant 128 : index
    %415 = vector.load %arg7[%c24_172, %c128_173] : memref<64x256xf32, #tpu.memory_space<vmem>>, vector<8x128xf32>
    %416 = arith.truncf %413 : vector<16x32xf32> to vector<16x32xbf16>
    %cst_174 = arith.constant dense<0.000000e+00> : vector<16x256xf32>
    %417 = tpu.matmul %416, %58, %cst_174 {dimension_numbers = #tpu.dot_dimension_numbers<[1], [0], [0], [1], [0, 0, 1, 1], [], []>} : vector<16x32xbf16>, vector<32x256xbf16>, vector<16x256xf32> -> vector<16x256xf32>
    %418 = vector.extract_strided_slice %417 {offsets = [0, 0], sizes = [8, 128], strides = [1, 1]} : vector<16x256xf32> to vector<8x128xf32>
    %419 = arith.addf %414, %418 : vector<8x128xf32>
    %420 = vector.extract_strided_slice %417 {offsets = [8, 128], sizes = [8, 128], strides = [1, 1]} : vector<16x256xf32> to vector<8x128xf32>
    %421 = arith.addf %415, %420 : vector<8x128xf32>
    %422 = tpu.concatenate %419, %421 in 0 : vector<8x128xf32>, vector<8x128xf32> -> vector<16x128xf32>
    %423 = math.tanh %422 : vector<16x128xf32>
    %cst_175 = arith.constant 5.000000e-01 : f32
    %424 = vector.broadcast %cst_175 : f32 to vector<16x128xf32>
    %425 = arith.mulf %424, %423 : vector<16x128xf32>
    %cst_176 = arith.constant 5.000000e-01 : f32
    %426 = vector.broadcast %cst_176 : f32 to vector<16x128xf32>
    %427 = arith.addf %425, %426 : vector<16x128xf32>
    %428 = vector.extract_strided_slice %427 {offsets = [0, 0], sizes = [16, 32], strides = [1, 1]} : vector<16x128xf32> to vector<16x32xf32>
    %429 = vector.extract_strided_slice %427 {offsets = [0, 32], sizes = [16, 32], strides = [1, 1]} : vector<16x128xf32> to vector<16x32xf32>
    %430 = vector.extract_strided_slice %427 {offsets = [0, 96], sizes = [16, 32], strides = [1, 1]} : vector<16x128xf32> to vector<16x32xf32>
    %431 = vector.extract_strided_slice %423 {offsets = [0, 64], sizes = [16, 32], strides = [1, 1]} : vector<16x128xf32> to vector<16x32xf32>
    %432 = arith.mulf %429, %411 : vector<16x32xf32>
    %433 = arith.mulf %428, %431 : vector<16x32xf32>
    %434 = arith.addf %432, %433 : vector<16x32xf32>
    %435 = math.tanh %434 : vector<16x32xf32>
    %436 = arith.mulf %430, %435 : vector<16x32xf32>
    %c40_177 = arith.constant 40 : index
    %c0_178 = arith.constant 0 : index
    %437 = vector.load %arg7[%c40_177, %c0_178] : memref<64x256xf32, #tpu.memory_space<vmem>>, vector<8x128xf32>
    %c16_179 = arith.constant 16 : index
    %c128_180 = arith.constant 128 : index
    %438 = vector.load %arg7[%c16_179, %c128_180] : memref<64x256xf32, #tpu.memory_space<vmem>>, vector<8x128xf32>
    %439 = arith.truncf %436 : vector<16x32xf32> to vector<16x32xbf16>
    %cst_181 = arith.constant dense<0.000000e+00> : vector<16x256xf32>
    %440 = tpu.matmul %439, %58, %cst_181 {dimension_numbers = #tpu.dot_dimension_numbers<[1], [0], [0], [1], [0, 0, 1, 1], [], []>} : vector<16x32xbf16>, vector<32x256xbf16>, vector<16x256xf32> -> vector<16x256xf32>
    %441 = vector.extract_strided_slice %440 {offsets = [0, 0], sizes = [8, 128], strides = [1, 1]} : vector<16x256xf32> to vector<8x128xf32>
    %442 = arith.addf %437, %441 : vector<8x128xf32>
    %443 = vector.extract_strided_slice %440 {offsets = [8, 128], sizes = [8, 128], strides = [1, 1]} : vector<16x256xf32> to vector<8x128xf32>
    %444 = arith.addf %438, %443 : vector<8x128xf32>
    %445 = tpu.concatenate %442, %444 in 0 : vector<8x128xf32>, vector<8x128xf32> -> vector<16x128xf32>
    %446 = math.tanh %445 : vector<16x128xf32>
    %cst_182 = arith.constant 5.000000e-01 : f32
    %447 = vector.broadcast %cst_182 : f32 to vector<16x128xf32>
    %448 = arith.mulf %447, %446 : vector<16x128xf32>
    %cst_183 = arith.constant 5.000000e-01 : f32
    %449 = vector.broadcast %cst_183 : f32 to vector<16x128xf32>
    %450 = arith.addf %448, %449 : vector<16x128xf32>
    %451 = vector.extract_strided_slice %450 {offsets = [0, 0], sizes = [16, 32], strides = [1, 1]} : vector<16x128xf32> to vector<16x32xf32>
    %452 = vector.extract_strided_slice %450 {offsets = [0, 32], sizes = [16, 32], strides = [1, 1]} : vector<16x128xf32> to vector<16x32xf32>
    %453 = vector.extract_strided_slice %450 {offsets = [0, 96], sizes = [16, 32], strides = [1, 1]} : vector<16x128xf32> to vector<16x32xf32>
    %454 = vector.extract_strided_slice %446 {offsets = [0, 64], sizes = [16, 32], strides = [1, 1]} : vector<16x128xf32> to vector<16x32xf32>
    %455 = arith.mulf %452, %434 : vector<16x32xf32>
    %456 = arith.mulf %451, %454 : vector<16x32xf32>
    %457 = arith.addf %455, %456 : vector<16x32xf32>
    %458 = math.tanh %457 : vector<16x32xf32>
    %459 = arith.mulf %453, %458 : vector<16x32xf32>
    %c48_184 = arith.constant 48 : index
    %c0_185 = arith.constant 0 : index
    %460 = vector.load %arg7[%c48_184, %c0_185] : memref<64x256xf32, #tpu.memory_space<vmem>>, vector<8x128xf32>
    %c8_186 = arith.constant 8 : index
    %c128_187 = arith.constant 128 : index
    %461 = vector.load %arg7[%c8_186, %c128_187] : memref<64x256xf32, #tpu.memory_space<vmem>>, vector<8x128xf32>
    %462 = arith.truncf %459 : vector<16x32xf32> to vector<16x32xbf16>
    %cst_188 = arith.constant dense<0.000000e+00> : vector<16x256xf32>
    %463 = tpu.matmul %462, %58, %cst_188 {dimension_numbers = #tpu.dot_dimension_numbers<[1], [0], [0], [1], [0, 0, 1, 1], [], []>} : vector<16x32xbf16>, vector<32x256xbf16>, vector<16x256xf32> -> vector<16x256xf32>
    %464 = vector.extract_strided_slice %463 {offsets = [0, 0], sizes = [8, 128], strides = [1, 1]} : vector<16x256xf32> to vector<8x128xf32>
    %465 = arith.addf %460, %464 : vector<8x128xf32>
    %466 = vector.extract_strided_slice %463 {offsets = [8, 128], sizes = [8, 128], strides = [1, 1]} : vector<16x256xf32> to vector<8x128xf32>
    %467 = arith.addf %461, %466 : vector<8x128xf32>
    %468 = tpu.concatenate %465, %467 in 0 : vector<8x128xf32>, vector<8x128xf32> -> vector<16x128xf32>
    %469 = math.tanh %468 : vector<16x128xf32>
    %cst_189 = arith.constant 5.000000e-01 : f32
    %470 = vector.broadcast %cst_189 : f32 to vector<16x128xf32>
    %471 = arith.mulf %470, %469 : vector<16x128xf32>
    %cst_190 = arith.constant 5.000000e-01 : f32
    %472 = vector.broadcast %cst_190 : f32 to vector<16x128xf32>
    %473 = arith.addf %471, %472 : vector<16x128xf32>
    %474 = vector.extract_strided_slice %473 {offsets = [0, 0], sizes = [16, 32], strides = [1, 1]} : vector<16x128xf32> to vector<16x32xf32>
    %475 = vector.extract_strided_slice %473 {offsets = [0, 32], sizes = [16, 32], strides = [1, 1]} : vector<16x128xf32> to vector<16x32xf32>
    %476 = vector.extract_strided_slice %473 {offsets = [0, 96], sizes = [16, 32], strides = [1, 1]} : vector<16x128xf32> to vector<16x32xf32>
    %477 = vector.extract_strided_slice %469 {offsets = [0, 64], sizes = [16, 32], strides = [1, 1]} : vector<16x128xf32> to vector<16x32xf32>
    %478 = arith.mulf %475, %457 : vector<16x32xf32>
    %479 = arith.mulf %474, %477 : vector<16x32xf32>
    %480 = arith.addf %478, %479 : vector<16x32xf32>
    %481 = math.tanh %480 : vector<16x32xf32>
    %482 = arith.mulf %476, %481 : vector<16x32xf32>
    %c56_191 = arith.constant 56 : index
    %c0_192 = arith.constant 0 : index
    %483 = vector.load %arg7[%c56_191, %c0_192] : memref<64x256xf32, #tpu.memory_space<vmem>>, vector<8x128xf32>
    %c0_193 = arith.constant 0 : index
    %c128_194 = arith.constant 128 : index
    %484 = vector.load %arg7[%c0_193, %c128_194] : memref<64x256xf32, #tpu.memory_space<vmem>>, vector<8x128xf32>
    %485 = arith.truncf %482 : vector<16x32xf32> to vector<16x32xbf16>
    %cst_195 = arith.constant dense<0.000000e+00> : vector<16x256xf32>
    %486 = tpu.matmul %485, %58, %cst_195 {dimension_numbers = #tpu.dot_dimension_numbers<[1], [0], [0], [1], [0, 0, 1, 1], [], []>} : vector<16x32xbf16>, vector<32x256xbf16>, vector<16x256xf32> -> vector<16x256xf32>
    %487 = vector.extract_strided_slice %486 {offsets = [0, 0], sizes = [8, 128], strides = [1, 1]} : vector<16x256xf32> to vector<8x128xf32>
    %488 = arith.addf %483, %487 : vector<8x128xf32>
    %489 = vector.extract_strided_slice %486 {offsets = [8, 128], sizes = [8, 128], strides = [1, 1]} : vector<16x256xf32> to vector<8x128xf32>
    %490 = arith.addf %484, %489 : vector<8x128xf32>
    %491 = tpu.concatenate %488, %490 in 0 : vector<8x128xf32>, vector<8x128xf32> -> vector<16x128xf32>
    %492 = math.tanh %491 : vector<16x128xf32>
    %cst_196 = arith.constant 5.000000e-01 : f32
    %493 = vector.broadcast %cst_196 : f32 to vector<16x128xf32>
    %494 = arith.mulf %493, %492 : vector<16x128xf32>
    %cst_197 = arith.constant 5.000000e-01 : f32
    %495 = vector.broadcast %cst_197 : f32 to vector<16x128xf32>
    %496 = arith.addf %494, %495 : vector<16x128xf32>
    %497 = vector.extract_strided_slice %496 {offsets = [0, 0], sizes = [16, 32], strides = [1, 1]} : vector<16x128xf32> to vector<16x32xf32>
    %498 = vector.extract_strided_slice %496 {offsets = [0, 32], sizes = [16, 32], strides = [1, 1]} : vector<16x128xf32> to vector<16x32xf32>
    %499 = vector.extract_strided_slice %496 {offsets = [0, 96], sizes = [16, 32], strides = [1, 1]} : vector<16x128xf32> to vector<16x32xf32>
    %500 = vector.extract_strided_slice %492 {offsets = [0, 64], sizes = [16, 32], strides = [1, 1]} : vector<16x128xf32> to vector<16x32xf32>
    %501 = arith.mulf %498, %480 : vector<16x32xf32>
    %502 = arith.mulf %497, %500 : vector<16x32xf32>
    %503 = arith.addf %501, %502 : vector<16x32xf32>
    %504 = math.tanh %503 : vector<16x32xf32>
    %505 = arith.mulf %499, %504 : vector<16x32xf32>
    %506 = vector.extract_strided_slice %505 {offsets = [0, 0], sizes = [8, 32], strides = [1, 1]} : vector<16x32xf32> to vector<8x32xf32>
    %507 = tpu.concatenate %506, %344 in 1 : vector<8x32xf32>, vector<8x32xf32> -> vector<8x64xf32>
    %c0_198 = arith.constant 0 : index
    %c0_199 = arith.constant 0 : index
    %508 = vector.load %arg3[%c0_198, %c0_199] : memref<256x128xbf16, #tpu.memory_space<vmem>>, vector<64x128xbf16>
    %c64_200 = arith.constant 64 : index
    %c0_201 = arith.constant 0 : index
    %509 = vector.load %arg3[%c64_200, %c0_201] : memref<256x128xbf16, #tpu.memory_space<vmem>>, vector<192x128xbf16>
    %510 = arith.truncf %507 : vector<8x64xf32> to vector<8x64xbf16>
    %cst_202 = arith.constant dense<0.000000e+00> : vector<8x128xf32>
    %511 = tpu.matmul %510, %508, %cst_202 {dimension_numbers = #tpu.dot_dimension_numbers<[1], [0], [0], [1], [0, 0, 1, 1], [], []>} : vector<8x64xbf16>, vector<64x128xbf16>, vector<8x128xf32> -> vector<8x128xf32>
    %512 = vector.broadcast %10 : vector<1x128xf32> to vector<8x128xf32>
    %513 = arith.addf %511, %512 : vector<8x128xf32>
    %cst_203 = arith.constant 0.000000e+00 : f32
    %514 = vector.broadcast %cst_203 : f32 to vector<8x128xf32>
    %515 = arith.maximumf %513, %514 : vector<8x128xf32>
    %516 = tpu.concatenate %515, %507 in 1 : vector<8x128xf32>, vector<8x64xf32> -> vector<8x192xf32>
    %517 = arith.truncf %516 : vector<8x192xf32> to vector<8x192xbf16>
    %cst_204 = arith.constant dense<0.000000e+00> : vector<8x128xf32>
    %518 = tpu.matmul %517, %509, %cst_204 {dimension_numbers = #tpu.dot_dimension_numbers<[1], [0], [0], [1], [0, 0, 1, 1], [], []>} : vector<8x192xbf16>, vector<192x128xbf16>, vector<8x128xf32> -> vector<8x128xf32>
    %519 = vector.broadcast %11 : vector<1x128xf32> to vector<8x128xf32>
    %520 = arith.addf %518, %519 : vector<8x128xf32>
    %521 = vector.extract_strided_slice %520 {offsets = [0, 0], sizes = [8, 1], strides = [1, 1]} : vector<8x128xf32> to vector<8x1xf32>
    %522 = vector.extract_strided_slice %520 {offsets = [0, 1], sizes = [8, 1], strides = [1, 1]} : vector<8x128xf32> to vector<8x1xf32>
    %523 = vector.extract_strided_slice %520 {offsets = [0, 2], sizes = [8, 1], strides = [1, 1]} : vector<8x128xf32> to vector<8x1xf32>
    %cst_205 = arith.constant 5.000000e-01 : f32
    %524 = vector.broadcast %cst_205 : f32 to vector<8x1xf32>
    %525 = arith.cmpf olt, %1, %524 : vector<8x1xf32>
    %526 = arith.select %525, %521, %522 : vector<8x1xi1>, vector<8x1xf32>
    %cst_206 = arith.constant 0.000000e+00 : f32
    %527 = vector.broadcast %cst_206 : f32 to vector<8x1xf32>
    %528 = arith.maximumf %523, %527 : vector<8x1xf32>
    %529 = arith.mulf %523, %1 : vector<8x1xf32>
    %530 = arith.subf %528, %529 : vector<8x1xf32>
    %531 = math.absf %523 : vector<8x1xf32>
    %cst_207 = arith.constant 0.000000e+00 : f32
    %532 = vector.broadcast %cst_207 : f32 to vector<8x1xf32>
    %533 = arith.subf %532, %531 : vector<8x1xf32>
    %534 = math.exp %533 : vector<8x1xf32>
    %535 = math.log1p %534 : vector<8x1xf32>
    %536 = arith.addf %530, %535 : vector<8x1xf32>
    %537 = vector.shape_cast %536 : vector<8x1xf32> to vector<1x8x1xf32>
    %cst_208 = arith.constant dense<0.000000e+00> : vector<1xf32>
    %538 = vector.multi_reduction <add>, %537, %cst_208 [1, 2] : vector<1x8x1xf32> to vector<1xf32>
    %539 = vector.shape_cast %538 : vector<1xf32> to vector<1x1x1xf32>
    %540 = vector.extract %539[0, 0, 0] : f32 from vector<1x1x1xf32>
    %cst_209 = arith.constant 8.000000e+00 : f32
    %541 = arith.divf %540, %cst_209 : f32
    %cst_210 = arith.constant 0.000000e+00 : f32
    %542 = vector.broadcast %cst_210 : f32 to vector<8x1xf32>
    %543 = arith.maximumf %526, %542 : vector<8x1xf32>
    %544 = arith.mulf %526, %2 : vector<8x1xf32>
    %545 = arith.subf %543, %544 : vector<8x1xf32>
    %546 = math.absf %526 : vector<8x1xf32>
    %cst_211 = arith.constant 0.000000e+00 : f32
    %547 = vector.broadcast %cst_211 : f32 to vector<8x1xf32>
    %548 = arith.subf %547, %546 : vector<8x1xf32>
    %549 = math.exp %548 : vector<8x1xf32>
    %550 = math.log1p %549 : vector<8x1xf32>
    %551 = arith.addf %545, %550 : vector<8x1xf32>
    %552 = vector.shape_cast %551 : vector<8x1xf32> to vector<1x8x1xf32>
    %cst_212 = arith.constant dense<0.000000e+00> : vector<1xf32>
    %553 = vector.multi_reduction <add>, %552, %cst_212 [1, 2] : vector<1x8x1xf32> to vector<1xf32>
    %554 = vector.shape_cast %553 : vector<1xf32> to vector<1x1x1xf32>
    %555 = vector.extract %554[0, 0, 0] : f32 from vector<1x1x1xf32>
    %cst_213 = arith.constant 8.000000e+00 : f32
    %556 = arith.divf %555, %cst_213 : f32
    %557 = arith.addf %541, %556 : f32
    %558 = tpu.iota {dimensions = array<i32: 1>} : vector<8x128xi32>
    %c3_i32 = arith.constant 3 : i32
    %559 = vector.broadcast %c3_i32 : i32 to vector<8x128xi32>
    %560 = arith.cmpi eq, %558, %559 : vector<8x128xi32>
    %561 = vector.shape_cast %526 : vector<8x1xf32> to vector<8x1xf32>
    %562 = vector.broadcast %561 : vector<8x1xf32> to vector<8x128xf32>
    %563 = arith.select %560, %562, %520 : vector<8x128xi1>, vector<8x128xf32>
    %c4_i32 = arith.constant 4 : i32
    %564 = vector.broadcast %c4_i32 : i32 to vector<8x128xi32>
    %565 = arith.cmpi eq, %558, %564 : vector<8x128xi32>
    %566 = vector.broadcast %557 : f32 to vector<8x128xf32>
    %567 = arith.select %565, %566, %563 : vector<8x128xi1>, vector<8x128xf32>
    %c0_214 = arith.constant 0 : index
    %c0_215 = arith.constant 0 : index
    %568 = vector.load %arg5[%c0_214, %c0_215] : memref<8x128xf32, #tpu.memory_space<vmem>>, vector<8x128xf32>
    tpu.vector_store %arg5[%c0_214, %c0_215], %567 {strides = array<i32>} : memref<8x128xf32, #tpu.memory_space<vmem>>, vector<8x128xf32>,
    return
  }
}

</mosaic_0001>

<bundles_post_ra>
// kernel: mimic_lstm_forward.1
= control target key start
LH: loop header
LB: loop body
LE: loop exit
PB: predicated region body
PF: predicated region fallthrough
CT: control target
= control target key end

     0   :  { %10 = vsyncpa [#allocation5], 0  ;;  %s4527_s0 = inlined_call_operand.vmem [shape: s32[64,4], index: 0, kind: input, shape index: {}]   ;;  %s4528_s1 = inlined_call_operand.vmem [shape: f32[8,4], index: 1, kind: input, shape index: {}]   ;;  %s4529_s2 = inlined_call_operand.vmem [shape: bf16[192,256], index: 2, kind: input, shape index: {}]   ;;  %s4530_s3 = inlined_call_operand.hbm [shape: bf16[256,128], index: 3, kind: input, shape index: {}]   ;;  %s4531_s4 = inlined_call_operand.hbm [shape: f32[8,256], index: 4, kind: input, shape index: {}]   ;;  %s4532_s5 = inlined_call_operand.vmem [shape: f32[8,128], index: 5, kind: output, shape index: {}]  }
   0x1   :  { %11 = vsyncpa [#allocation7], 0  ;;  %s3564_s18 = smov [#allocation4]   ;;  %s3516_s22 = scalar_lea.hbm %s4530_s3, 2048 }
   0x2   :  { %s23_s19 = sshll.u32 %s3564_s18, 4  ;;  %p3517_p0 = scmp.ne.s32.totalorder %s4530_s3, %s3516_s22  ;;  %s24_s19 = int_to_ptr.vmem [resolvable:$true] %s23_s19 }
   0x3   :  { %p3520_p1 = scmp.lt.u32.totalorder %s3516_s22, %s4530_s3 }
   0x5   :  { %p3522_p2 = pnand %p3520_p1, %p3517_p0 }
   0x7   :  { %3525 = shalt.err (!%p3522_p2)
}
   0x8   :  { %s3526_s27 = scalar_lea.vmem %s24_s19, 2048  ;;  %p3531_p4 = scmp.lt.s32.totalorder %s24_s19, %s24_s19 }
   0x9   :  { %p3527_p3 = scmp.ne.s32.totalorder %s24_s19, %s3526_s27  ;;  %p3532_p5 = scmp.lt.s32.totalorder %s3526_s27, %s3526_s27 }
   0xb   :  { %p3533_p6 = por %p3532_p5, %p3531_p4 }
   0xd   :  { %p3534_p7 = pnand %p3533_p6, %p3527_p3 }
   0xf   :  { %3537 = shalt.err (!%p3534_p7)
}
  0x10   :  { %s3565_s28 = smov 64   ;;  %s3566_s29 = smov 4  }
  0x11   :  { %29 = dma.hbm_to_vmem [thread:$0]  %s4530_s3, 2048, %s24_s19, [#allocation5], %s3565_s28, %s3565_s28, %s3566_s29  }
  0x12   :  { %s3567_s7 = smov [#allocation6]   ;;  %s3538_s11 = scalar_lea.hbm %s4531_s4, 256 }
  0x13   :  { %s36_s8 = sshll.u32 %s3567_s7, 4  ;;  %p3539_p8 = scmp.ne.s32.totalorder %s4531_s4, %s3538_s11  ;;  %s37_s8 = int_to_ptr.vmem [resolvable:$true] %s36_s8 }
  0x14   :  { %p3542_p9 = scmp.lt.u32.totalorder %s3538_s11, %s4531_s4 }
  0x16   :  { %p3544_p10 = pnand %p3542_p9, %p3539_p8 }
  0x18   :  { %3547 = shalt.err (!%p3544_p10)
}
  0x19   :  { %s3548_s16 = scalar_lea.vmem %s37_s8, 256  ;;  %p3553_p12 = scmp.lt.s32.totalorder %s37_s8, %s37_s8 }
  0x1a   :  { %p3549_p11 = scmp.ne.s32.totalorder %s37_s8, %s3548_s16  ;;  %p3554_p13 = scmp.lt.s32.totalorder %s3548_s16, %s3548_s16 }
  0x1c   :  { %p3555_p0 = por %p3554_p13, %p3553_p12 }
  0x1e   :  { %p3556_p1 = pnand %p3555_p0, %p3549_p11 }
  0x20   :  { %3559 = shalt.err (!%p3556_p1)
}
  0x21   :  { %39 = dma.hbm_to_vmem [thread:$0]  %s4531_s4, 256, %s37_s8, [#allocation7]  }
  0x22   :  { %3560 = dma.done.wait [#allocation5], 2048  }
  0x23   :  { %3561 = vsyncadd [#allocation5], 4294965248 }
  0x24   :  { %3562 = dma.done.wait [#allocation7], 256  }
  0x25   :  { %3563 = vsyncadd [#allocation7], 4294967040  ;;  %v3568_v0 = vmov 3   ;;  %v3569_v1 = vmov 1   ;;  %v3570_v2 = vmov 0   ;;  %v54_v3 = vld [vmem:[%s4527_s0 + $0x20] sm:$0xff]  ;;  %v58_v25 = vlaneseq }
  0x26   :  { %3298 = vset.pattern.permute.xlu0 %v3568_v0  ;;  %3294 = vset.pattern.permute.xlu1 %v3569_v1  ;;  %v55_v4 = vld [vmem:[%s4527_s0 + $0x28] sm:$0xff]  ;;  %v3571_v5 = vmov 2   ;;  %v50_v7 = vld [vmem:[%s4527_s0] sm:$0xff]  ;;  %v3322_v10 = vld [vmem:[%s4529_s2 + $0x14] ss:$8 sps:$4 sm:$0xff]   ;;  %v3572_v31 = vmov 0.0  }
  0x27   :  { %432 = vmatprep.mubr.bf16.mxu1 %v3570_v2  ;;  %412 = vmatprep.mubr.bf16.mxu0 %v3570_v2  ;;  %v51_v6 = vld [vmem:[%s4527_s0 + $0x8] sm:$0xff]  ;;  %v3324_v11 = vld [vmem:[%s4529_s2 + $0x10] ss:$8 sps:$4 sm:$0xff]   ;;  %v3328_v16 = vld [vmem:[%s4529_s2 + $0x34] ss:$8 sps:$4 sm:$0xff]   ;;  %v3702_v28 = vand.u32 127, %v58_v25 }
  0x28   :  { %233 = vperm.xlu0 %3298, %v54_v3   ;;  %121 = vperm.xlu1 %3294, %v54_v3   ;;  %v3319_v8 = vld [vmem:[%s4529_s2 + $0x4] ss:$8 sps:$4 sm:$0xff]   ;;  %v3321_v9 = vld [vmem:[%s4529_s2] ss:$8 sps:$4 sm:$0xff]   ;;  %v56_v12 = vld [vmem:[%s4527_s0 + $0x30] sm:$0xff]  ;;  %vm367_vm8 = vcmask 523264  }
  0x29   :  { %3262 = vmatprep.subr.bf16.mxu1 %v3319_v8  ;;  %380 = vmatprep.subr.bf16.mxu0 %v3319_v8  ;;  %v3325_v13 = vld [vmem:[%s4529_s2 + $0x24] ss:$8 sps:$4 sm:$0xff]   ;;  %v3327_v14 = vld [vmem:[%s4529_s2 + $0x20] ss:$8 sps:$4 sm:$0xff]   ;;  %v57_v15 = vld [vmem:[%s4527_s0 + $0x38] sm:$0xff]  ;;  %s3573_s21 = smov 96  }
  0x2a   :  { %3266 = vmatpush1.bf16.msra.mxu1 %v3321_v9  ;;  %381 = vmatpush1.bf16.msra.mxu0 %v3321_v9  ;;  %v3330_v17 = vld [vmem:[%s4529_s2 + $0x30] ss:$8 sps:$4 sm:$0xff]   ;;  %v47_v18 = vld [vmem:[%s4528_s1] sm:$0xff]  ;;  %s3574_s8 = smov 32  }
  0x2b   :  { %3263 = vmatprep.subr.bf16.mxu1 %v3322_v10  ;;  %382 = vmatprep.subr.bf16.mxu0 %v3322_v10 }
  0x2c   :  { %3299 = vset.pattern.permute.xlu0 %v3571_v5  ;;  %124 = vperm.xlu1 %3294, %v55_v4  }
  0x2d   :  { %177 = vperm.xlu0 %3299, %v54_v3  }
  0x2e   :  { %3267 = vmatpush1.bf16.msra.mxu1 %v3324_v11  ;;  %383 = vmatpush1.bf16.msra.mxu0 %v3324_v11 }
  0x2f   :  { %3264 = vmatprep.subr.bf16.mxu1 %v3325_v13  ;;  %384 = vmatprep.subr.bf16.mxu0 %v3325_v13 }
  0x30   :  { %3295 = vset.pattern.permute.xlu1 %v3571_v5 }
  0x31   :  { %180 = vperm.xlu1 %3295, %v55_v4   ;;  %168 = vperm.xlu0 %3299, %v51_v6  }
  0x32   :  { %3268 = vmatpush1.bf16.msra.mxu1 %v3327_v14  ;;  %385 = vmatpush1.bf16.msra.mxu0 %v3327_v14 }
  0x33   :  { %3265 = vmatprep.subr.bf16.mxu1 %v3328_v16  ;;  %386 = vmatprep.subr.bf16.mxu0 %v3328_v16 }
  0x35   :  { %3296 = vset.pattern.permute.xlu1 %v3570_v2  ;;  %3302 = vset.pattern.permute.xlu0 %v3570_v2 }
  0x36   :  { %73 = vperm.xlu0 %3302, %v54_v3   ;;  %61 = vperm.xlu1 %3296, %v50_v7  }
  0x37   :  { %3269 = vmatpush1.bf16.msra.mxu1 %v3330_v17  ;;  %387 = vmatpush1.bf16.msra.mxu0 %v3330_v17 }
  0x3a   :  { %76 = vperm.xlu0 %3302, %v55_v4   ;;  %3297 = vset.pattern.permute.xlu1 %v3569_v1 }
  0x3b   :  { %109 = vperm.xlu1 %3297, %v50_v7  }
  0x3e   :  { %64 = vperm.xlu0 %3302, %v51_v6  }
  0x3f   :  { %112 = vperm.xlu1 %3297, %v51_v6  }
  0x42   :  { %79 = vperm.xlu0 %3302, %v56_v12  }
  0x43   :  { %3300 = vset.pattern.permute.xlu1 %v3568_v0 }
  0x44   :  { %236 = vperm.xlu1 %3300, %v55_v4  }
  0x46   :  { %3306 = vset.pattern.permute.xlu0 %v3569_v1 }
  0x47   :  { %130 = vperm.xlu0 %3306, %v57_v15  }
  0x48   :  { %3301 = vset.pattern.permute.xlu1 %v3571_v5 }
  0x49   :  { %165 = vperm.xlu1 %3301, %v50_v7  }
  0x4b   :  { %3308 = vset.pattern.permute.xlu0 %v3568_v0 }
  0x4c   :  { %239 = vperm.xlu0 %3308, %v56_v12  }
  0x4d   :  { %3303 = vset.pattern.permute.xlu1 %v3568_v0 }
  0x4e   :  { %221 = vperm.xlu1 %3303, %v50_v7  }
  0x50   :  { %300 = vperm.xlu0 %3308, %v47_v18  }
  0x52   :  { %224 = vperm.xlu1 %3303, %v51_v6  }
  0x54   :  { %3311 = vset.pattern.permute.xlu0 %v3570_v2 }
  0x56   :  { %3304 = vset.pattern.permute.xlu1 %v3570_v2 }
  0x57   :  { %82 = vperm.xlu1 %3304, %v57_v15  }
  0x5b   :  { %3305 = vset.pattern.permute.xlu1 %v3569_v1 }
  0x5c   :  { %127 = vperm.xlu1 %3305, %v56_v12  }
  0x60   :  { %3307 = vset.pattern.permute.xlu1 %v3571_v5 }
  0x61   :  { %183 = vperm.xlu1 %3307, %v56_v12  }
  0x65   :  { %186 = vperm.xlu1 %3307, %v57_v15  }
  0x69   :  { %3309 = vset.pattern.permute.xlu1 %v3568_v0 }
  0x6a   :  { %242 = vperm.xlu1 %3309, %v57_v15  }
  0x6e   :  { %3310 = vset.pattern.permute.xlu1 %v3571_v5 }
  0x6f   :  { %286 = vperm.xlu1 %3310, %v47_v18  }
  0x73   :  { %3312 = vset.pattern.permute.xlu1 %v3570_v2 }
  0xa7   :  { %v122_v19 = vpop.permute.xlu1 %121  ;;  %v234_v20 = vpop.permute.xlu0 %233 }
  0xa8   :  { %vm136_vm1 = vcmp.eq.s32.totalorder %v122_v19, %v3702_v28  ;;  %vm248_vm5 = vcmp.eq.s32.totalorder %v234_v20, %v3702_v28 }
  0xa9   :  { %v3149_v33 = vsel %vm136_vm1, 1.0, %v3572_v31  ;;  %v3165_v41 = vsel %vm248_vm5, 1.0, %v3572_v31 }
  0xab   :  { %v125_v21 = vpop.permute.xlu1 %124 }
  0xac   :  { %v178_v22 = vpop.permute.xlu0 %177  ;;  %vm137_vm3 = vcmp.eq.s32.totalorder %v125_v21, %v3702_v28 }
  0xad   :  { %vm192_vm4 = vcmp.eq.s32.totalorder %v178_v22, %v3702_v28  ;;  %v3150_v37 = vsel %vm137_vm3, 1.0, %v3572_v31 }
  0xae   :  { %v3157_v38 = vsel %vm192_vm4, 1.0, %v3572_v31 }
  0xb0   :  { %v181_v23 = vpop.permute.xlu1 %180  ;;  %v169_v24 = vpop.permute.xlu0 %168 }
  0xb1   :  { %vm193_vm6 = vcmp.eq.s32.totalorder %v181_v23, %v3702_v28  ;;  %vm189_vm12 = vcmp.eq.s32.totalorder %v169_v24, %v3702_v28 }
  0xb2   :  { %v3158_v42 = vsel %vm193_vm6, 1.0, %v3572_v31  ;;  %v3154_v56 = vsel %vm189_vm12, 1.0, %v3572_v31 }
  0xb5   :  { %v74_v26 = vpop.permute.xlu0 %73  ;;  %v62_v27 = vpop.permute.xlu1 %61 }
  0xb6   :  { %vm88_vm0 = vcmp.eq.s32.totalorder %v74_v26, %v3702_v28  ;;  %vm84_vm13 = vcmp.eq.s32.totalorder %v62_v27, %v3702_v28 }
  0xb7   :  { %v3141_v32 = vsel %vm88_vm0, 1.0, %v3572_v31  ;;  %v3137_v57 = vsel %vm84_vm13, 1.0, %v3572_v31 }
  0xb8   :  { %v160_v35 = vadd.f32 %v3149_v33, %v3141_v32 }
  0xb9   :  { %v77_v29 = vpop.permute.xlu0 %76 }
  0xba   :  { %vm89_vm2 = vcmp.eq.s32.totalorder %v77_v29, %v3702_v28  ;;  %v110_v30 = vpop.permute.xlu1 %109  ;;  %v216_v40 = vadd.f32 %v3157_v38, %v160_v35  ;;  %v3761_v35 = vshrl.u32 %v58_v25, 7 }
  0xbb   :  { %v3142_v34 = vsel %vm89_vm2, 1.0, %v3572_v31  ;;  %vm132_vm11 = vcmp.eq.s32.totalorder %v110_v30, %v3702_v28 }
  0xbc   :  { %v161_v39 = vadd.f32 %v3150_v37, %v3142_v34  ;;  %v272_v47 = vadd.f32 %v3165_v41, %v216_v40  ;;  %v3145_v53 = vsel %vm132_vm11, 1.0, %v3572_v31  ;;  %v291_v38 = vsub.s32 2, %v3761_v35  ;;  %v3771_v41 = vld [vmem:[#allocation6] sm:$0xff] }
  0xbd   :  { %v65_v45 = vpop.permute.xlu0 %64  ;;  %v156_v59 = vadd.f32 %v3145_v53, %v3137_v57  ;;  %v305_v40 = vsub.s32 3, %v3761_v35  ;;  %v321_v25 = vsub.s32 0, %v3761_v35  ;;  %v3790_v57 = vld [vmem:[#allocation6 + $0x8] sm:$0xff] }
  0xbe   :  { %v113_v36 = vpop.permute.xlu1 %112  ;;  %v217_v44 = vadd.f32 %v3158_v42, %v161_v39  ;;  %vm85_vm9 = vcmp.eq.s32.totalorder %v65_v45, %v3702_v28  ;;  %v292_v42 = vrot.slane %v3771_v41, %v291_v38 }
  0xbf   :  { %vm133_vm10 = vcmp.eq.s32.totalorder %v113_v36, %v3702_v28  ;;  %v3138_v51 = vsel %vm85_vm9, 1.0, %v3572_v31 }
  0xc0   :  { %v3146_v52 = vsel %vm133_vm10, 1.0, %v3572_v31  ;;  %vm579_vm10 = vcmask 261120  }
  0xc1   :  { %v157_v55 = vadd.f32 %v3146_v52, %v3138_v51  ;;  %v80_v9 = vpop.permute.xlu0 %79 }
  0xc2   :  { %vm90_vm2 = vcmp.eq.s32.totalorder %v80_v9, %v3702_v28 }
  0xc3   :  { %v237_v43 = vpop.permute.xlu1 %236  ;;  %v213_v63 = vadd.f32 %v3154_v56, %v157_v55  ;;  %v3143_v15 = vsel %vm90_vm2, 1.0, %v3572_v31 }
  0xc4   :  { %vm249_vm7 = vcmp.eq.s32.totalorder %v237_v43, %v3702_v28 }
  0xc5   :  { %v3166_v46 = vsel %vm249_vm7, 1.0, %v3572_v31 }
  0xc6   :  { %v273_v48 = vadd.f32 %v3166_v46, %v217_v44  ;;  %v131_v11 = vpop.permute.xlu0 %130  ;;  %v306_v44 = vrot.slane %v3771_v41, %v305_v40 }
  0xc7   :  { %vm139_vm3 = vcmp.eq.s32.totalorder %v131_v11, %v3702_v28 }
  0xc8   :  { %v317_v49 = vpack.c.bf16 %v273_v48, %v272_v47  ;;  %v166_v50 = vpop.permute.xlu1 %165  ;;  %v3152_v17 = vsel %vm139_vm3, 1.0, %v3572_v31  ;;  %v3777_v47 = vrot.slane %v3771_v41, %v321_v25  ;;  %vm3575_vm3 = vmmov 0  }
  0xc9   :  { %vm188_vm14 = vcmp.eq.s32.totalorder %v166_v50, %v3702_v28 }
  0xca   :  { %3179 = vmatmul.mubr.msk.bf16.vlgmr.msra.gmra.mrb[0].mxu1 %vm367_vm8, %v317_v49  ;;  %v3153_v58 = vsel %vm188_vm14, 1.0, %v3572_v31 }
  0xcb   :  { %442 = vmatprep.mubr.bf16.mxu1 %v3570_v2  ;;  %v212_v62 = vadd.f32 %v3153_v58, %v156_v59  ;;  %v240_v14 = vpop.permute.xlu0 %239  ;;  %v296_v58 = vrot.slane %v3790_v57, %v291_v38  ;;  %v310_v59 = vrot.slane %v3790_v57, %v305_v40  ;;  %v3861_v38 = vld [vmem:[%s4529_s2 + $0x54] ss:$8 sps:$4 sm:$0xff]   ;;  %v3867_v40 = vld [vmem:[%s4529_s2 + $0x50] ss:$8 sps:$4 sm:$0xff]  }
  0xcc   :  { %vm250_vm7 = vcmp.eq.s32.totalorder %v240_v14, %v3702_v28 }
  0xcd   :  { %v222_v54 = vpop.permute.xlu1 %221  ;;  %v3167_v24 = vsel %vm250_vm7, 1.0, %v3572_v31  ;;  %vm3120_vm7 = vcmp.eq.s32.totalorder %v3702_v28, 3 }
  0xce   :  { %vm244_vm15 = vcmp.eq.s32.totalorder %v222_v54, %v3702_v28 }
  0xcf   :  { %v3161_v60 = vsel %vm244_vm15, 1.0, %v3572_v31  ;;  %v301_v45 = vpop.permute.xlu0 %300 }
  0xd0   :  { %v268_v4 = vadd.f32 %v3161_v60, %v212_v62  ;;  %v311_v48 = vmul.f32 %v306_v44, %v301_v45 }
  0xd1   :  { %v225_v61 = vpop.permute.xlu1 %224 }
  0xd2   :  { %vm245_vm0 = vcmp.eq.s32.totalorder %v225_v61, %v3702_v28 }
  0xd3   :  { %v3162_v3 = vsel %vm245_vm0, 1.0, %v3572_v31 }
  0xd4   :  { %v269_v6 = vadd.f32 %v3162_v3, %v213_v63  ;;  %v3799_v63 = vrot.slane %v3790_v57, %v321_v25  ;;  %v312_v3 = vmul.f32 %v310_v59, %v301_v45  ;;  %v3877_v45 = vld [vmem:[%s4529_s2 + $0x80] ss:$8 sps:$4 sm:$0xff]  }
  0xd6   :  { %v315_v7 = vpack.c.bf16 %v269_v6, %v268_v4  ;;  %v83_v8 = vpop.permute.xlu1 %82 }
  0xd7   :  { %vm91_vm4 = vcmp.eq.s32.totalorder %v83_v8, %v3702_v28 }
  0xd8   :  { %3177 = vmatmul.mubr.msk.bf16.vlgmr.msra.gmra.mrb[0].mxu0 %vm367_vm8, %v315_v7  ;;  %v3144_v18 = vsel %vm91_vm4, 1.0, %v3572_v31 }
  0xd9   :  { %422 = vmatprep.mubr.bf16.mxu0 %v3570_v2  ;;  %v163_v22 = vadd.f32 %v3152_v17, %v3144_v18 }
  0xdb   :  { %v128_v10 = vpop.permute.xlu1 %127 }
  0xdc   :  { %vm138_vm1 = vcmp.eq.s32.totalorder %v128_v10, %v3702_v28 }
  0xdd   :  { %v3151_v13 = vsel %vm138_vm1, 1.0, %v3572_v31 }
  0xde   :  { %v162_v20 = vadd.f32 %v3151_v13, %v3143_v15 }
  0xe0   :  { %v184_v12 = vpop.permute.xlu1 %183 }
  0xe1   :  { %vm194_vm5 = vcmp.eq.s32.totalorder %v184_v12, %v3702_v28 }
  0xe2   :  { %v3159_v19 = vsel %vm194_vm5, 1.0, %v3572_v31  ;;  %vm3072_vm5 = vcmask 7168  }
  0xe3   :  { %v218_v23 = vadd.f32 %v3159_v19, %v162_v20  ;;  %v3818_v20 = vld [vmem:[%s4529_s2 + $0x64] ss:$8 sps:$4 sm:$0xff]  }
  0xe4   :  { %v187_v16 = vpop.permute.xlu1 %186  ;;  %583 = vmatprep.subr.bf16.mxu1 %v3818_v20 }
  0xe5   :  { %vm195_vm6 = vcmp.eq.s32.totalorder %v187_v16, %v3702_v28  ;;  %v274_v30 = vadd.f32 %v3167_v24, %v218_v23  ;;  %v3835_v23 = vld [vmem:[%s4529_s2 + $0x70] ss:$8 sps:$4 sm:$0xff]  }
  0xe6   :  { %v3160_v21 = vsel %vm195_vm6, 1.0, %v3572_v31 }
  0xe7   :  { %v219_v27 = vadd.f32 %v3160_v21, %v163_v22  ;;  %v3823_v21 = vld [vmem:[%s4529_s2 + $0x60] ss:$8 sps:$4 sm:$0xff]   ;;  %v3828_v22 = vld [vmem:[%s4529_s2 + $0x74] ss:$8 sps:$4 sm:$0xff]  }
  0xe8   :  { %584 = vmatpush1.bf16.msra.mxu1 %v3823_v21 }
  0xe9   :  { %v243_v26 = vpop.permute.xlu1 %242  ;;  %585 = vmatprep.subr.bf16.mxu1 %v3828_v22 }
  0xea   :  { %vm251_vm9 = vcmp.eq.s32.totalorder %v243_v26, %v3702_v28  ;;  %v3843_v26 = vld [vmem:[%s4529_s2 + $0x84] ss:$8 sps:$4 sm:$0xff]  }
  0xeb   :  { %v3168_v29 = vsel %vm251_vm9, 1.0, %v3572_v31  ;;  %vm3127_vm9 = vcmp.eq.s32.totalorder %v3702_v28, 4 }
  0xec   :  { %v275_v32 = vadd.f32 %v3168_v29, %v219_v27  ;;  %586 = vmatpush1.bf16.msra.mxu1 %v3835_v23 }
  0xed   :  { %651 = vmatprep.subr.bf16.mxu1 %v3843_v26 }
  0xee   :  { %v318_v33 = vpack.c.bf16 %v275_v32, %v274_v30  ;;  %v287_v43 = vpop.permute.xlu1 %286  ;;  %v3850_v32 = vld [vmem:[%s4529_s2 + $0x44] ss:$8 sps:$4 sm:$0xff]  }
  0xef   :  { %v297_v46 = vmul.f32 %v292_v42, %v287_v43  ;;  %v298_v60 = vmul.f32 %v296_v58, %v287_v43  ;;  %941 = vmatprep.subr.bf16.mxu0 %v3850_v32 }
  0xf0   :  { %3180 = vmatmul.mubr.msk.bf16.gmra.mrb[4].mxu1 %vm367_vm8, %v318_v33  ;;  %v3855_v33 = vld [vmem:[%s4529_s2 + $0x40] ss:$8 sps:$4 sm:$0xff]  }
  0xf1   :  { %615 = vmatprep.mubr.bf16.mxu1 %v3570_v2  ;;  %v3779_v50 = vadd.f32 %v311_v48, %v297_v46  ;;  %v3803_v7 = vadd.f32 %v312_v3, %v298_v60  ;;  %942 = vmatpush1.bf16.msra.mxu0 %v3855_v33  ;;  %v3882_v46 = vld [vmem:[%s4529_s2 + $0x94] ss:$8 sps:$4 sm:$0xff]  }
  0xf2   :  { %943 = vmatprep.subr.bf16.mxu0 %v3861_v38 }
  0xf5   :  { %944 = vmatpush1.bf16.msra.mxu0 %v3867_v40 }
  0xf6   :  { %1079 = vmatprep.subr.bf16.mxu0 %v3843_v26 }
 0x19d   :  { %v3758_v34 = vpop.f32.mrb[0].mxu1 }
 0x19e   :  { %v3763_v36 = vpop.f32.mrb[1].mxu1 }
 0x19f   :  { %v3765_v37 = vpop.f32.mrb[2].mxu1 }
 0x1a0   :  { %v3768_v39 = vpop.f32.mrb[3].mxu1 }
 0x1ab   :  { %v414_v49 = vpop.f32.mrb[0].mxu0 }
 0x1ac   :  { %v415_v51 = vadd.f32 %v414_v49, %v3777_v47  ;;  %v3782_v52 = vpop.f32.mrb[1].mxu0  ;;  %v3889_v49 = vld [vmem:[%s4529_s2 + $0x90] ss:$8 sps:$4 sm:$0xff]  }
 0x1ad   :  { %v3784_v53 = vpop.f32.mrb[2].mxu0 }
 0x1ae   :  { %v453_v54 = vadd.f32 %v415_v51, %v3779_v50  ;;  %v3787_v55 = vpop.f32.mrb[3].mxu0  ;;  %v419_v60 = vadd.f32 %v3784_v53, %v3777_v47 }
 0x1b0   :  { %3371 = vtanh.f32 %v453_v54 }
 0x1ba   :  { %v3372_v56 = vpop.eup %3371 }
 0x1bb   :  { %535 = vrot.lane.b32.xlu1 %v3372_v56, %s3565_s28  ;;  %v529_v11 = vmul.f32 0.5, %v3372_v56 }
 0x1bd   :  { %v531_v12 = vadd.f32 0.5, %v529_v11 }
 0x1c3   :  { %v3794_v61 = vpop.f32.mrb[4].mxu1 }
 0x1c4   :  { %v3796_v62 = vpop.f32.mrb[5].mxu1 }
 0x1c5   :  { %v3801_v4 = vpop.f32.mrb[6].mxu1 }
 0x1c6   :  { %v450_v6 = vpop.f32.mrb[7].mxu1 }
 0x1c7   :  { %v451_v8 = vadd.f32 %v450_v6, %v3799_v63  ;;  %v447_v6 = vadd.f32 %v3796_v62, %v3799_v63 }
 0x1c9   :  { %v468_v9 = vadd.f32 %v451_v8, %v3803_v7  ;;  %v455_v8 = vadd.f32 %v419_v60, %v3779_v50 }
 0x1cb   :  { %3373 = vtanh.f32 %v468_v9 }
 0x1d5   :  { %v3374_v10 = vpop.eup %3373 }
 0x1d6   :  { %537 = vrot.lane.b32.xlu0 %v3374_v10, %s3565_s28  ;;  %v530_v16 = vmul.f32 0.5, %v3374_v10 }
 0x1d8   :  { %v532_v17 = vadd.f32 0.5, %v530_v16 }
 0x22d   :  { %v536_v13 = vpop.permute.xlu1 %535 }
 0x22e   :  { %v3808_v14 = vmul.f32 %v536_v13, %v531_v12  ;;  %v466_v13 = vadd.f32 %v447_v6, %v3803_v7  ;;  %v52_v6 = vld [vmem:[%s4527_s0 + $0x10] sm:$0xff] }
 0x230   :  { %3375 = vtanh.f32 %v3808_v14 }
 0x23a   :  { %v3376_v15 = vpop.eup %3375 }
 0x23b   :  { %547 = vrot.lane.b32.xlu1 %v3376_v15, %s3573_s21 }
 0x248   :  { %v538_v18 = vpop.permute.xlu0 %537 }
 0x249   :  { %v3812_v19 = vmul.f32 %v538_v18, %v532_v17 }
 0x24b   :  { %3377 = vtanh.f32 %v3812_v19 }
 0x255   :  { %v3378_v24 = vpop.eup %3377 }
 0x256   :  { %549 = vrot.lane.b32.xlu0 %v3378_v24, %s3573_s21 }
 0x2ad   :  { %v548_v27 = vpop.permute.xlu1 %547 }
 0x2ae   :  { %v553_v29 = vmul.f32 %v548_v27, %v531_v12 }
 0x2b0   :  { %v555_v30 = vpack.c.bf16 %v553_v29, %v553_v29 }
 0x2b2   :  { %557 = vrot.lane.b32.xlu1 %v555_v30, %s3574_s8 }
 0x2c8   :  { %v550_v42 = vpop.permute.xlu0 %549 }
 0x2c9   :  { %v554_v43 = vmul.f32 %v550_v42, %v532_v17 }
 0x2cb   :  { %v624_v44 = vpack.c.bf16 %v554_v43, %v554_v43  ;;  %v706_v25 = vpack.c.bf16 %v554_v43, %v553_v29 }
 0x2cd   :  { %626 = vrot.lane.b32.xlu0 %v624_v44, %s3574_s8  ;;  %708 = vrot.lane.b32.xlu1 %v706_v25, %s3574_s8 }
 0x324   :  { %v558_v48 = vpop.permute.xlu1 %557 }
 0x325   :  { %3185 = vmatmul.mubr.msk.bf16.vlgmr.msra.gmra.mrb[8].mxu1 %vm579_vm10, %v558_v48 }
 0x326   :  { %652 = vmatpush1.bf16.msra.mxu1 %v3877_v45  ;;  %683 = vmatprep.mubr.bf16.mxu1 %v3570_v2 }
 0x327   :  { %653 = vmatprep.subr.bf16.mxu1 %v3882_v46 }
 0x32a   :  { %654 = vmatpush1.bf16.msra.mxu1 %v3889_v49 }
 0x32b   :  { %733 = vmatprep.subr.bf16.mxu1 %v3850_v32 }
 0x33f   :  { %v627_v51 = vpop.permute.xlu0 %626  ;;  %v709_v54 = vpop.permute.xlu1 %708 }
 0x340   :  { %3190 = vmatmul.mubr.msk.bf16.vlgmr.msra.gmra.mrb[12].mxu1 %vm579_vm10, %v627_v51 }
 0x341   :  { %734 = vmatpush1.bf16.msra.mxu1 %v3855_v33  ;;  %765 = vmatprep.mubr.bf16.mxu1 %v3570_v2 }
 0x342   :  { %735 = vmatprep.subr.bf16.mxu1 %v3861_v38 }
 0x345   :  { %736 = vmatpush1.bf16.msra.mxu1 %v3867_v40 }
 0x346   :  { %831 = vmatprep.subr.bf16.mxu1 %v3818_v20 }
 0x348   :  { %3195 = vmatmul.mubr.msk.bf16.vlgmr.msra.gmra.mrb[16].mxu1 %vm579_vm10, %v709_v54 }
 0x349   :  { %832 = vmatpush1.bf16.msra.mxu1 %v3823_v21  ;;  %863 = vmatprep.mubr.bf16.mxu1 %v3570_v2 }
 0x34a   :  { %833 = vmatprep.subr.bf16.mxu1 %v3828_v22 }
 0x34d   :  { %834 = vmatpush1.bf16.msra.mxu1 %v3835_v23 }
 0x34e   :  { %879 = vmatprep.subr.bf16.mxu1 %v3843_v26 }
 0x413   :  { %v3907_v56 = vpop.f32.mrb[12].mxu1 }
 0x414   :  { %v3909_v58 = vpop.f32.mrb[13].mxu1 }
 0x415   :  { %v689_v59 = vpop.f32.mrb[14].mxu1 }
 0x416   :  { %v690_v3 = vpop.f32.mrb[15].mxu1 }
 0x41b   :  { %v767_v9 = vpop.f32.mrb[16].mxu1 }
 0x41c   :  { %v774_v10 = vadd.f32 %v767_v9, %v455_v8  ;;  %v769_v11 = vpop.f32.mrb[17].mxu1  ;;  %v53_v8 = vld [vmem:[%s4527_s0 + $0x18] sm:$0xff] }
 0x41d   :  { %v770_v12 = vpop.f32.mrb[18].mxu1 }
 0x41e   :  { %3379 = vtanh.f32 %v774_v10  ;;  %v771_v15 = vpop.f32.mrb[19].mxu1 }
 0x41f   :  { %v775_v16 = vadd.f32 %v771_v15, %v466_v13 }
 0x421   :  { %3381 = vtanh.f32 %v775_v16 }
 0x428   :  { %v3380_v17 = vpop.eup %3379 }
 0x429   :  { %794 = vrot.lane.b32.xlu0 %v3380_v17, %s3565_s28  ;;  %v778_v62 = vmul.f32 0.5, %v3380_v17 }
 0x42b   :  { %v3382_v53 = vpop.eup %3381  ;;  %v780_v24 = vadd.f32 0.5, %v778_v62 }
 0x42c   :  { %796 = vrot.lane.b32.xlu1 %v3382_v53, %s3565_s28  ;;  %v779_v18 = vmul.f32 0.5, %v3382_v53 }
 0x42d   :  { %784 = vrot.lane.b32.xlu0 %v3808_v14, %s3574_s8 }
 0x42e   :  { %v781_v30 = vadd.f32 0.5, %v779_v18 }
 0x430   :  { %786 = vrot.lane.b32.xlu1 %v3812_v19, %s3574_s8 }
 0x49b   :  { %v795_v27 = vpop.permute.xlu0 %794 }
 0x49c   :  { %v800_v29 = vmul.f32 %v795_v27, %v780_v24 }
 0x49e   :  { %804 = vrot.lane.b32.xlu0 %v800_v29, %s3574_s8  ;;  %v797_v42 = vpop.permute.xlu1 %796 }
 0x49f   :  { %v801_v43 = vmul.f32 %v797_v42, %v781_v30  ;;  %v785_v44 = vpop.permute.xlu0 %784 }
 0x4a0   :  { %v790_v25 = vmul.f32 %v785_v44, %v780_v24 }
 0x4a1   :  { %806 = vrot.lane.b32.xlu1 %v801_v43, %s3574_s8 }
 0x4a2   :  { %v787_v48 = vpop.permute.xlu1 %786 }
 0x4a3   :  { %v791_v54 = vmul.f32 %v787_v48, %v781_v30 }
 0x510   :  { %v805_v51 = vpop.permute.xlu0 %804 }
 0x511   :  { %v3925_v14 = vadd.f32 %v805_v51, %v790_v25 }
 0x513   :  { %3383 = vtanh.f32 %v3925_v14  ;;  %v807_v19 = vpop.permute.xlu1 %806 }
 0x514   :  { %v3928_v59 = vadd.f32 %v807_v19, %v791_v54 }
 0x516   :  { %3385 = vtanh.f32 %v3928_v59 }
 0x51d   :  { %v3384_v60 = vpop.eup %3383 }
 0x51e   :  { %816 = vrot.lane.b32.xlu0 %v3384_v60, %s3565_s28 }
 0x520   :  { %v3386_v3 = vpop.eup %3385 }
 0x521   :  { %818 = vrot.lane.b32.xlu1 %v3386_v3, %s3565_s28 }
 0x522   :  { %67 = vperm.xlu0 %3311, %v52_v6  }
 0x525   :  { %70 = vperm.xlu1 %3312, %v53_v8  }
 0x526   :  { %3314 = vset.pattern.permute.xlu0 %v3569_v1 }
 0x527   :  { %118 = vperm.xlu0 %3314, %v53_v8  }
 0x529   :  { %3313 = vset.pattern.permute.xlu1 %v3569_v1 }
 0x52a   :  { %115 = vperm.xlu1 %3313, %v52_v6  }
 0x52b   :  { %3316 = vset.pattern.permute.xlu0 %v3568_v0 }
 0x52c   :  { %227 = vperm.xlu0 %3316, %v52_v6  }
 0x52e   :  { %3315 = vset.pattern.permute.xlu1 %v3571_v5 }
 0x52f   :  { %171 = vperm.xlu1 %3315, %v52_v6  }
 0x530   :  { %3318 = vset.pattern.permute.xlu0 %v3570_v2 }
 0x533   :  { %174 = vperm.xlu1 %3315, %v53_v8  }
 0x537   :  { %3317 = vset.pattern.permute.xlu1 %v3568_v0 }
 0x538   :  { %230 = vperm.xlu1 %3317, %v53_v8  }
 0x590   :  { %v817_v9 = vpop.permute.xlu0 %816 }
 0x591   :  { %v3945_v11 = vmul.f32 %v817_v9, %v780_v24 }
 0x593   :  { %v819_v10 = vpop.permute.xlu1 %818 }
 0x594   :  { %v3947_v12 = vmul.f32 %v819_v10, %v781_v30 }
 0x596   :  { %v934_v1 = vpack.c.bf16 %v3947_v12, %v3945_v11 }
 0x598   :  { %936 = vrot.lane.b32.xlu1 %v934_v1, %s3574_s8 }
 0x5a1   :  { %v68_v13 = vpop.permute.xlu0 %67 }
 0x5a2   :  { %vm86_vm12 = vcmp.eq.s32.totalorder %v68_v13, %v3702_v28 }
 0x5a3   :  { %v3139_v17 = vsel %vm86_vm12, 1.0, %v3572_v31 }
 0x5a4   :  { %v71_v5 = vpop.permute.xlu1 %70 }
 0x5a5   :  { %vm87_vm13 = vcmp.eq.s32.totalorder %v71_v5, %v3702_v28  ;;  %v441_v5 = vadd.f32 %v3768_v39, %v3799_v63 }
 0x5a6   :  { %v119_v16 = vpop.permute.xlu0 %118  ;;  %v3140_v62 = vsel %vm87_vm13, 1.0, %v3572_v31 }
 0x5a7   :  { %vm135_vm14 = vcmp.eq.s32.totalorder %v119_v16, %v3702_v28 }
 0x5a8   :  { %v3148_v18 = vsel %vm135_vm14, 1.0, %v3572_v31 }
 0x5a9   :  { %v116_v15 = vpop.permute.xlu1 %115  ;;  %v159_v30 = vadd.f32 %v3148_v18, %v3140_v62  ;;  %v464_v62 = vadd.f32 %v441_v5, %v3803_v7 }
 0x5aa   :  { %vm134_vm11 = vcmp.eq.s32.totalorder %v116_v15, %v3702_v28 }
 0x5ab   :  { %v3147_v0 = vsel %vm134_vm11, 1.0, %v3572_v31  ;;  %v228_v24 = vpop.permute.xlu0 %227 }
 0x5ac   :  { %v158_v27 = vadd.f32 %v3147_v0, %v3139_v17  ;;  %vm246_vm0 = vcmp.eq.s32.totalorder %v228_v24, %v3702_v28 }
 0x5ad   :  { %v3163_v25 = vsel %vm246_vm0, 1.0, %v3572_v31 }
 0x5ae   :  { %v172_v53 = vpop.permute.xlu1 %171 }
 0x5af   :  { %vm190_vm15 = vcmp.eq.s32.totalorder %v172_v53, %v3702_v28 }
 0x5b0   :  { %v3155_v29 = vsel %vm190_vm15, 1.0, %v3572_v31 }
 0x5b1   :  { %v214_v43 = vadd.f32 %v3155_v29, %v158_v27 }
 0x5b2   :  { %v175_v42 = vpop.permute.xlu1 %174 }
 0x5b3   :  { %vm191_vm1 = vcmp.eq.s32.totalorder %v175_v42, %v3702_v28  ;;  %v270_v54 = vadd.f32 %v3163_v25, %v214_v43 }
 0x5b4   :  { %v3156_v44 = vsel %vm191_vm1, 1.0, %v3572_v31 }
 0x5b5   :  { %v215_v48 = vadd.f32 %v3156_v44, %v159_v30 }
 0x5b7   :  { %v231_v51 = vpop.permute.xlu1 %230 }
 0x5b8   :  { %vm247_vm2 = vcmp.eq.s32.totalorder %v231_v51, %v3702_v28 }
 0x5b9   :  { %v3164_v19 = vsel %vm247_vm2, 1.0, %v3572_v31 }
 0x5ba   :  { %v271_v60 = vadd.f32 %v3164_v19, %v215_v48 }
 0x5bc   :  { %v316_v3 = vpack.c.bf16 %v271_v60, %v270_v54 }
 0x5be   :  { %3178 = vmatmul.mubr.msk.bf16.gmra.mrb[4].mxu0 %vm367_vm8, %v316_v3 }
 0x5bf   :  { %973 = vmatprep.mubr.bf16.mxu0 %v3570_v2 }
 0x60a   :  { %v937_v6 = vpop.permute.xlu1 %936 }
 0x60b   :  { %3198 = vmatmul.mubr.msk.bf16.vlgmr.msra.gmra.mrb[8].mxu0 %vm579_vm10, %v937_v6 }
 0x60c   :  { %1080 = vmatpush1.bf16.msra.mxu0 %v3877_v45  ;;  %1111 = vmatprep.mubr.bf16.mxu0 %v3570_v2 }
 0x60d   :  { %1081 = vmatprep.subr.bf16.mxu0 %v3882_v46 }
 0x610   :  { %1082 = vmatpush1.bf16.msra.mxu0 %v3889_v49 }
 0x611   :  { %1231 = vmatprep.subr.bf16.mxu0 %v3818_v20 }
 0x691   :  { %v424_v8 = vpop.f32.mrb[4].mxu0 }
 0x692   :  { %v3976_v9 = vpop.f32.mrb[5].mxu0  ;;  %v425_v13 = vadd.f32 %v424_v8, %v3777_v47 }
 0x693   :  { %v3978_v10 = vpop.f32.mrb[6].mxu0 }
 0x694   :  { %v3980_v1 = vpop.f32.mrb[7].mxu0  ;;  %v457_v15 = vadd.f32 %v425_v13, %v3779_v50 }
 0x6de   :  { %v975_v16 = vpop.f32.mrb[8].mxu0 }
 0x6df   :  { %v982_v0 = vadd.f32 %v975_v16, %v457_v15  ;;  %v977_v17 = vpop.f32.mrb[9].mxu0  ;;  %v824_v15 = vpack.c.bf16 %v3945_v11, %v3945_v11 }
 0x6e0   :  { %v978_v53 = vpop.f32.mrb[10].mxu0 }
 0x6e1   :  { %3387 = vtanh.f32 %v982_v0  ;;  %v979_v18 = vpop.f32.mrb[11].mxu0 }
 0x6e2   :  { %v983_v24 = vadd.f32 %v979_v18, %v464_v62 }
 0x6e4   :  { %3389 = vtanh.f32 %v983_v24 }
 0x6eb   :  { %v3388_v27 = vpop.eup %3387 }
 0x6ec   :  { %994 = vrot.lane.b32.xlu0 %v3388_v27, %s3565_s28  ;;  %v986_v30 = vmul.f32 0.5, %v3388_v27 }
 0x6ee   :  { %v3390_v29 = vpop.eup %3389  ;;  %v988_v42 = vadd.f32 0.5, %v986_v30 }
 0x6ef   :  { %996 = vrot.lane.b32.xlu1 %v3390_v29, %s3565_s28  ;;  %v987_v39 = vmul.f32 0.5, %v3390_v29 }
 0x6f0   :  { %v990_v54 = vmul.f32 %v988_v42, %v3925_v14  ;;  %v872_v14 = vpack.c.bf16 %v3947_v12, %v3947_v12 }
 0x6f1   :  { %v989_v25 = vadd.f32 0.5, %v987_v39 }
 0x6f3   :  { %v991_v3 = vmul.f32 %v989_v25, %v3928_v59 }
 0x75e   :  { %v995_v43 = vpop.permute.xlu0 %994 }
 0x75f   :  { %v1000_v44 = vmul.f32 %v995_v43, %v988_v42 }
 0x761   :  { %1004 = vrot.lane.b32.xlu0 %v1000_v44, %s3574_s8  ;;  %v997_v48 = vpop.permute.xlu1 %996 }
 0x762   :  { %v1001_v51 = vmul.f32 %v997_v48, %v989_v25 }
 0x764   :  { %1006 = vrot.lane.b32.xlu1 %v1001_v51, %s3574_s8 }
 0x7d3   :  { %v1005_v19 = vpop.permute.xlu0 %1004 }
 0x7d4   :  { %v3992_v60 = vadd.f32 %v1005_v19, %v990_v54  ;;  %v429_v19 = vadd.f32 %v3978_v10, %v3777_v47 }
 0x7d6   :  { %3391 = vtanh.f32 %v3992_v60  ;;  %v1007_v6 = vpop.permute.xlu1 %1006 }
 0x7d7   :  { %v3996_v8 = vadd.f32 %v1007_v6, %v991_v3  ;;  %v437_v6 = vadd.f32 %v3763_v36, %v3799_v63 }
 0x7d9   :  { %3393 = vtanh.f32 %v3996_v8 }
 0x7e0   :  { %v3392_v13 = vpop.eup %3391 }
 0x7e1   :  { %1016 = vrot.lane.b32.xlu0 %v3392_v13, %s3565_s28  ;;  %v459_v13 = vadd.f32 %v429_v19, %v3779_v50 }
 0x7e3   :  { %v3394_v5 = vpop.eup %3393 }
 0x7e4   :  { %1018 = vrot.lane.b32.xlu1 %v3394_v5, %s3565_s28 }
 0x7e5   :  { %826 = vrot.lane.b32.xlu0 %v824_v15, %s3574_s8 }
 0x7e8   :  { %874 = vrot.lane.b32.xlu1 %v872_v14, %s3574_s8 }
 0x853   :  { %v1017_v59 = vpop.permute.xlu0 %1016 }
 0x854   :  { %v1022_v16 = vmul.f32 %v1017_v59, %v988_v42 }
 0x856   :  { %v1024_v0 = vpack.c.bf16 %v1022_v16, %v1022_v16  ;;  %v1019_v17 = vpop.permute.xlu1 %1018 }
 0x857   :  { %v4007_v53 = vmul.f32 %v1019_v17, %v989_v25  ;;  %v827_v62 = vpop.permute.xlu0 %826 }
 0x858   :  { %1026 = vrot.lane.b32.xlu0 %v1024_v0, %s3574_s8  ;;  %3196 = vmatmul.mubr.msk.bf16.vlgmr.msra.gmra.mrb[20].mxu1 %vm579_vm10, %v827_v62 }
 0x859   :  { %v1134_v11 = vpack.c.bf16 %v4007_v53, %v1022_v16  ;;  %880 = vmatpush1.bf16.msra.mxu1 %v3877_v45  ;;  %911 = vmatprep.mubr.bf16.mxu1 %v3570_v2  ;;  %v462_v16 = vadd.f32 %v437_v6, %v3803_v7 }
 0x85a   :  { %881 = vmatprep.subr.bf16.mxu1 %v3882_v46  ;;  %v875_v12 = vpop.permute.xlu1 %874 }
 0x85b   :  { %1136 = vrot.lane.b32.xlu1 %v1134_v11, %s3574_s8 }
 0x85d   :  { %882 = vmatpush1.bf16.msra.mxu1 %v3889_v49 }
 0x85e   :  { %1031 = vmatprep.subr.bf16.mxu1 %v3818_v20 }
 0x860   :  { %3197 = vmatmul.mubr.msk.bf16.vlgmr.msra.gmra.mrb[24].mxu1 %vm579_vm10, %v875_v12 }
 0x861   :  { %1032 = vmatpush1.bf16.msra.mxu1 %v3823_v21  ;;  %1063 = vmatprep.mubr.bf16.mxu1 %v3570_v2 }
 0x862   :  { %1033 = vmatprep.subr.bf16.mxu1 %v3828_v22 }
 0x865   :  { %1034 = vmatpush1.bf16.msra.mxu1 %v3835_v23 }
 0x866   :  { %1141 = vmatprep.subr.bf16.mxu1 %v3850_v32 }
 0x8ca   :  { %v1027_v18 = vpop.permute.xlu0 %1026 }
 0x8cb   :  { %3199 = vmatmul.mubr.msk.bf16.vlgmr.msra.gmra.mrb[28].mxu1 %vm579_vm10, %v1027_v18 }
 0x8cc   :  { %1142 = vmatpush1.bf16.msra.mxu1 %v3855_v33  ;;  %1173 = vmatprep.mubr.bf16.mxu1 %v3570_v2 }
 0x8cd   :  { %1143 = vmatprep.subr.bf16.mxu1 %v3861_v38  ;;  %v1137_v24 = vpop.permute.xlu1 %1136 }
 0x8d0   :  { %1144 = vmatpush1.bf16.msra.mxu1 %v3867_v40 }
 0x8d1   :  { %1279 = vmatprep.subr.bf16.mxu1 %v3843_v26 }
 0x8d3   :  { %3201 = vmatmul.mubr.msk.bf16.vlgmr.msra.gmra.mrb[32].mxu1 %vm579_vm10, %v1137_v24 }
 0x8d4   :  { %1280 = vmatpush1.bf16.msra.mxu1 %v3877_v45  ;;  %1311 = vmatprep.mubr.bf16.mxu1 %v3570_v2 }
 0x8d5   :  { %1281 = vmatprep.subr.bf16.mxu1 %v3882_v46 }
 0x8d8   :  { %1282 = vmatpush1.bf16.msra.mxu1 %v3889_v49 }
 0x8d9   :  { %1431 = vmatprep.subr.bf16.mxu1 %v3818_v20 }
 0x92b   :  { %v4036_v27 = vpop.f32.mrb[20].mxu1 }
 0x92c   :  { %v4038_v29 = vpop.f32.mrb[21].mxu1 }
 0x92d   :  { %v869_v30 = vpop.f32.mrb[22].mxu1 }
 0x92e   :  { %v870_v39 = vpop.f32.mrb[23].mxu1 }
 0x933   :  { %v4040_v42 = vpop.f32.mrb[24].mxu1 }
 0x934   :  { %v4042_v43 = vpop.f32.mrb[25].mxu1 }
 0x935   :  { %v917_v44 = vpop.f32.mrb[26].mxu1 }
 0x936   :  { %v918_v25 = vpop.f32.mrb[27].mxu1 }
 0x99e   :  { %v4044_v48 = vpop.f32.mrb[28].mxu1 }
 0x99f   :  { %v4046_v51 = vpop.f32.mrb[29].mxu1 }
 0x9a0   :  { %v1069_v54 = vpop.f32.mrb[30].mxu1 }
 0x9a1   :  { %v1070_v3 = vpop.f32.mrb[31].mxu1 }
 0x9a6   :  { %v1175_v5 = vpop.f32.mrb[32].mxu1 }
 0x9a7   :  { %v1182_v15 = vadd.f32 %v1175_v5, %v459_v13  ;;  %v1177_v14 = vpop.f32.mrb[33].mxu1 }
 0x9a8   :  { %v1178_v59 = vpop.f32.mrb[34].mxu1  ;;  %v1072_v14 = vpack.c.bf16 %v4007_v53, %v4007_v53 }
 0x9a9   :  { %3395 = vtanh.f32 %v1182_v15  ;;  %v1179_v0 = vpop.f32.mrb[35].mxu1 }
 0x9aa   :  { %v1183_v17 = vadd.f32 %v1179_v0, %v462_v16 }
 0x9ac   :  { %3397 = vtanh.f32 %v1183_v17 }
 0x9b3   :  { %v3396_v62 = vpop.eup %3395 }
 0x9b4   :  { %1194 = vrot.lane.b32.xlu0 %v3396_v62, %s3565_s28  ;;  %v1186_v11 = vmul.f32 0.5, %v3396_v62 }
 0x9b6   :  { %v3398_v10 = vpop.eup %3397  ;;  %v1188_v12 = vadd.f32 0.5, %v1186_v11 }
 0x9b7   :  { %1196 = vrot.lane.b32.xlu1 %v3398_v10, %s3565_s28  ;;  %v1187_v36 = vmul.f32 0.5, %v3398_v10 }
 0x9b8   :  { %v1190_v25 = vmul.f32 %v1188_v12, %v3992_v60 }
 0x9b9   :  { %v1189_v30 = vadd.f32 0.5, %v1187_v36 }
 0x9bb   :  { %v1191_v3 = vmul.f32 %v1189_v30, %v3996_v8 }
 0xa26   :  { %v1195_v18 = vpop.permute.xlu0 %1194 }
 0xa27   :  { %v1200_v24 = vmul.f32 %v1195_v18, %v1188_v12 }
 0xa29   :  { %1204 = vrot.lane.b32.xlu0 %v1200_v24, %s3574_s8  ;;  %v1197_v39 = vpop.permute.xlu1 %1196 }
 0xa2a   :  { %v1201_v44 = vmul.f32 %v1197_v39, %v1189_v30 }
 0xa2c   :  { %1206 = vrot.lane.b32.xlu1 %v1201_v44, %s3574_s8  ;;  %v435_v44 = vadd.f32 %v3758_v34, %v3777_v47 }
 0xa9b   :  { %v1205_v54 = vpop.permute.xlu0 %1204 }
 0xa9c   :  { %v4059_v19 = vadd.f32 %v1205_v54, %v1190_v25  ;;  %v431_v54 = vadd.f32 %v3980_v1, %v3799_v63 }
 0xa9e   :  { %3399 = vtanh.f32 %v4059_v19  ;;  %v1207_v6 = vpop.permute.xlu1 %1206 }
 0xa9f   :  { %v4063_v13 = vadd.f32 %v1207_v6, %v1191_v3  ;;  %v461_v3 = vadd.f32 %v435_v44, %v3779_v50 }
 0xaa1   :  { %3401 = vtanh.f32 %v4063_v13 }
 0xaa8   :  { %v3400_v5 = vpop.eup %3399 }
 0xaa9   :  { %1216 = vrot.lane.b32.xlu0 %v3400_v5, %s3565_s28 }
 0xaab   :  { %v3402_v15 = vpop.eup %3401 }
 0xaac   :  { %1218 = vrot.lane.b32.xlu1 %v3402_v15, %s3565_s28 }
 0xaad   :  { %1074 = vrot.lane.b32.xlu0 %v1072_v14, %s3574_s8 }
 0xb1b   :  { %v1217_v60 = vpop.permute.xlu0 %1216 }
 0xb1c   :  { %v1222_v8 = vmul.f32 %v1217_v60, %v1188_v12  ;;  %v460_v60 = vadd.f32 %v431_v54, %v3803_v7 }
 0xb1e   :  { %v1224_v59 = vpack.c.bf16 %v1222_v8, %v1222_v8  ;;  %v1219_v16 = vpop.permute.xlu1 %1218 }
 0xb1f   :  { %v4071_v0 = vmul.f32 %v1219_v16, %v1189_v30  ;;  %v1075_v17 = vpop.permute.xlu0 %1074 }
 0xb20   :  { %3200 = vmatmul.mubr.msk.bf16.vlgmr.msra.gmra.mrb[12].mxu0 %vm579_vm10, %v1075_v17  ;;  %1226 = vrot.lane.b32.xlu1 %v1224_v59, %s3574_s8 }
 0xb21   :  { %v1334_v62 = vpack.c.bf16 %v4071_v0, %v1222_v8  ;;  %1232 = vmatpush1.bf16.msra.mxu0 %v3823_v21  ;;  %1263 = vmatprep.mubr.bf16.mxu0 %v3570_v2 }
 0xb22   :  { %1233 = vmatprep.subr.bf16.mxu0 %v3828_v22 }
 0xb23   :  { %1336 = vrot.lane.b32.xlu0 %v1334_v62, %s3574_s8 }
 0xb25   :  { %1234 = vmatpush1.bf16.msra.mxu0 %v3835_v23 }
 0xb26   :  { %1341 = vmatprep.subr.bf16.mxu0 %v3850_v32 }
 0xb92   :  { %v1227_v53 = vpop.permute.xlu1 %1226 }
 0xb93   :  { %3202 = vmatmul.mubr.msk.bf16.vlgmr.msra.gmra.mrb[16].mxu0 %vm579_vm10, %v1227_v53 }
 0xb94   :  { %1342 = vmatpush1.bf16.msra.mxu0 %v3855_v33  ;;  %1373 = vmatprep.mubr.bf16.mxu0 %v3570_v2 }
 0xb95   :  { %1343 = vmatprep.subr.bf16.mxu0 %v3861_v38  ;;  %v1337_v10 = vpop.permute.xlu0 %1336 }
 0xb98   :  { %1344 = vmatpush1.bf16.msra.mxu0 %v3867_v40 }
 0xb99   :  { %1479 = vmatprep.subr.bf16.mxu0 %v3843_v26 }
 0xb9b   :  { %3204 = vmatmul.mubr.msk.bf16.vlgmr.msra.gmra.mrb[20].mxu0 %vm579_vm10, %v1337_v10 }
 0xb9c   :  { %1480 = vmatpush1.bf16.msra.mxu0 %v3877_v45  ;;  %1511 = vmatprep.mubr.bf16.mxu0 %v3570_v2 }
 0xb9d   :  { %1481 = vmatprep.subr.bf16.mxu0 %v3882_v46 }
 0xba0   :  { %1482 = vmatpush1.bf16.msra.mxu0 %v3889_v49 }
 0xba1   :  { %1631 = vmatprep.subr.bf16.mxu0 %v3818_v20 }
 0xbf3   :  { %v4094_v11 = vpop.f32.mrb[12].mxu0 }
 0xbf4   :  { %v4096_v36 = vpop.f32.mrb[13].mxu0 }
 0xbf5   :  { %v1117_v12 = vpop.f32.mrb[14].mxu0 }
 0xbf6   :  { %v1118_v18 = vpop.f32.mrb[15].mxu0 }
 0xc66   :  { %v4098_v24 = vpop.f32.mrb[16].mxu0 }
 0xc67   :  { %v4100_v30 = vpop.f32.mrb[17].mxu0 }
 0xc68   :  { %v1269_v39 = vpop.f32.mrb[18].mxu0 }
 0xc69   :  { %v1270_v25 = vpop.f32.mrb[19].mxu0 }
 0xc6e   :  { %v1375_v6 = vpop.f32.mrb[20].mxu0 }
 0xc6f   :  { %v1382_v5 = vadd.f32 %v1375_v6, %v461_v3  ;;  %v1377_v15 = vpop.f32.mrb[21].mxu0 }
 0xc70   :  { %v1378_v14 = vpop.f32.mrb[22].mxu0 }
 0xc71   :  { %3403 = vtanh.f32 %v1382_v5  ;;  %v1379_v8 = vpop.f32.mrb[23].mxu0 }
 0xc72   :  { %v1383_v59 = vadd.f32 %v1379_v8, %v460_v60  ;;  %v1272_v60 = vpack.c.bf16 %v4071_v0, %v4071_v0 }
 0xc74   :  { %3405 = vtanh.f32 %v1383_v59 }
 0xc7b   :  { %v3404_v16 = vpop.eup %3403 }
 0xc7c   :  { %1394 = vrot.lane.b32.xlu1 %v3404_v16, %s3565_s28  ;;  %v1386_v17 = vmul.f32 0.5, %v3404_v16 }
 0xc7e   :  { %v3406_v34 = vpop.eup %3405  ;;  %v1388_v62 = vadd.f32 0.5, %v1386_v17 }
 0xc7f   :  { %1396 = vrot.lane.b32.xlu0 %v3406_v34, %s3565_s28  ;;  %v1387_v1 = vmul.f32 0.5, %v3406_v34 }
 0xc80   :  { %v1390_v44 = vmul.f32 %v1388_v62, %v4059_v19 }
 0xc81   :  { %v1389_v12 = vadd.f32 0.5, %v1387_v1 }
 0xc83   :  { %v1391_v3 = vmul.f32 %v1389_v12, %v4063_v13 }
 0xcee   :  { %v1395_v53 = vpop.permute.xlu1 %1394 }
 0xcef   :  { %v1400_v10 = vmul.f32 %v1395_v53, %v1388_v62 }
 0xcf1   :  { %1404 = vrot.lane.b32.xlu1 %v1400_v10, %s3574_s8  ;;  %v1397_v18 = vpop.permute.xlu0 %1396 }
 0xcf2   :  { %v1401_v39 = vmul.f32 %v1397_v18, %v1389_v12  ;;  %v487_v18 = vsub.s32 1, %v3761_v35 }
 0xcf4   :  { %1406 = vrot.lane.b32.xlu0 %v1401_v39, %s3574_s8  ;;  %v4150_v39 = vrot.slane %v3771_v41, %v487_v18  ;;  %v427_v41 = vadd.f32 %v3976_v9, %v3799_v63 }
 0xd63   :  { %v1405_v25 = vpop.permute.xlu1 %1404 }
 0xd64   :  { %v4113_v54 = vadd.f32 %v1405_v25, %v1390_v44  ;;  %v4153_v44 = vrot.slane %v3790_v57, %v487_v18 }
 0xd66   :  { %3407 = vtanh.f32 %v4113_v54  ;;  %v1407_v6 = vpop.permute.xlu0 %1406 }
 0xd67   :  { %v4117_v5 = vadd.f32 %v1407_v6, %v1391_v3 }
 0xd69   :  { %3409 = vtanh.f32 %v4117_v5 }
 0xd70   :  { %v3408_v15 = vpop.eup %3407 }
 0xd71   :  { %1416 = vrot.lane.b32.xlu1 %v3408_v15, %s3565_s28 }
 0xd73   :  { %v3410_v14 = vpop.eup %3409 }
 0xd74   :  { %1418 = vrot.lane.b32.xlu0 %v3410_v14, %s3565_s28 }
 0xd75   :  { %1274 = vrot.lane.b32.xlu1 %v1272_v60, %s3574_s8 }
 0xde3   :  { %v1417_v19 = vpop.permute.xlu1 %1416 }
 0xde4   :  { %v1422_v13 = vmul.f32 %v1417_v19, %v1388_v62 }
 0xde6   :  { %v1424_v8 = vpack.c.bf16 %v1422_v13, %v1422_v13  ;;  %v1419_v59 = vpop.permute.xlu0 %1418 }
 0xde7   :  { %v4125_v16 = vmul.f32 %v1419_v59, %v1389_v12  ;;  %v1275_v34 = vpop.permute.xlu1 %1274 }
 0xde8   :  { %3203 = vmatmul.mubr.msk.bf16.vlgmr.msra.gmra.mrb[36].mxu1 %vm579_vm10, %v1275_v34  ;;  %1426 = vrot.lane.b32.xlu0 %v1424_v8, %s3574_s8 }
 0xde9   :  { %v1534_v17 = vpack.c.bf16 %v4125_v16, %v1422_v13  ;;  %1432 = vmatpush1.bf16.msra.mxu1 %v3823_v21  ;;  %1463 = vmatprep.mubr.bf16.mxu1 %v3570_v2  ;;  %v439_v13 = vadd.f32 %v3765_v37, %v3777_v47 }
 0xdea   :  { %1433 = vmatprep.subr.bf16.mxu1 %v3828_v22 }
 0xdeb   :  { %1536 = vrot.lane.b32.xlu1 %v1534_v17, %s3574_s8  ;;  %v463_v57 = vadd.f32 %v439_v13, %v3779_v50 }
 0xded   :  { %1434 = vmatpush1.bf16.msra.mxu1 %v3835_v23 }
 0xdee   :  { %1541 = vmatprep.subr.bf16.mxu1 %v3850_v32 }
 0xe5a   :  { %v1427_v0 = vpop.permute.xlu0 %1426 }
 0xe5b   :  { %3205 = vmatmul.mubr.msk.bf16.vlgmr.msra.gmra.mrb[40].mxu1 %vm579_vm10, %v1427_v0 }
 0xe5c   :  { %1542 = vmatpush1.bf16.msra.mxu1 %v3855_v33  ;;  %1573 = vmatprep.mubr.bf16.mxu1 %v3570_v2 }
 0xe5d   :  { %1543 = vmatprep.subr.bf16.mxu1 %v3861_v38  ;;  %v1537_v1 = vpop.permute.xlu1 %1536 }
 0xe60   :  { %1544 = vmatpush1.bf16.msra.mxu1 %v3867_v40 }
 0xe61   :  { %1679 = vmatprep.subr.bf16.mxu1 %v3843_v26 }
 0xe63   :  { %3207 = vmatmul.mubr.msk.bf16.vlgmr.msra.gmra.mrb[44].mxu1 %vm579_vm10, %v1537_v1  ;;  %v458_v1 = vadd.f32 %v427_v41, %v3803_v7 }
 0xe64   :  { %1680 = vmatpush1.bf16.msra.mxu1 %v3877_v45  ;;  %1711 = vmatprep.mubr.bf16.mxu1 %v3570_v2 }
 0xe65   :  { %1681 = vmatprep.subr.bf16.mxu1 %v3882_v46 }
 0xe68   :  { %1682 = vmatpush1.bf16.msra.mxu1 %v3889_v49 }
 0xe69   :  { %1831 = vmatprep.subr.bf16.mxu1 %v3818_v20 }
 0xebb   :  { %v1313_v62 = vpop.f32.mrb[36].mxu1 }
 0xebc   :  { %v1315_v53 = vpop.f32.mrb[37].mxu1  ;;  %v1328_v25 = vadd.f32 %v1313_v62, %v4150_v39 }
 0xebd   :  { %v1317_v10 = vpop.f32.mrb[38].mxu1  ;;  %v1329_v3 = vadd.f32 %v1315_v53, %v4153_v44 }
 0xebe   :  { %v1318_v12 = vpop.f32.mrb[39].mxu1 }
 0xf2e   :  { %v1465_v6 = vpop.f32.mrb[40].mxu1 }
 0xf2f   :  { %v4157_v15 = vadd.f32 %v1465_v6, %v1328_v25  ;;  %v1467_v14 = vpop.f32.mrb[41].mxu1 }
 0xf30   :  { %v4159_v60 = vadd.f32 %v1467_v14, %v1329_v3  ;;  %v1469_v19 = vpop.f32.mrb[42].mxu1 }
 0xf31   :  { %v1470_v8 = vpop.f32.mrb[43].mxu1 }
 0xf36   :  { %v1575_v59 = vpop.f32.mrb[44].mxu1 }
 0xf37   :  { %v1582_v34 = vadd.f32 %v1575_v59, %v463_v57  ;;  %v1577_v17 = vpop.f32.mrb[45].mxu1 }
 0xf38   :  { %v1578_v0 = vpop.f32.mrb[46].mxu1 }
 0xf39   :  { %3411 = vtanh.f32 %v1582_v34  ;;  %v1579_v62 = vpop.f32.mrb[47].mxu1 }
 0xf3a   :  { %v1583_v53 = vadd.f32 %v1579_v62, %v458_v1  ;;  %v1472_v1 = vpack.c.bf16 %v4125_v16, %v4125_v16 }
 0xf3c   :  { %3413 = vtanh.f32 %v1583_v53 }
 0xf43   :  { %v3412_v10 = vpop.eup %3411 }
 0xf44   :  { %1594 = vrot.lane.b32.xlu0 %v3412_v10, %s3565_s28  ;;  %v1586_v12 = vmul.f32 0.5, %v3412_v10 }
 0xf46   :  { %v3414_v37 = vpop.eup %3413  ;;  %v1588_v18 = vadd.f32 0.5, %v1586_v12 }
 0xf47   :  { %1596 = vrot.lane.b32.xlu1 %v3414_v37, %s3565_s28  ;;  %v1587_v9 = vmul.f32 0.5, %v3414_v37 }
 0xf48   :  { %v1590_v13 = vmul.f32 %v1588_v18, %v4113_v54 }
 0xf49   :  { %v1589_v6 = vadd.f32 0.5, %v1587_v9 }
 0xf4b   :  { %v1591_v57 = vmul.f32 %v1589_v6, %v4117_v5 }
 0xfb6   :  { %v1595_v25 = vpop.permute.xlu0 %1594 }
 0xfb7   :  { %v1600_v3 = vmul.f32 %v1595_v25, %v1588_v18  ;;  %v445_v25 = vadd.f32 %v3794_v61, %v3777_v47 }
 0xfb9   :  { %1604 = vrot.lane.b32.xlu0 %v1600_v3, %s3574_s8  ;;  %v1597_v14 = vpop.permute.xlu1 %1596 }
 0xfba   :  { %v1601_v19 = vmul.f32 %v1597_v14, %v1589_v6  ;;  %v465_v14 = vadd.f32 %v445_v25, %v3779_v50  ;;  %v4261_v25 = vld [vmem:[%s4529_s2 + $0x74] ss:$8 sps:$4 sm:$0xff]  }
 0xfbc   :  { %1606 = vrot.lane.b32.xlu1 %v1601_v19, %s3574_s8 }
0x102b   :  { %v1605_v8 = vpop.permute.xlu0 %1604 }
0x102c   :  { %v4172_v41 = vadd.f32 %v1605_v8, %v1590_v13 }
0x102e   :  { %3415 = vtanh.f32 %v4172_v41  ;;  %v1607_v59 = vpop.permute.xlu1 %1606 }
0x102f   :  { %v4176_v34 = vadd.f32 %v1607_v59, %v1591_v57 }
0x1031   :  { %3417 = vtanh.f32 %v4176_v34 }
0x1038   :  { %v3416_v17 = vpop.eup %3415 }
0x1039   :  { %1616 = vrot.lane.b32.xlu0 %v3416_v17, %s3565_s28 }
0x103b   :  { %v3418_v0 = vpop.eup %3417 }
0x103c   :  { %1618 = vrot.lane.b32.xlu1 %v3418_v0, %s3565_s28 }
0x103d   :  { %1474 = vrot.lane.b32.xlu0 %v1472_v1, %s3574_s8 }
0x10ab   :  { %v1617_v54 = vpop.permute.xlu0 %1616 }
0x10ac   :  { %v1622_v5 = vmul.f32 %v1617_v54, %v1588_v18 }
0x10ae   :  { %v1624_v62 = vpack.c.bf16 %v1622_v5, %v1622_v5  ;;  %v1619_v53 = vpop.permute.xlu1 %1618 }
0x10af   :  { %v4184_v10 = vmul.f32 %v1619_v53, %v1589_v6  ;;  %v1475_v37 = vpop.permute.xlu0 %1474  ;;  %v421_v6 = vadd.f32 %v3787_v55, %v3799_v63 }
0x10b0   :  { %3206 = vmatmul.mubr.msk.bf16.vlgmr.msra.gmra.mrb[24].mxu0 %vm579_vm10, %v1475_v37  ;;  %1626 = vrot.lane.b32.xlu1 %v1624_v62, %s3574_s8 }
0x10b1   :  { %v1734_v12 = vpack.c.bf16 %v4184_v10, %v1622_v5  ;;  %1632 = vmatpush1.bf16.msra.mxu0 %v3823_v21  ;;  %1663 = vmatprep.mubr.bf16.mxu0 %v3570_v2  ;;  %v456_v8 = vadd.f32 %v421_v6, %v3803_v7  ;;  %v3506_v6 = vld [vmem:[%s4529_s2 + $0x44] ss:$8 sps:$4 sm:$0xff]  }
0x10b2   :  { %1633 = vmatprep.subr.bf16.mxu0 %v3828_v22  ;;  %v1322_v22 = vadd.f32 %v4098_v24, %v4150_v39 }
0x10b3   :  { %1736 = vrot.lane.b32.xlu0 %v1734_v12, %s3574_s8 }
0x10b5   :  { %1634 = vmatpush1.bf16.msra.mxu0 %v3835_v23  ;;  %v1323_v23 = vadd.f32 %v4100_v30, %v4153_v44 }
0x10b6   :  { %1741 = vmatprep.subr.bf16.mxu0 %v3850_v32 }
0x1122   :  { %v1627_v16 = vpop.permute.xlu1 %1626 }
0x1123   :  { %3208 = vmatmul.mubr.msk.bf16.vlgmr.msra.gmra.mrb[28].mxu0 %vm579_vm10, %v1627_v16 }
0x1124   :  { %1742 = vmatpush1.bf16.msra.mxu0 %v3855_v33  ;;  %1773 = vmatprep.mubr.bf16.mxu0 %v3570_v2 }
0x1125   :  { %1743 = vmatprep.subr.bf16.mxu0 %v3861_v38  ;;  %v1737_v21 = vpop.permute.xlu0 %1736 }
0x1128   :  { %1744 = vmatpush1.bf16.msra.mxu0 %v3867_v40 }
0x1129   :  { %1879 = vmatprep.subr.bf16.mxu0 %v3843_v26 }
0x112b   :  { %3210 = vmatmul.mubr.msk.bf16.vlgmr.msra.gmra.mrb[32].mxu0 %vm579_vm10, %v1737_v21 }
0x112c   :  { %1880 = vmatpush1.bf16.msra.mxu0 %v3877_v45  ;;  %1911 = vmatprep.mubr.bf16.mxu0 %v3570_v2 }
0x112d   :  { %1881 = vmatprep.subr.bf16.mxu0 %v3882_v46  ;;  %v1128_v46 = vadd.f32 %v4094_v11, %v4150_v39 }
0x1130   :  { %1882 = vmatpush1.bf16.msra.mxu0 %v3889_v49 }
0x1131   :  { %2031 = vmatprep.subr.bf16.mxu0 %v3818_v20  ;;  %v1129_v20 = vadd.f32 %v4096_v36, %v4153_v44 }
0x1183   :  { %v1513_v26 = vpop.f32.mrb[24].mxu0 }
0x1184   :  { %v4211_v32 = vadd.f32 %v1513_v26, %v1322_v22  ;;  %v1515_v33 = vpop.f32.mrb[25].mxu0 }
0x1185   :  { %v4213_v38 = vadd.f32 %v1515_v33, %v1323_v23  ;;  %v1517_v40 = vpop.f32.mrb[26].mxu0 }
0x1186   :  { %v1518_v45 = vpop.f32.mrb[27].mxu0 }
0x1187   :  { %v1672_v45 = vpack.c.bf16 %v4184_v10, %v4184_v10  ;;  %v4254_v10 = vld [vmem:[%s4529_s2 + $0x60] ss:$8 sps:$4 sm:$0xff]  }
0x11f6   :  { %v1665_v49 = vpop.f32.mrb[28].mxu0 }
0x11f7   :  { %v4219_v9 = vadd.f32 %v1665_v49, %v1128_v46  ;;  %v1667_v24 = vpop.f32.mrb[29].mxu0 }
0x11f8   :  { %v4221_v18 = vadd.f32 %v1667_v24, %v1129_v20  ;;  %v1669_v30 = vpop.f32.mrb[30].mxu0 }
0x11f9   :  { %v1670_v3 = vpop.f32.mrb[31].mxu0 }
0x11fa   :  { %v4268_v3 = vld [vmem:[%s4529_s2 + $0x70] ss:$8 sps:$4 sm:$0xff]  }
0x11fe   :  { %v1775_v11 = vpop.f32.mrb[32].mxu0 }
0x11ff   :  { %v1782_v19 = vadd.f32 %v1775_v11, %v465_v14  ;;  %v1777_v13 = vpop.f32.mrb[33].mxu0  ;;  %v3507_v11 = vld [vmem:[%s4529_s2 + $0x40] ss:$8 sps:$4 sm:$0xff]  }
0x1200   :  { %v1778_v36 = vpop.f32.mrb[34].mxu0  ;;  %v3509_v13 = vld [vmem:[%s4529_s2 + $0x50] ss:$8 sps:$4 sm:$0xff]  }
0x1201   :  { %3419 = vtanh.f32 %v1782_v19  ;;  %v1779_v57 = vpop.f32.mrb[35].mxu0  ;;  %v3508_v19 = vld [vmem:[%s4529_s2 + $0x54] ss:$8 sps:$4 sm:$0xff]   ;;  %v3510_v36 = vld [vmem:[%s4529_s2 + $0x84] ss:$8 sps:$4 sm:$0xff]  }
0x1202   :  { %v1783_v59 = vadd.f32 %v1779_v57, %v456_v8  ;;  %v3511_v57 = vld [vmem:[%s4529_s2 + $0x80] ss:$8 sps:$4 sm:$0xff]  }
0x1204   :  { %3421 = vtanh.f32 %v1783_v59  ;;  %v3512_v59 = vld [vmem:[%s4529_s2 + $0x94] ss:$8 sps:$4 sm:$0xff]  }
0x120b   :  { %v3420_v17 = vpop.eup %3419 }
0x120c   :  { %1794 = vrot.lane.b32.xlu1 %v3420_v17, %s3565_s28  ;;  %v1786_v0 = vmul.f32 0.5, %v3420_v17  ;;  %v3513_v17 = vld [vmem:[%s4529_s2 + $0x90] ss:$8 sps:$4 sm:$0xff]  }
0x120e   :  { %v3422_v61 = vpop.eup %3421  ;;  %v1788_v1 = vadd.f32 0.5, %v1786_v0  ;;  %v1123_v0 = vadd.f32 %v4046_v51, %v4153_v44 }
0x120f   :  { %1796 = vrot.lane.b32.xlu0 %v3422_v61, %s3565_s28  ;;  %v1787_v55 = vmul.f32 0.5, %v3422_v61  ;;  %v1122_v61 = vadd.f32 %v4044_v48, %v4150_v39 }
0x1210   :  { %v1790_v12 = vmul.f32 %v1788_v1, %v4172_v41 }
0x1211   :  { %v1789_v62 = vadd.f32 0.5, %v1787_v55 }
0x1213   :  { %v1791_v22 = vmul.f32 %v1789_v62, %v4176_v34 }
0x127e   :  { %v1795_v54 = vpop.permute.xlu1 %1794 }
0x127f   :  { %v1800_v5 = vmul.f32 %v1795_v54, %v1788_v1 }
0x1281   :  { %1804 = vrot.lane.b32.xlu1 %v1800_v5, %s3574_s8  ;;  %v1797_v53 = vpop.permute.xlu0 %1796 }
0x1282   :  { %v1801_v37 = vmul.f32 %v1797_v53, %v1789_v62 }
0x1284   :  { %1806 = vrot.lane.b32.xlu0 %v1801_v37, %s3574_s8  ;;  %v928_v37 = vadd.f32 %v4040_v42, %v4150_v39 }
0x12f3   :  { %v1805_v16 = vpop.permute.xlu1 %1804 }
0x12f4   :  { %v4234_v21 = vadd.f32 %v1805_v16, %v1790_v12  ;;  %v929_v12 = vadd.f32 %v4042_v43, %v4153_v44 }
0x12f6   :  { %3423 = vtanh.f32 %v4234_v21  ;;  %v1807_v23 = vpop.permute.xlu0 %1806 }
0x12f7   :  { %v4238_v26 = vadd.f32 %v1807_v23, %v1791_v22 }
0x12f9   :  { %3425 = vtanh.f32 %v4238_v26 }
0x1300   :  { %v3424_v33 = vpop.eup %3423 }
0x1301   :  { %1816 = vrot.lane.b32.xlu1 %v3424_v33, %s3565_s28  ;;  %v449_v33 = vadd.f32 %v3801_v4, %v3777_v47 }
0x1303   :  { %v3426_v40 = vpop.eup %3425 }
0x1304   :  { %1818 = vrot.lane.b32.xlu0 %v3426_v40, %s3565_s28 }
0x1305   :  { %1674 = vrot.lane.b32.xlu1 %v1672_v45, %s3574_s8  ;;  %v417_v45 = vadd.f32 %v3782_v52, %v3799_v63 }
0x1373   :  { %v1817_v41 = vpop.permute.xlu1 %1816 }
0x1374   :  { %v1822_v34 = vmul.f32 %v1817_v41, %v1788_v1  ;;  %v467_v41 = vadd.f32 %v449_v33, %v3779_v50 }
0x1376   :  { %v1824_v46 = vpack.c.bf16 %v1822_v34, %v1822_v34  ;;  %v1819_v20 = vpop.permute.xlu0 %1818 }
0x1377   :  { %v4246_v49 = vmul.f32 %v1819_v20, %v1789_v62  ;;  %v1675_v24 = vpop.permute.xlu1 %1674  ;;  %v454_v20 = vadd.f32 %v417_v45, %v3803_v7 }
0x1378   :  { %3209 = vmatmul.mubr.msk.bf16.vlgmr.msra.gmra.mrb[48].mxu1 %vm579_vm10, %v1675_v24  ;;  %1826 = vrot.lane.b32.xlu0 %v1824_v46, %s3574_s8 }
0x1379   :  { %v1934_v30 = vpack.c.bf16 %v4246_v49, %v1822_v34  ;;  %1832 = vmatpush1.bf16.msra.mxu1 %v4254_v10  ;;  %1863 = vmatprep.mubr.bf16.mxu1 %v3570_v2 }
0x137a   :  { %1833 = vmatprep.subr.bf16.mxu1 %v4261_v25 }
0x137b   :  { %1936 = vrot.lane.b32.xlu1 %v1934_v30, %s3574_s8 }
0x137d   :  { %1834 = vmatpush1.bf16.msra.mxu1 %v4268_v3 }
0x137e   :  { %1941 = vmatprep.subr.bf16.mxu1 %v3506_v6 }
0x13ea   :  { %v1827_v14 = vpop.permute.xlu0 %1826 }
0x13eb   :  { %3211 = vmatmul.mubr.msk.bf16.vlgmr.msra.gmra.mrb[52].mxu1 %vm579_vm10, %v1827_v14 }
0x13ec   :  { %1942 = vmatpush1.bf16.msra.mxu1 %v3507_v11  ;;  %1973 = vmatprep.mubr.bf16.mxu1 %v3570_v2 }
0x13ed   :  { %1943 = vmatprep.subr.bf16.mxu1 %v3508_v19  ;;  %v1937_v8 = vpop.permute.xlu1 %1936 }
0x13f0   :  { %1944 = vmatpush1.bf16.msra.mxu1 %v3509_v13 }
0x13f1   :  { %2079 = vmatprep.subr.bf16.mxu1 %v3510_v36 }
0x13f3   :  { %3213 = vmatmul.mubr.msk.bf16.vlgmr.msra.gmra.mrb[56].mxu1 %vm579_vm10, %v1937_v8 }
0x13f4   :  { %2080 = vmatpush1.bf16.msra.mxu1 %v3511_v57  ;;  %2111 = vmatprep.mubr.bf16.mxu1 %v3570_v2 }
0x13f5   :  { %2081 = vmatprep.subr.bf16.mxu1 %v3512_v59 }
0x13f8   :  { %2082 = vmatpush1.bf16.msra.mxu1 %v3513_v17 }
0x144b   :  { %v1713_v55 = vpop.f32.mrb[48].mxu1 }
0x144c   :  { %v4303_v1 = vadd.f32 %v1713_v55, %v1122_v61  ;;  %v1715_v54 = vpop.f32.mrb[49].mxu1  ;;  %v1872_v55 = vpack.c.bf16 %v4246_v49, %v4246_v49 }
0x144d   :  { %v4305_v5 = vadd.f32 %v1715_v54, %v1123_v0  ;;  %v1717_v62 = vpop.f32.mrb[50].mxu1 }
0x144e   :  { %v1718_v53 = vpop.f32.mrb[51].mxu1 }
0x14be   :  { %v1865_v16 = vpop.f32.mrb[52].mxu1 }
0x14bf   :  { %v4311_v22 = vadd.f32 %v1865_v16, %v928_v37  ;;  %v1867_v48 = vpop.f32.mrb[53].mxu1 }
0x14c0   :  { %v4313_v23 = vadd.f32 %v1867_v48, %v929_v12  ;;  %v1869_v51 = vpop.f32.mrb[54].mxu1 }
0x14c1   :  { %v1870_v40 = vpop.f32.mrb[55].mxu1 }
0x14c6   :  { %v1975_v42 = vpop.f32.mrb[56].mxu1 }
0x14c7   :  { %v1982_v34 = vadd.f32 %v1975_v42, %v467_v41  ;;  %v1977_v46 = vpop.f32.mrb[57].mxu1  ;;  %v700_v41 = vadd.f32 %v3907_v56, %v4150_v39  ;;  %v701_v42 = vadd.f32 %v3909_v58, %v4153_v44 }
0x14c8   :  { %v1978_v43 = vpop.f32.mrb[58].mxu1 }
0x14c9   :  { %3427 = vtanh.f32 %v1982_v34  ;;  %v1979_v24 = vpop.f32.mrb[59].mxu1 }
0x14ca   :  { %v1983_v30 = vadd.f32 %v1979_v24, %v454_v20 }
0x14cc   :  { %3429 = vtanh.f32 %v1983_v30 }
0x14d3   :  { %v3428_v6 = vpop.eup %3427 }
0x14d4   :  { %1994 = vrot.lane.b32.xlu0 %v3428_v6, %s3565_s28  ;;  %v1986_v4 = vmul.f32 0.5, %v3428_v6 }
0x14d6   :  { %v3430_v47 = vpop.eup %3429  ;;  %v1988_v63 = vadd.f32 0.5, %v1986_v4 }
0x14d7   :  { %1996 = vrot.lane.b32.xlu1 %v3430_v47, %s3565_s28  ;;  %v1987_v52 = vmul.f32 0.5, %v3430_v47 }
0x14d8   :  { %v1990_v13 = vmul.f32 %v1988_v63, %v4234_v21 }
0x14d9   :  { %v1989_v11 = vadd.f32 0.5, %v1987_v52 }
0x14db   :  { %v1991_v57 = vmul.f32 %v1989_v11, %v4238_v26 }
0x1546   :  { %v1995_v50 = vpop.permute.xlu0 %1994 }
0x1547   :  { %v2000_v14 = vmul.f32 %v1995_v50, %v1988_v63 }
0x1549   :  { %2004 = vrot.lane.b32.xlu0 %v2000_v14, %s3574_s8  ;;  %v1997_v19 = vpop.permute.xlu1 %1996 }
0x154a   :  { %v2001_v7 = vmul.f32 %v1997_v19, %v1989_v11 }
0x154c   :  { %2006 = vrot.lane.b32.xlu1 %v2001_v7, %s3574_s8 }
0x15bb   :  { %v2005_v36 = vpop.permute.xlu0 %2004 }
0x15bc   :  { %v2010_v8 = vadd.f32 %v2005_v36, %v1990_v13  ;;  %v4368_v13 = vld [vmem:[%s4529_s2 + $0xa0] ss:$8 sps:$4 sm:$0xff]   ;;  %v4373_v36 = vld [vmem:[%s4529_s2 + $0xb4] ss:$8 sps:$4 sm:$0xff]  }
0x15be   :  { %3431 = vtanh.f32 %v2010_v8  ;;  %v2007_v59 = vpop.permute.xlu1 %2006  ;;  %v4381_v8 = vld [vmem:[%s4529_s2 + $0xb0] ss:$8 sps:$4 sm:$0xff]  }
0x15bf   :  { %v2011_v17 = vadd.f32 %v2007_v59, %v1991_v57 }
0x15c1   :  { %3433 = vtanh.f32 %v2011_v17 }
0x15c8   :  { %v3432_v61 = vpop.eup %3431 }
0x15c9   :  { %2016 = vrot.lane.b32.xlu0 %v3432_v61, %s3565_s28 }
0x15cb   :  { %v3434_v0 = vpop.eup %3433 }
0x15cc   :  { %2018 = vrot.lane.b32.xlu1 %v3434_v0, %s3565_s28 }
0x15cd   :  { %1874 = vrot.lane.b32.xlu0 %v1872_v55, %s3574_s8 }
0x163b   :  { %v2017_v21 = vpop.permute.xlu0 %2016 }
0x163c   :  { %v2022_v54 = vmul.f32 %v2017_v21, %v1988_v63 }
0x163e   :  { %v2024_v62 = vpack.c.bf16 %v2022_v54, %v2022_v54  ;;  %v2019_v53 = vpop.permute.xlu1 %2018 }
0x163f   :  { %v2023_v26 = vmul.f32 %v2019_v53, %v1989_v11  ;;  %v1875_v37 = vpop.permute.xlu0 %1874 }
0x1640   :  { %3212 = vmatmul.mubr.msk.bf16.vlgmr.msra.gmra.mrb[36].mxu0 %vm579_vm10, %v1875_v37  ;;  %2026 = vrot.lane.b32.xlu1 %v2024_v62, %s3574_s8 }
0x1641   :  { %v2072_v12 = vpack.c.bf16 %v2023_v26, %v2023_v26  ;;  %2032 = vmatpush1.bf16.msra.mxu0 %v4254_v10  ;;  %2063 = vmatprep.mubr.bf16.mxu0 %v3570_v2  ;;  %v922_v10 = vadd.f32 %v4036_v27, %v4150_v39 }
0x1642   :  { %2033 = vmatprep.subr.bf16.mxu0 %v4261_v25  ;;  %v923_v25 = vadd.f32 %v4038_v29, %v4153_v44 }
0x1643   :  { %2074 = vrot.lane.b32.xlu0 %v2072_v12, %s3574_s8 }
0x1645   :  { %2034 = vmatpush1.bf16.msra.mxu0 %v4268_v3 }
0x16b2   :  { %v2027_v49 = vpop.permute.xlu1 %2026 }
0x16b3   :  { %3214 = vmatmul.mubr.msk.bf16.vlgmr.msra.gmra.mrb[40].mxu0 %vm579_vm10, %v2027_v49 }
0x16b4   :  { %2223 = vmatprep.mubr.bf16.mxu0 %v3570_v2 }
0x16b5   :  { %v2075_v16 = vpop.permute.xlu0 %2074 }
0x16b6   :  { %3215 = vmatmul.mubr.msk.bf16.vlgmr.msra.gmra.mrb[8].mxu1 %vm579_vm10, %v2075_v16 }
0x16b7   :  { %2323 = vmatprep.mubr.bf16.mxu1 %v3570_v2 }
0x1713   :  { %v1913_v48 = vpop.f32.mrb[36].mxu0 }
0x1714   :  { %v4347_v51 = vadd.f32 %v1913_v48, %v922_v10  ;;  %v1915_v3 = vpop.f32.mrb[37].mxu0 }
0x1715   :  { %v4349_v33 = vadd.f32 %v1915_v3, %v923_v25  ;;  %v1917_v40 = vpop.f32.mrb[38].mxu0 }
0x1716   :  { %v1918_v45 = vpop.f32.mrb[39].mxu0 }
0x1786   :  { %v2065_v34 = vpop.f32.mrb[40].mxu0 }
0x1787   :  { %v4355_v46 = vadd.f32 %v2065_v34, %v700_v41  ;;  %v2067_v27 = vpop.f32.mrb[41].mxu0 }
0x1788   :  { %v2123_v43 = vadd.f32 %v2067_v27, %v701_v42  ;;  %v2069_v29 = vpop.f32.mrb[42].mxu0 }
0x1789   :  { %v2070_v20 = vpop.f32.mrb[43].mxu0  ;;  %v2113_v24 = vpop.f32.mrb[8].mxu1 }
0x178a   :  { %3435 = vtanh.f32 %v2123_v43  ;;  %v3270_v30 = vadd.f32 %v2113_v24, %v4150_v39  ;;  %v2115_v6 = vpop.f32.mrb[9].mxu1  ;;  %v4363_v39 = vld [vmem:[%s4529_s2 + $0xa4] ss:$8 sps:$4 sm:$0xff]  }
0x178b   :  { %v2117_v47 = vpop.f32.mrb[10].mxu1  ;;  %2191 = vmatprep.subr.bf16.mxu0 %v4363_v39  ;;  %2291 = vmatprep.subr.bf16.mxu1 %v4363_v39 }
0x178c   :  { %3437 = vtanh.f32 %v3270_v30  ;;  %v2118_v4 = vpop.f32.mrb[11].mxu1  ;;  %2192 = vmatpush1.bf16.msra.mxu0 %v4368_v13  ;;  %2292 = vmatpush1.bf16.msra.mxu1 %v4368_v13 }
0x178d   :  { %2193 = vmatprep.subr.bf16.mxu0 %v4373_v36  ;;  %2293 = vmatprep.subr.bf16.mxu1 %v4373_v36 }
0x1790   :  { %2194 = vmatpush1.bf16.msra.mxu0 %v4381_v8  ;;  %2294 = vmatpush1.bf16.msra.mxu1 %v4381_v8 }
0x1791   :  { %2383 = vmatprep.subr.bf16.mxu0 %v4363_v39  ;;  %2475 = vmatprep.subr.bf16.mxu1 %v4363_v39 }
0x1794   :  { %v3436_v52 = vpop.eup %3435 }
0x1795   :  { %2144 = vrot.lane.b32.xlu0 %v3436_v52, %s3565_s28  ;;  %v2137_v58 = vmul.f32 0.5, %v3436_v52 }
0x1796   :  { %v3438_v56 = vpop.eup %3437 }
0x1797   :  { %2142 = vrot.lane.b32.xlu1 %v3438_v56, %s3565_s28  ;;  %v2136_v44 = vmul.f32 0.5, %v3438_v56  ;;  %v2139_v63 = vadd.f32 0.5, %v2137_v58 }
0x1799   :  { %v2138_v11 = vadd.f32 0.5, %v2136_v44 }
0x1807   :  { %v2145_v50 = vpop.permute.xlu0 %2144 }
0x1808   :  { %v2149_v14 = vmul.f32 %v2145_v50, %v2139_v63 }
0x1809   :  { %v2143_v19 = vpop.permute.xlu1 %2142 }
0x180a   :  { %3439 = vtanh.f32 %v2149_v14  ;;  %v2148_v7 = vmul.f32 %v2143_v19, %v2138_v11 }
0x180c   :  { %3441 = vtanh.f32 %v2148_v7 }
0x1814   :  { %v3440_v57 = vpop.eup %3439 }
0x1815   :  { %2156 = vrot.lane.b32.xlu0 %v3440_v57, %s3573_s21 }
0x1816   :  { %v3442_v59 = vpop.eup %3441 }
0x1817   :  { %2154 = vrot.lane.b32.xlu1 %v3442_v59, %s3573_s21  ;;  %s3576_s21 = smov 2  }
0x1887   :  { %v2157_v17 = vpop.permute.xlu0 %2156 }
0x1888   :  { %v4392_v0 = vmul.f32 %v2157_v17, %v2139_v63 }
0x1889   :  { %v2155_v61 = vpop.permute.xlu1 %2154 }
0x188a   :  { %v2160_v55 = vmul.f32 %v2155_v61, %v2138_v11 }
0x188c   :  { %v2164_v21 = vpack.c.bf16 %v4392_v0, %v2160_v55 }
0x188e   :  { %2166 = vrot.lane.b32.xlu1 %v2164_v21, %s3574_s8 }
0x1900   :  { %v2167_v54 = vpop.permute.xlu1 %2166 }
0x1901   :  { %3220 = vmatmul.mubr.msk.bf16.vlgmr.msra.gmra.mrb[44].mxu0 %vm579_vm10, %v2167_v54 }
0x1902   :  { %2384 = vmatpush1.bf16.msra.mxu0 %v4368_v13  ;;  %2415 = vmatprep.mubr.bf16.mxu0 %v3570_v2 }
0x1903   :  { %2385 = vmatprep.subr.bf16.mxu0 %v4373_v36 }
0x1906   :  { %2386 = vmatpush1.bf16.msra.mxu0 %v4381_v8 }
0x1907   :  { %2567 = vmatprep.subr.bf16.mxu0 %v4363_v39 }
0x19d4   :  { %v2225_v62 = vpop.f32.mrb[44].mxu0 }
0x19d5   :  { %v2232_v53 = vadd.f32 %v2225_v62, %v4347_v51  ;;  %v2227_v26 = vpop.f32.mrb[45].mxu0 }
0x19d6   :  { %v2228_v37 = vpop.f32.mrb[46].mxu0 }
0x19d7   :  { %3443 = vtanh.f32 %v2232_v53  ;;  %v2229_v12 = vpop.f32.mrb[47].mxu0 }
0x19d8   :  { %v2233_v49 = vadd.f32 %v2229_v12, %v4313_v23 }
0x19da   :  { %3445 = vtanh.f32 %v2233_v49 }
0x19e1   :  { %v3444_v16 = vpop.eup %3443 }
0x19e2   :  { %2252 = vrot.lane.b32.xlu0 %v3444_v16, %s3565_s28  ;;  %v2236_v25 = vmul.f32 0.5, %v3444_v16 }
0x19e4   :  { %v3446_v10 = vpop.eup %3445  ;;  %v2238_v51 = vadd.f32 0.5, %v2236_v25 }
0x19e5   :  { %2254 = vrot.lane.b32.xlu1 %v3446_v10, %s3565_s28  ;;  %v2237_v48 = vmul.f32 0.5, %v3446_v10 }
0x19e6   :  { %2242 = vrot.lane.b32.xlu0 %v2148_v7, %s3574_s8 }
0x19e7   :  { %v2239_v45 = vadd.f32 0.5, %v2237_v48 }
0x19e9   :  { %2244 = vrot.lane.b32.xlu1 %v2149_v14, %s3574_s8 }
0x1a54   :  { %v2253_v3 = vpop.permute.xlu0 %2252 }
0x1a55   :  { %v2258_v40 = vmul.f32 %v2253_v3, %v2238_v51 }
0x1a57   :  { %2262 = vrot.lane.b32.xlu0 %v2258_v40, %s3574_s8  ;;  %v2255_v23 = vpop.permute.xlu1 %2254 }
0x1a58   :  { %v2259_v41 = vmul.f32 %v2255_v23, %v2239_v45  ;;  %v2243_v42 = vpop.permute.xlu0 %2242 }
0x1a59   :  { %v2248_v34 = vmul.f32 %v2243_v42, %v2238_v51 }
0x1a5a   :  { %2264 = vrot.lane.b32.xlu1 %v2259_v41, %s3574_s8 }
0x1a5b   :  { %v2245_v27 = vpop.permute.xlu1 %2244 }
0x1a5c   :  { %v2249_v20 = vmul.f32 %v2245_v27, %v2239_v45 }
0x1ac9   :  { %v2263_v43 = vpop.permute.xlu0 %2262 }
0x1aca   :  { %v2268_v29 = vadd.f32 %v2263_v43, %v2248_v34 }
0x1acc   :  { %3447 = vtanh.f32 %v2268_v29  ;;  %v2265_v24 = vpop.permute.xlu1 %2264 }
0x1acd   :  { %v2269_v30 = vadd.f32 %v2265_v24, %v2249_v20 }
0x1acf   :  { %3449 = vtanh.f32 %v2269_v30 }
0x1ad6   :  { %v3448_v6 = vpop.eup %3447 }
0x1ad7   :  { %2274 = vrot.lane.b32.xlu0 %v3448_v6, %s3565_s28 }
0x1ad9   :  { %v3450_v47 = vpop.eup %3449 }
0x1ada   :  { %2276 = vrot.lane.b32.xlu1 %v3450_v47, %s3565_s28 }
0x1b49   :  { %v2275_v4 = vpop.permute.xlu0 %2274 }
0x1b4a   :  { %v2280_v56 = vmul.f32 %v2275_v4, %v2238_v51 }
0x1b4c   :  { %v2277_v52 = vpop.permute.xlu1 %2276 }
0x1b4d   :  { %v2281_v58 = vmul.f32 %v2277_v52, %v2239_v45 }
0x1b4f   :  { %v2284_v44 = vpack.c.bf16 %v2281_v58, %v2280_v56 }
0x1b51   :  { %2286 = vrot.lane.b32.xlu0 %v2284_v44, %s3574_s8 }
0x1bc3   :  { %v2287_v63 = vpop.permute.xlu0 %2286 }
0x1bc4   :  { %3221 = vmatmul.mubr.msk.bf16.vlgmr.msra.gmra.mrb[60].mxu1 %vm579_vm10, %v2287_v63 }
0x1bc5   :  { %2476 = vmatpush1.bf16.msra.mxu1 %v4368_v13  ;;  %2507 = vmatprep.mubr.bf16.mxu1 %v3570_v2 }
0x1bc6   :  { %2477 = vmatprep.subr.bf16.mxu1 %v4373_v36 }
0x1bc9   :  { %2478 = vmatpush1.bf16.msra.mxu1 %v4381_v8 }
0x1bca   :  { %2659 = vmatprep.subr.bf16.mxu1 %v4363_v39 }
0x1c97   :  { %v2325_v50 = vpop.f32.mrb[60].mxu1 }
0x1c98   :  { %v2332_v14 = vadd.f32 %v2325_v50, %v4303_v1  ;;  %v2327_v11 = vpop.f32.mrb[61].mxu1 }
0x1c99   :  { %v2328_v19 = vpop.f32.mrb[62].mxu1 }
0x1c9a   :  { %3451 = vtanh.f32 %v2332_v14  ;;  %v2329_v7 = vpop.f32.mrb[63].mxu1 }
0x1c9b   :  { %v2333_v57 = vadd.f32 %v2329_v7, %v4221_v18 }
0x1c9d   :  { %3453 = vtanh.f32 %v2333_v57 }
0x1ca4   :  { %v3452_v59 = vpop.eup %3451 }
0x1ca5   :  { %2344 = vrot.lane.b32.xlu1 %v3452_v59, %s3565_s28  ;;  %v2336_v61 = vmul.f32 0.5, %v3452_v59 }
0x1ca7   :  { %v3454_v17 = vpop.eup %3453  ;;  %v2338_v21 = vadd.f32 0.5, %v2336_v61 }
0x1ca8   :  { %2346 = vrot.lane.b32.xlu0 %v3454_v17, %s3565_s28  ;;  %v2337_v55 = vmul.f32 0.5, %v3454_v17 }
0x1ca9   :  { %v2340_v18 = vmul.f32 %v2338_v21, %v2268_v29 }
0x1caa   :  { %v2339_v53 = vadd.f32 0.5, %v2337_v55 }
0x1cac   :  { %v2341_v49 = vmul.f32 %v2339_v53, %v2269_v30 }
0x1d17   :  { %v2345_v54 = vpop.permute.xlu1 %2344 }
0x1d18   :  { %v2350_v62 = vmul.f32 %v2345_v54, %v2338_v21 }
0x1d1a   :  { %2354 = vrot.lane.b32.xlu1 %v2350_v62, %s3574_s8  ;;  %v2347_v1 = vpop.permute.xlu0 %2346 }
0x1d1b   :  { %v2351_v26 = vmul.f32 %v2347_v1, %v2339_v53 }
0x1d1d   :  { %2356 = vrot.lane.b32.xlu0 %v2351_v26, %s3574_s8 }
0x1d8c   :  { %v2355_v37 = vpop.permute.xlu1 %2354 }
0x1d8d   :  { %v2360_v12 = vadd.f32 %v2355_v37, %v2340_v18 }
0x1d8f   :  { %3455 = vtanh.f32 %v2360_v12  ;;  %v2357_v16 = vpop.permute.xlu0 %2356 }
0x1d90   :  { %v2361_v10 = vadd.f32 %v2357_v16, %v2341_v49 }
0x1d92   :  { %3457 = vtanh.f32 %v2361_v10 }
0x1d99   :  { %v3456_v25 = vpop.eup %3455 }
0x1d9a   :  { %2366 = vrot.lane.b32.xlu1 %v3456_v25, %s3565_s28 }
0x1d9c   :  { %v3458_v48 = vpop.eup %3457 }
0x1d9d   :  { %2368 = vrot.lane.b32.xlu0 %v3458_v48, %s3565_s28 }
0x1e0c   :  { %v2367_v51 = vpop.permute.xlu1 %2366 }
0x1e0d   :  { %v2372_v40 = vmul.f32 %v2367_v51, %v2338_v21 }
0x1e0f   :  { %v2369_v3 = vpop.permute.xlu0 %2368 }
0x1e10   :  { %v2373_v45 = vmul.f32 %v2369_v3, %v2339_v53 }
0x1e12   :  { %v2376_v23 = vpack.c.bf16 %v2373_v45, %v2372_v40 }
0x1e14   :  { %2378 = vrot.lane.b32.xlu1 %v2376_v23, %s3574_s8 }
0x1e86   :  { %v2379_v41 = vpop.permute.xlu1 %2378 }
0x1e87   :  { %3222 = vmatmul.mubr.msk.bf16.vlgmr.msra.gmra.mrb[48].mxu0 %vm579_vm10, %v2379_v41 }
0x1e88   :  { %2568 = vmatpush1.bf16.msra.mxu0 %v4368_v13  ;;  %2599 = vmatprep.mubr.bf16.mxu0 %v3570_v2 }
0x1e89   :  { %2569 = vmatprep.subr.bf16.mxu0 %v4373_v36 }
0x1e8c   :  { %2570 = vmatpush1.bf16.msra.mxu0 %v4381_v8 }
0x1e8d   :  { %2750 = vmatprep.subr.bf16.mxu0 %v4363_v39 }
0x1f5a   :  { %v2417_v42 = vpop.f32.mrb[48].mxu0 }
0x1f5b   :  { %v2424_v34 = vadd.f32 %v2417_v42, %v4211_v32  ;;  %v2419_v27 = vpop.f32.mrb[49].mxu0 }
0x1f5c   :  { %v2420_v43 = vpop.f32.mrb[50].mxu0 }
0x1f5d   :  { %3459 = vtanh.f32 %v2424_v34  ;;  %v2421_v29 = vpop.f32.mrb[51].mxu0 }
0x1f5e   :  { %v2425_v20 = vadd.f32 %v2421_v29, %v4159_v60 }
0x1f60   :  { %3461 = vtanh.f32 %v2425_v20 }
0x1f67   :  { %v3460_v24 = vpop.eup %3459 }
0x1f68   :  { %2436 = vrot.lane.b32.xlu0 %v3460_v24, %s3565_s28  ;;  %v2428_v6 = vmul.f32 0.5, %v3460_v24 }
0x1f6a   :  { %v3462_v30 = vpop.eup %3461  ;;  %v2430_v4 = vadd.f32 0.5, %v2428_v6 }
0x1f6b   :  { %2438 = vrot.lane.b32.xlu1 %v3462_v30, %s3565_s28  ;;  %v2429_v47 = vmul.f32 0.5, %v3462_v30 }
0x1f6c   :  { %v2432_v60 = vmul.f32 %v2430_v4, %v2360_v12 }
0x1f6d   :  { %v2431_v56 = vadd.f32 0.5, %v2429_v47 }
0x1f6f   :  { %v2433_v50 = vmul.f32 %v2431_v56, %v2361_v10 }
0x1fda   :  { %v2437_v39 = vpop.permute.xlu0 %2436 }
0x1fdb   :  { %v2442_v52 = vmul.f32 %v2437_v39, %v2430_v4 }
0x1fdd   :  { %2446 = vrot.lane.b32.xlu0 %v2442_v52, %s3574_s8  ;;  %v2439_v32 = vpop.permute.xlu1 %2438 }
0x1fde   :  { %v2443_v58 = vmul.f32 %v2439_v32, %v2431_v56 }
0x1fe0   :  { %2448 = vrot.lane.b32.xlu1 %v2443_v58, %s3574_s8 }
0x204f   :  { %v2447_v44 = vpop.permute.xlu0 %2446 }
0x2050   :  { %v2452_v63 = vadd.f32 %v2447_v44, %v2432_v60 }
0x2052   :  { %3463 = vtanh.f32 %v2452_v63  ;;  %v2449_v14 = vpop.permute.xlu1 %2448 }
0x2053   :  { %v2453_v11 = vadd.f32 %v2449_v14, %v2433_v50 }
0x2055   :  { %3465 = vtanh.f32 %v2453_v11 }
0x205c   :  { %v3464_v19 = vpop.eup %3463 }
0x205d   :  { %2458 = vrot.lane.b32.xlu0 %v3464_v19, %s3565_s28 }
0x205f   :  { %v3466_v7 = vpop.eup %3465 }
0x2060   :  { %2460 = vrot.lane.b32.xlu1 %v3466_v7, %s3565_s28 }
0x20cf   :  { %v2459_v57 = vpop.permute.xlu0 %2458 }
0x20d0   :  { %v2464_v17 = vmul.f32 %v2459_v57, %v2430_v4 }
0x20d2   :  { %v2461_v59 = vpop.permute.xlu1 %2460 }
0x20d3   :  { %v2465_v61 = vmul.f32 %v2461_v59, %v2431_v56 }
0x20d5   :  { %v2468_v55 = vpack.c.bf16 %v2465_v61, %v2464_v17 }
0x20d7   :  { %2470 = vrot.lane.b32.xlu0 %v2468_v55, %s3574_s8 }
0x2149   :  { %v2471_v21 = vpop.permute.xlu0 %2470 }
0x214a   :  { %3223 = vmatmul.mubr.msk.bf16.vlgmr.msra.gmra.mrb[64].mxu1 %vm579_vm10, %v2471_v21 }
0x214b   :  { %2660 = vmatpush1.bf16.msra.mxu1 %v4368_v13  ;;  %2691 = vmatprep.mubr.bf16.mxu1 %v3570_v2 }
0x214c   :  { %2661 = vmatprep.subr.bf16.mxu1 %v4373_v36 }
0x214f   :  { %2662 = vmatpush1.bf16.msra.mxu1 %v4381_v8 }
0x2150   :  { %3250 = vmatprep.subr.bf16.mxu1 %v3572_v31 }
0x221d   :  { %v2509_v54 = vpop.f32.mrb[64].mxu1 }
0x221e   :  { %v2516_v62 = vadd.f32 %v2509_v54, %v4157_v15  ;;  %v2511_v53 = vpop.f32.mrb[65].mxu1 }
0x221f   :  { %v2512_v1 = vpop.f32.mrb[66].mxu1 }
0x2220   :  { %3467 = vtanh.f32 %v2516_v62  ;;  %v2513_v26 = vpop.f32.mrb[67].mxu1 }
0x2221   :  { %v2517_v18 = vadd.f32 %v2513_v26, %v4213_v38 }
0x2223   :  { %3469 = vtanh.f32 %v2517_v18 }
0x222a   :  { %v3468_v37 = vpop.eup %3467 }
0x222b   :  { %2528 = vrot.lane.b32.xlu1 %v3468_v37, %s3565_s28  ;;  %v2520_v49 = vmul.f32 0.5, %v3468_v37 }
0x222d   :  { %v3470_v12 = vpop.eup %3469  ;;  %v2522_v10 = vadd.f32 0.5, %v2520_v49 }
0x222e   :  { %2530 = vrot.lane.b32.xlu0 %v3470_v12, %s3565_s28  ;;  %v2521_v16 = vmul.f32 0.5, %v3470_v12 }
0x222f   :  { %v2524_v38 = vmul.f32 %v2522_v10, %v2452_v63 }
0x2230   :  { %v2523_v51 = vadd.f32 0.5, %v2521_v16 }
0x2232   :  { %v2525_v23 = vmul.f32 %v2523_v51, %v2453_v11 }
0x229d   :  { %v2529_v25 = vpop.permute.xlu1 %2528 }
0x229e   :  { %v2534_v48 = vmul.f32 %v2529_v25, %v2522_v10 }
0x22a0   :  { %2538 = vrot.lane.b32.xlu1 %v2534_v48, %s3574_s8  ;;  %v2531_v15 = vpop.permute.xlu0 %2530 }
0x22a1   :  { %v2535_v3 = vmul.f32 %v2531_v15, %v2523_v51 }
0x22a3   :  { %2540 = vrot.lane.b32.xlu0 %v2535_v3, %s3574_s8 }
0x2312   :  { %v2539_v40 = vpop.permute.xlu1 %2538 }
0x2313   :  { %v2544_v45 = vadd.f32 %v2539_v40, %v2524_v38 }
0x2315   :  { %3471 = vtanh.f32 %v2544_v45  ;;  %v2541_v41 = vpop.permute.xlu0 %2540 }
0x2316   :  { %v2545_v42 = vadd.f32 %v2541_v41, %v2525_v23 }
0x2318   :  { %3473 = vtanh.f32 %v2545_v42 }
0x231f   :  { %v3472_v34 = vpop.eup %3471 }
0x2320   :  { %2550 = vrot.lane.b32.xlu1 %v3472_v34, %s3565_s28 }
0x2322   :  { %v3474_v27 = vpop.eup %3473 }
0x2323   :  { %2552 = vrot.lane.b32.xlu0 %v3474_v27, %s3565_s28 }
0x2392   :  { %v2551_v43 = vpop.permute.xlu1 %2550 }
0x2393   :  { %v2556_v20 = vmul.f32 %v2551_v43, %v2522_v10 }
0x2395   :  { %v2553_v29 = vpop.permute.xlu0 %2552 }
0x2396   :  { %v2557_v24 = vmul.f32 %v2553_v29, %v2523_v51 }
0x2398   :  { %v2560_v30 = vpack.c.bf16 %v2557_v24, %v2556_v20 }
0x239a   :  { %2562 = vrot.lane.b32.xlu1 %v2560_v30, %s3574_s8 }
0x240c   :  { %v2563_v6 = vpop.permute.xlu1 %2562 }
0x240d   :  { %3224 = vmatmul.mubr.msk.bf16.vlgmr.msra.gmra.mrb[52].mxu0 %vm579_vm10, %v2563_v6 }
0x240e   :  { %2751 = vmatpush1.bf16.msra.mxu0 %v4368_v13  ;;  %2782 = vmatprep.mubr.bf16.mxu0 %v3570_v2 }
0x240f   :  { %2752 = vmatprep.subr.bf16.mxu0 %v4373_v36 }
0x2412   :  { %2753 = vmatpush1.bf16.msra.mxu0 %v4381_v8 }
0x2413   :  { %3002 = vmatprep.subr.bf16.mxu0 %v3570_v2 }
0x24e0   :  { %v2601_v47 = vpop.f32.mrb[52].mxu0 }
0x24e1   :  { %v2608_v4 = vadd.f32 %v2601_v47, %v4219_v9  ;;  %v2603_v39 = vpop.f32.mrb[53].mxu0 }
0x24e2   :  { %v2604_v52 = vpop.f32.mrb[54].mxu0 }
0x24e3   :  { %3475 = vtanh.f32 %v2608_v4  ;;  %v2605_v56 = vpop.f32.mrb[55].mxu0 }
0x24e4   :  { %v2609_v32 = vadd.f32 %v2605_v56, %v4305_v5 }
0x24e6   :  { %3477 = vtanh.f32 %v2609_v32 }
0x24ed   :  { %v3476_v58 = vpop.eup %3475 }
0x24ee   :  { %2620 = vrot.lane.b32.xlu0 %v3476_v58, %s3565_s28  ;;  %v2612_v36 = vmul.f32 0.5, %v3476_v58 }
0x24f0   :  { %v3478_v13 = vpop.eup %3477  ;;  %v2614_v60 = vadd.f32 0.5, %v2612_v36 }
0x24f1   :  { %2622 = vrot.lane.b32.xlu1 %v3478_v13, %s3565_s28  ;;  %v2613_v8 = vmul.f32 0.5, %v3478_v13 }
0x24f2   :  { %v2616_v5 = vmul.f32 %v2614_v60, %v2544_v45 }
0x24f3   :  { %v2615_v50 = vadd.f32 0.5, %v2613_v8 }
0x24f5   :  { %v2617_v7 = vmul.f32 %v2615_v50, %v2545_v42 }
0x2560   :  { %v2621_v44 = vpop.permute.xlu0 %2620 }
0x2561   :  { %v2626_v63 = vmul.f32 %v2621_v44, %v2614_v60 }
0x2563   :  { %2630 = vrot.lane.b32.xlu0 %v2626_v63, %s3574_s8  ;;  %v2623_v9 = vpop.permute.xlu1 %2622 }
0x2564   :  { %v2627_v14 = vmul.f32 %v2623_v9, %v2615_v50 }
0x2566   :  { %2632 = vrot.lane.b32.xlu1 %v2627_v14, %s3574_s8  ;;  %v3355_v14 = vld [vmem:[#allocation4] sm:$0xff]  }
0x25d5   :  { %v2631_v11 = vpop.permute.xlu0 %2630 }
0x25d6   :  { %v2636_v19 = vadd.f32 %v2631_v11, %v2616_v5  ;;  %v3357_v5 = vld [vmem:[#allocation4 + $0x10] sm:$0xff]  }
0x25d8   :  { %3479 = vtanh.f32 %v2636_v19  ;;  %v2633_v57 = vpop.permute.xlu1 %2632 }
0x25d9   :  { %v2637_v59 = vadd.f32 %v2633_v57, %v2617_v7  ;;  %v3359_v7 = vld [vmem:[#allocation4 + $0x20] sm:$0xff]   ;;  %v3360_v57 = vld [vmem:[#allocation4 + $0x28] sm:$0xff]  }
0x25db   :  { %3481 = vtanh.f32 %v2637_v59 }
0x25e2   :  { %v3480_v17 = vpop.eup %3479 }
0x25e3   :  { %2642 = vrot.lane.b32.xlu0 %v3480_v17, %s3565_s28 }
0x25e5   :  { %v3482_v61 = vpop.eup %3481 }
0x25e6   :  { %2644 = vrot.lane.b32.xlu1 %v3482_v61, %s3565_s28 }
0x2655   :  { %v2643_v55 = vpop.permute.xlu0 %2642 }
0x2656   :  { %v2648_v54 = vmul.f32 %v2643_v55, %v2614_v60  ;;  %v3363_v55 = vld [vmem:[#allocation4 + $0x40] sm:$0xff]  }
0x2658   :  { %v2645_v21 = vpop.permute.xlu1 %2644 }
0x2659   :  { %v2649_v62 = vmul.f32 %v2645_v21, %v2615_v50  ;;  %v3365_v21 = vld [vmem:[#allocation4 + $0x50] sm:$0xff]  }
0x265b   :  { %v2652_v53 = vpack.c.bf16 %v2649_v62, %v2648_v54  ;;  %v3366_v54 = vld [vmem:[#allocation4 + $0x58] sm:$0xff]   ;;  %v3367_v62 = vld [vmem:[#allocation4 + $0x60] sm:$0xff]  }
0x265d   :  { %2654 = vrot.lane.b32.xlu0 %v2652_v53, %s3574_s8  ;;  %v3368_v53 = vld [vmem:[#allocation4 + $0x68] sm:$0xff]  }
0x26cf   :  { %v2655_v1 = vpop.permute.xlu0 %2654 }
0x26d0   :  { %3225 = vmatmul.mubr.msk.bf16.vlgmr.msra.gmra.mrb[68].mxu1 %vm579_vm10, %v2655_v1 }
0x26d1   :  { %3251 = vmatpush3.bf16.msra.mxu1 %v3355_v14  ;;  %3258 = vmatprep.mubr.msk.bf16.mxu1 %vm3575_vm3, %v3572_v31 }
0x26d2   :  { %3252 = vmatprep.subr.bf16.mxu1 %v3572_v31 }
0x27a3   :  { %v2693_v26 = vpop.f32.mrb[68].mxu1 }
0x27a4   :  { %v2700_v18 = vadd.f32 %v2693_v26, %v4311_v22  ;;  %v2695_v37 = vpop.f32.mrb[69].mxu1 }
0x27a5   :  { %v2696_v12 = vpop.f32.mrb[70].mxu1 }
0x27a6   :  { %3483 = vtanh.f32 %v2700_v18  ;;  %v2697_v49 = vpop.f32.mrb[71].mxu1  ;;  %v3369_v12 = vld [vmem:[#allocation4 + $0x70] sm:$0xff]  }
0x27a7   :  { %v2701_v16 = vadd.f32 %v2697_v49, %v4349_v33  ;;  %v3370_v49 = vld [vmem:[#allocation4 + $0x78] sm:$0xff]  }
0x27a9   :  { %3485 = vtanh.f32 %v2701_v16  ;;  %v3514_v16 = vld [vmem:[%s4528_s1] sm:$0xff]  ;;  %s3578_s1 = smov 126  }
0x27aa   :  { %vm3042_vm4 = vcmp.lt.f32.partialorder %v3514_v16, 0.5 }
0x27b0   :  { %v3484_v10 = vpop.eup %3483 }
0x27b1   :  { %2712 = vrot.lane.b32.xlu1 %v3484_v10, %s3565_s28  ;;  %v2704_v48 = vmul.f32 0.5, %v3484_v10  ;;  %v2855_v10 = vsub.s32 4, %v3761_v35 }
0x27b3   :  { %v3486_v25 = vpop.eup %3485  ;;  %v2706_v15 = vadd.f32 0.5, %v2704_v48 }
0x27b4   :  { %2714 = vrot.lane.b32.xlu0 %v3486_v25, %s3565_s28  ;;  %v2705_v51 = vmul.f32 0.5, %v3486_v25  ;;  %v3515_v25 = vld [vmem:[#allocation6] sm:$0xff] }
0x27b5   :  { %v2708_v33 = vmul.f32 %v2706_v15, %v2636_v19  ;;  %v3358_v19 = vld [vmem:[#allocation4 + $0x18] sm:$0xff]   ;;  %v2856_v48 = vrot.slane %v3515_v25, %v2855_v10 }
0x27b6   :  { %v2707_v40 = vadd.f32 0.5, %v2705_v51 }
0x27b8   :  { %v2709_v42 = vmul.f32 %v2707_v40, %v2637_v59  ;;  %v3361_v59 = vld [vmem:[#allocation4 + $0x30] sm:$0xff]  }
0x2823   :  { %v2713_v3 = vpop.permute.xlu1 %2712 }
0x2824   :  { %v2718_v38 = vmul.f32 %v2713_v3, %v2706_v15 }
0x2826   :  { %2722 = vrot.lane.b32.xlu1 %v2718_v38, %s3574_s8  ;;  %v2715_v22 = vpop.permute.xlu0 %2714 }
0x2827   :  { %v2719_v45 = vmul.f32 %v2715_v22, %v2707_v40 }
0x2829   :  { %2724 = vrot.lane.b32.xlu0 %v2719_v45, %s3574_s8 }
0x2898   :  { %v2723_v23 = vpop.permute.xlu1 %2722 }
0x2899   :  { %v2728_v41 = vadd.f32 %v2723_v23, %v2708_v33 }
0x289b   :  { %3487 = vtanh.f32 %v2728_v41  ;;  %v2725_v34 = vpop.permute.xlu0 %2724 }
0x289c   :  { %v2729_v27 = vadd.f32 %v2725_v34, %v2709_v42 }
0x289e   :  { %3489 = vtanh.f32 %v2729_v27 }
0x28a5   :  { %v3488_v43 = vpop.eup %3487 }
0x28a6   :  { %2734 = vrot.lane.b32.xlu1 %v3488_v43, %s3565_s28 }
0x28a8   :  { %v3490_v29 = vpop.eup %3489 }
0x28a9   :  { %2736 = vrot.lane.b32.xlu0 %v3490_v29, %s3565_s28 }
0x2918   :  { %v2735_v20 = vpop.permute.xlu1 %2734 }
0x2919   :  { %v2740_v30 = vmul.f32 %v2735_v20, %v2706_v15 }
0x291b   :  { %v2737_v24 = vpop.permute.xlu0 %2736 }
0x291c   :  { %v2741_v6 = vmul.f32 %v2737_v24, %v2707_v40 }
0x291e   :  { %v2743_v47 = vpack.c.bf16 %v2741_v6, %v2740_v30 }
0x2920   :  { %2745 = vrot.lane.b32.xlu1 %v2743_v47, %s3574_s8 }
0x2992   :  { %v2746_v4 = vpop.permute.xlu1 %2745 }
0x2993   :  { %3226 = vmatmul.mubr.msk.bf16.vlgmr.msra.gmra.mrb[56].mxu0 %vm579_vm10, %v2746_v4 }
0x2994   :  { %3003 = vmatpush1.bf16.msra.mxu0 %v3359_v7 }
0x2995   :  { %3004 = vmatprep.subr.bf16.mxu0 %v3570_v2 }
0x2998   :  { %3005 = vmatpush1.bf16.msra.mxu0 %v3360_v57 }
0x2999   :  { %3006 = vmatprep.subr.bf16.mxu0 %v3570_v2 }
0x299c   :  { %3007 = vmatpush1.bf16.msra.mxu0 %v3361_v59 }
0x299d   :  { %3008 = vmatprep.subr.bf16.mxu0 %v3570_v2 }
0x2a66   :  { %v2784_v39 = vpop.f32.mrb[56].mxu0 }
0x2a67   :  { %v2790_v52 = vadd.f32 %v2784_v39, %v4355_v46  ;;  %v2786_v56 = vpop.f32.mrb[57].mxu0  ;;  %v3356_v46 = vld [vmem:[#allocation4 + $0x8] sm:$0xff]  }
0x2a68   :  { %v2787_v32 = vpop.f32.mrb[58].mxu0  ;;  %3253 = vmatpush3.bf16.msra.mxu1 %v3356_v46 }
0x2a69   :  { %3491 = vtanh.f32 %v2790_v52  ;;  %v2788_v58 = vpop.f32.mrb[59].mxu0  ;;  %3254 = vmatprep.subr.bf16.mxu1 %v3572_v31 }
0x2a6c   :  { %3255 = vmatpush3.bf16.msra.mxu1 %v3357_v5 }
0x2a6d   :  { %3256 = vmatprep.subr.bf16.mxu1 %v3572_v31  ;;  %v3364_v31 = vld [vmem:[#allocation4 + $0x48] sm:$0xff]  }
0x2a70   :  { %3257 = vmatpush3.bf16.msra.mxu1 %v3358_v19 }
0x2a73   :  { %v3492_v13 = vpop.eup %3491 }
0x2a74   :  { %2796 = vrot.lane.b32.xlu0 %v3492_v13, %s3565_s28  ;;  %v2792_v36 = vmul.f32 0.5, %v3492_v13 }
0x2a76   :  { %v2793_v8 = vadd.f32 0.5, %v2792_v36 }
0x2a78   :  { %v2794_v63 = vmul.f32 %v2793_v8, %v2728_v41 }
0x2ae6   :  { %v2797_v60 = vpop.permute.xlu0 %2796 }
0x2ae7   :  { %v2799_v44 = vmul.f32 %v2797_v60, %v2793_v8 }
0x2ae9   :  { %2801 = vrot.lane.b32.xlu1 %v2799_v44, %s3574_s8 }
0x2b5b   :  { %v2802_v50 = vpop.permute.xlu1 %2801 }
0x2b5c   :  { %v2804_v9 = vadd.f32 %v2802_v50, %v2794_v63 }
0x2b5e   :  { %3493 = vtanh.f32 %v2804_v9 }
0x2b68   :  { %v3494_v11 = vpop.eup %3493 }
0x2b69   :  { %2807 = vrot.lane.b32.xlu0 %v3494_v11, %s3565_s28 }
0x2b6d   :  { %2816 = vrot.lane.b32.xlu0 %v4392_v0, %s3565_s28  ;;  %v3362_v0 = vld [vmem:[#allocation4 + $0x38] sm:$0xff]  }
0x2b6e   :  { %3009 = vmatpush1.bf16.msra.mxu0 %v3362_v0 }
0x2b6f   :  { %3010 = vmatprep.subr.bf16.mxu0 %v3570_v2 }
0x2b72   :  { %3011 = vmatpush1.bf16.msra.mxu0 %v3363_v55 }
0x2b73   :  { %3012 = vmatprep.subr.bf16.mxu0 %v3570_v2 }
0x2b76   :  { %3013 = vmatpush1.bf16.msra.mxu0 %v3364_v31 }
0x2b77   :  { %3014 = vmatprep.subr.bf16.mxu0 %v3570_v2 }
0x2b7a   :  { %3015 = vmatpush1.bf16.msra.mxu0 %v3365_v21 }
0x2b7b   :  { %3016 = vmatprep.subr.bf16.mxu0 %v3570_v2 }
0x2b7e   :  { %3017 = vmatpush1.bf16.msra.mxu0 %v3366_v54 }
0x2b7f   :  { %3018 = vmatprep.subr.bf16.mxu0 %v3570_v2 }
0x2b82   :  { %3019 = vmatpush1.bf16.msra.mxu0 %v3367_v62 }
0x2b83   :  { %3020 = vmatprep.subr.bf16.mxu0 %v3570_v2 }
0x2b86   :  { %3021 = vmatpush1.bf16.msra.mxu0 %v3368_v53 }
0x2b87   :  { %3022 = vmatprep.subr.bf16.mxu0 %v3570_v2 }
0x2b8a   :  { %3023 = vmatpush1.bf16.msra.mxu0 %v3369_v12 }
0x2b8b   :  { %3024 = vmatprep.subr.bf16.mxu0 %v3570_v2  ;;  %v2928_v2 = vsub.s32 5, %v3761_v35 }
0x2b8d   :  { %v2929_v33 = vrot.slane %v3515_v25, %v2928_v2 }
0x2b8e   :  { %3025 = vmatpush1.bf16.msra.mxu0 %v3370_v49 }
0x2bdb   :  { %v2808_v17 = vpop.permute.xlu0 %2807 }
0x2bdc   :  { %v2810_v61 = vmul.f32 %v2808_v17, %v2793_v8 }
0x2bde   :  { %2812 = vrot.lane.b32.xlu1 %v2810_v61, %s3574_s8  ;;  %s3577_s8 = smov 127  }
0x2bdf   :  { %v2817_v1 = vpop.permute.xlu0 %2816 }
0x2be2   :  { %3049 = vrot.lane.b32.xlu1 %v3514_v16, %s3576_s21 }
0x2be6   :  { %3087 = vrot.lane.b32.xlu1 %v3514_v16, %s3577_s8 }
0x2c50   :  { %v2813_v26 = vpop.permute.xlu1 %2812 }
0x2c51   :  { %v2819_v18 = vsel %vm579_vm10, %v2813_v26, %v2817_v1 }
0x2c52   :  { %v2852_v37 = vpack.c.bf16 %v2819_v18, %v2819_v18 }
0x2c54   :  { %3259 = vmatmul.mubr.msk.bf16.vlgmr.msra.gmra.mrb[72].mxu1 %vm367_vm8, %v2852_v37  ;;  %3244 = vmatprep.mubr.msk.bf16.mxu0 %vm367_vm8, %v2852_v37  ;;  %v3050_v47 = vpop.permute.xlu1 %3049 }
0x2c58   :  { %v3088_v11 = vpop.permute.xlu1 %3087 }
0x2d27   :  { %v2918_v51 = vpop.f32.mrb[72].mxu1 }
0x2d28   :  { %v2919_v15 = vadd.f32 %v2918_v51, %v2856_v48  ;;  %v3260_v3 = vpop.f32.mrb[73].mxu1 }
0x2d29   :  { %v2921_v38 = vpop.f32.mrb[74].mxu1 }
0x2d2a   :  { %v2924_v40 = vmax.f32 %v2919_v15, 0.0  ;;  %v3261_v22 = vpop.f32.mrb[75].mxu1 }
0x2d2c   :  { %v2925_v45 = vpack.c.bf16 %v2924_v40, %v2924_v40 }
0x2d2e   :  { %3035 = vmatmul.mubr.bf16.vlgmr.msra.gmra.mrb[60].mxu0 %v2925_v45 }
0x2e01   :  { %v3036_v23 = vpop.f32.mrb[60].mxu0 }
0x2e02   :  { %v4514_v41 = vadd.f32 %v3036_v23, %v2929_v33  ;;  %v3038_v42 = vpop.f32.mrb[61].mxu0 }
0x2e03   :  { %v3039_v34 = vpop.f32.mrb[62].mxu0 }
0x2e04   :  { %v3054_v27 = vand.u32 2147483647, %v4514_v41  ;;  %v3040_v43 = vpop.f32.mrb[63].mxu0  ;;  %3044 = vrot.lane.b32.xlu0 %v4514_v41, %s3577_s8  ;;  %v3048_v4 = vmax.f32 %v4514_v41, 0.0  ;;  %v3052_v39 = vmul.f32 %v3050_v47, %v4514_v41 }
0x2e06   :  { %v3055_v29 = vsub.f32 0.0, %v3054_v27  ;;  %v3053_v13 = vsub.f32 %v3048_v4, %v3052_v39 }
0x2e08   :  { %v3056_v20 = vmul.f32 1.442695, %v3055_v29 }
0x2e0a   :  { %3495 = vpow2.f32 %v3056_v20 }
0x2e14   :  { %v3496_v24 = vpop.eup %3495 }
0x2e15   :  { %v3058_v30 = vadd.f32 1.0, %v3496_v24  ;;  %v3061_v6 = vmul.f32 -0.5, %v3496_v24  ;;  %v3064_v52 = vand.u32 2147483647, %v3496_v24 }
0x2e17   :  { %3497 = vlog2.f32 %v3058_v30  ;;  %v3062_v35 = vadd.f32 1.0, %v3061_v6  ;;  %vm3065_vm8 = vcmp.lt.f32.partialorder %v3064_v52, 0.0004427343 }
0x2e19   :  { %v3063_v58 = vmul.f32 %v3496_v24, %v3062_v35 }
0x2e21   :  { %v3498_v56 = vpop.eup %3497 }
0x2e22   :  { %v3060_v32 = vmul.f32 0.6931472, %v3498_v56 }
0x2e24   :  { %v3066_v36 = vsel %vm3065_vm8, %v3063_v58, %v3060_v32 }
0x2e25   :  { %v3067_v8 = vadd.f32 %v3066_v36, %v3053_v13 }
0x2e27   :  { %3069 = vrot.lane.b32.xlu0 %v3067_v8, %s3578_s1 }
0x2e76   :  { %v3045_v60 = vpop.permute.xlu0 %3044 }
0x2e77   :  { %v3047_v44 = vsel %vm3042_vm4, %v4514_v41, %v3045_v60 }
0x2e78   :  { %v3092_v63 = vand.u32 2147483647, %v3047_v44  ;;  %v3086_v7 = vmax.f32 %v3047_v44, 0.0  ;;  %v3090_v57 = vmul.f32 %v3088_v11, %v3047_v44 }
0x2e7a   :  { %v3093_v50 = vsub.f32 0.0, %v3092_v63  ;;  %v3091_v55 = vsub.f32 %v3086_v7, %v3090_v57 }
0x2e7c   :  { %v3094_v9 = vmul.f32 1.442695, %v3093_v50 }
0x2e7e   :  { %3499 = vpow2.f32 %v3094_v9 }
0x2e88   :  { %v3500_v14 = vpop.eup %3499 }
0x2e89   :  { %v3096_v46 = vadd.f32 1.0, %v3500_v14  ;;  %v3099_v5 = vmul.f32 -0.5, %v3500_v14  ;;  %v3102_v59 = vand.u32 2147483647, %v3500_v14 }
0x2e8b   :  { %3501 = vlog2.f32 %v3096_v46  ;;  %v3100_v19 = vadd.f32 1.0, %v3099_v5  ;;  %vm3103_vm6 = vcmp.lt.f32.partialorder %v3102_v59, 0.0004427343 }
0x2e8d   :  { %v3101_v0 = vmul.f32 %v3500_v14, %v3100_v19 }
0x2e95   :  { %v3502_v17 = vpop.eup %3501 }
0x2e96   :  { %v3098_v61 = vmul.f32 0.6931472, %v3502_v17 }
0x2e98   :  { %v3104_v31 = vsel %vm3103_vm6, %v3101_v0, %v3098_v61 }
0x2e99   :  { %v3070_v21 = vpop.permute.xlu0 %3069  ;;  %v3105_v54 = vadd.f32 %v3104_v31, %v3091_v55 }
0x2e9a   :  { %v3073_v62 = vsel %vm3072_vm5, %v3070_v21, 0.0 }
0x2e9b   :  { %3074 = vadd.xlane.f32.xlu1 %v3073_v62  ;;  %v3106_v53 = vsel %vm3072_vm5, %v3105_v54, 0.0 }
0x2e9c   :  { %3107 = vadd.xlane.f32.xlu0 %v3106_v53 }
0x2eb2   :  { %3123 = vperm.xlu0 %3318, %v3047_v44  }
0x2f28   :  { %v3075_v1 = vpop.xlane.xlu1 %3074 }
0x2f29   :  { %v3076_v26 = vrot.slane %v3075_v1, 4  ;;  %v3108_v18 = vpop.xlane.xlu0 %3107 }
0x2f2a   :  { %v3109_v37 = vrot.slane %v3108_v18, 4 }
0x2f2b   :  { %v3077_v12 = vadd.f32 %v3076_v26, %v3075_v1 }
0x2f2c   :  { %v3110_v49 = vadd.f32 %v3109_v37, %v3108_v18 }
0x2f2d   :  { %v3078_v16 = vrot.slane %v3077_v12, 2 }
0x2f2e   :  { %v3111_v10 = vrot.slane %v3110_v49, 2 }
0x2f2f   :  { %v3079_v25 = vadd.f32 %v3078_v16, %v3077_v12 }
0x2f30   :  { %v3112_v48 = vadd.f32 %v3111_v10, %v3110_v49 }
0x2f31   :  { %v3080_v51 = vrot.slane %v3079_v25, 1  ;;  %v3124_v40 = vpop.permute.xlu0 %3123 }
0x2f32   :  { %v3113_v15 = vrot.slane %v3112_v48, 1  ;;  %v3126_v22 = vsel %vm3120_vm7, %v3124_v40, %v4514_v41 }
0x2f33   :  { %v3081_v3 = vadd.f32 %v3080_v51, %v3079_v25 }
0x2f34   :  { %v3114_v38 = vadd.f32 %v3113_v15, %v3112_v48 }
0x2f35   :  { %3275 = vpush %v3081_v3 }
0x2f36   :  { %3277 = vpush %v3114_v38 }
0x2f66   :  { %s3276_s6 = spop %3275 }
0x2f67   :  { %s3085_s7 = smul.f32 0.125, %s3276_s6  ;;  %s3278_s9 = spop %3277 }
0x2f68   :  { %s3118_s10 = smul.f32 0.125, %s3278_s9 }
0x2f6a   :  { %s3119_s11 = sadd.f32 %s3118_s10, %s3085_s7 }
0x2f6c   :  { %v3128_v45 = vstv %s3119_s11 }
0x2f6d   :  { %v3129_v2 = vsel %vm3127_vm9, %v3128_v45, %v3126_v22 }
0x2f6e   :  { %3130 = vst [vmem:[%s4532_s5] sm:$0xff] %v3129_v2 }
0x2f6f   :  { %3135 = vsyncpa [#allocation5], 1 }
0x2f70   :  { %3136 = vsyncpa [#allocation7], 1 }

</bundles_post_ra>
